<compile_context>
chip_gen: v7x
topology: tpu7x:2x2x1
jax: 0.10.0
libtpu: 0.0.40
codegen_flags: <defaults>
</compile_context>

<pallas_src>
import functools

import jax
import jax.numpy as jnp
import numpy as np
from jax.experimental import pallas as pl
from jax.experimental.pallas import tpu as pltpu  # noqa: F401  (kept for TPU-specific tuning hooks)

LEAKY_SLOPE = 0.2
KPAD = 48  # zero-padded contraction dim for the conv1 block-diag matmul (n=36 -> 48)


def _leaky(v):
    return jnp.where(v >= 0, v, LEAKY_SLOPE * v)


# --------------------------------------------------------------------------------------
# Shared slab layouts (used by the host-side packer and by the kernel's static slices).
# --------------------------------------------------------------------------------------
def _enc_layout(E):
    off, r = {}, 0

    def add(name, nrows, ncols):
        nonlocal r
        off[name] = (r, r + nrows, ncols)
        r += nrows

    add('w1', KPAD, 96)
    add('w2', 96, 96)
    add('w3', 96, 96)
    add('wfc1', 96, 2 * E)
    add('wfc2', 2 * E, E)
    add('b1', 1, 96)
    add('b2', 1, 96)
    add('b3', 1, 96)
    add('bfc1', 1, 2 * E)
    add('bfc2', 1, E)
    return off, ((r + 7) // 8) * 8, 96


def _rec_layout(E, H, Z, C):
    off, r = {}, 0

    def add(name, nrows, ncols):
        nonlocal r
        off[name] = (r, r + nrows, ncols)
        r += nrows

    add('wh', H, 7 * H)
    add('wx', E, 5 * H)
    add('wih', 2 * H, 4 * H)
    add('wmv2', 2 * H, 2 * Z)
    add('wcmv', C, 2 * H)
    add('wpz', Z, 2 * H)
    add('wc2', H, C)
    add('bx', 1, 5 * H)
    add('bc2', 1, C)
    add('bmv2', 1, 2 * Z)
    add('blstm', 1, 4 * H)
    return off, ((r + 7) // 8) * 8, 7 * H


# --------------------------------------------------------------------------------------
# The single fused Pallas kernel: encoder (3 convs-as-block-diag-matmuls + 2 FC) followed
# by the T-step recurrent inference loop, all resident in VMEM.
# --------------------------------------------------------------------------------------
def _fused_kernel(x_ref, noise_ref, enc_ref, rec_ref, out_ref,
                  *, inv_temp, B, T, E, H, Z, C, pack_width):
    f32 = jnp.float32
    eo, _, _ = _enc_layout(E)
    ro, _, _ = _rec_layout(E, H, Z, C)

    def dot(a, b):
        return jnp.dot(a, b, preferred_element_type=f32)

    def w(ref, off, name):
        r0, r1, nc = off[name]
        return ref[r0:r1, 0:nc]          # static VMEM window read at use site

    # ---------------- fused encoder (time-major rows: row = t*B + b) ----------------
    xs = x_ref[...]                                                       # [T*B, KPAD]
    h = _leaky(dot(xs, w(enc_ref, eo, 'w1')) + w(enc_ref, eo, 'b1'))      # conv1 -> [T*B, 96]
    h = _leaky(dot(h, w(enc_ref, eo, 'w2')) + w(enc_ref, eo, 'b2'))       # conv2
    h = _leaky(dot(h, w(enc_ref, eo, 'w3')) + w(enc_ref, eo, 'b3'))       # conv3
    h = _leaky(dot(h, w(enc_ref, eo, 'wfc1')) + w(enc_ref, eo, 'bfc1'))   # fc1 -> [T*B, 2E]
    x_hat = _leaky(dot(h, w(enc_ref, eo, 'wfc2')) + w(enc_ref, eo, 'bfc2'))  # fc2 -> [T*B, E]

    # ---------------- hoisted x-side projection (off the serial recurrence chain) ----------------
    xw_all = dot(x_hat, w(rec_ref, ro, 'wx')) + w(rec_ref, ro, 'bx')      # [T*B, 5H]

    # small bias rows: hoist once (a couple of vregs; big weight matrices stay in VMEM)
    bc2 = w(rec_ref, ro, 'bc2')
    bmv2 = w(rec_ref, ro, 'bmv2')
    blstm = w(rec_ref, ro, 'blstm')

    h_t = jnp.zeros((B, H), f32)
    c_t = jnp.zeros((B, H), f32)
    outs = {k: [] for k in ('z', 'zm', 'zlv', 'h', 'cate', 'logits', 'prob')}

    # ---------------- recurrent loop (statically unrolled; T is small) ----------------
    for t in range(T):
        xw = xw_all[t * B:(t + 1) * B, :]               # [B, 5H] = [c1 | m1 | v1 | phi]
        g_t = noise_ref[t * B:(t + 1) * B, 0:C]         # gumbel noise
        e_t = noise_ref[t * B:(t + 1) * B, C:C + Z]     # gaussian noise

        # h-side projection for all first-layer linears: [c1 | m1 | v1 | lstm_hh]
        hw = dot(h_t, w(rec_ref, ro, 'wh'))             # [B, 7H]

        # xh_c_layer
        l1 = _leaky(xw[:, 0:H] + hw[:, 0:H])
        logits = _leaky(dot(l1, w(rec_ref, ro, 'wc2')) + bc2)

        # fused double softmax: rows 0:B -> prob(logits), rows B:2B -> gumbel-softmax cate
        stk = jnp.concatenate([logits, (logits + g_t) * inv_temp], axis=0)   # [2B, C]
        m = jnp.max(stk, axis=-1, keepdims=True)
        ex = jnp.exp(stk - m)
        s = jnp.sum(ex, axis=-1, keepdims=True)
        sm = ex * pl.reciprocal(s, approx=True)          # division -> EUP vrcp
        prob = sm[0:B, :]
        cate = sm[B:2 * B, :]

        # Pz_xhc_mean / Pz_xhc_logvar: contiguous [B, 2H] tile, no concat/slice shuffles
        cw = dot(cate, w(rec_ref, ro, 'wcmv'))                         # [B, 2H]
        mv1 = _leaky(xw[:, H:3 * H] + hw[:, H:3 * H] + cw)             # [B, 2H]
        mv = _leaky(dot(mv1, w(rec_ref, ro, 'wmv2')) + bmv2)           # [B, 2Z] (Wmv2 block-diag)
        zmean = mv[:, 0:Z]
        zlogvar = mv[:, Z:2 * Z]

        # reparameterization (training mode: mean + eps * std)
        z = zmean + e_t * jnp.exp(0.5 * zlogvar)

        # phi_xz + LSTMCell (x-side / h-side already inside xw / hw)
        phi = _leaky(xw[:, 3 * H:5 * H] + dot(z, w(rec_ref, ro, 'wpz')))
        gates = dot(phi, w(rec_ref, ro, 'wih')) + hw[:, 3 * H:7 * H] + blstm   # [B, 4H]
        sg = jax.nn.sigmoid(gates)                       # full-width nonlinearities
        th = jnp.tanh(gates)

        for k, v in (('z', z), ('zm', zmean), ('zlv', zlogvar), ('h', h_t),
                     ('cate', cate), ('logits', logits), ('prob', prob)):
            outs[k].append(v)

        c_t = sg[:, H:2 * H] * c_t + sg[:, 0:H] * th[:, 2 * H:3 * H]
        h_t = sg[:, 3 * H:4 * H] * jnp.tanh(c_t)

    # ---------------- lane/sublane-dense packed output: one unmasked [T*B, 128] store ----------------
    cols = [jnp.concatenate(outs[k], axis=0)
            for k in ('z', 'zm', 'zlv', 'h', 'cate', 'logits', 'prob')]   # each [T*B, w_k]
    total = 3 * Z + H + 3 * C
    if pack_width > total:
        cols.append(jnp.zeros((T * B, pack_width - total), f32))
    out_ref[...] = jnp.concatenate(cols, axis=1)


# --------------------------------------------------------------------------------------
# Wrapper: layout plumbing + single pallas_call + unpacking of the lane-dense output slab.
# --------------------------------------------------------------------------------------
def inference_net_forward(x, temperature, enc_slab, rec_slab, gumbel, eps, dims):
    B, T, n, E, H, Z, C = dims
    f32 = jnp.float32
    total = 3 * Z + H + 3 * C
    pack_width = ((total + 127) // 128) * 128

    # time-major slab: row t*B + b  <->  x[b, 0, t, :, 0]; zero-pad contraction dim to KPAD.
    x_tm = jnp.transpose(x.reshape(B, T, n), (1, 0, 2)).reshape(T * B, n).astype(f32)
    x_tm = jnp.pad(x_tm, ((0, 0), (0, KPAD - n)))

    # one packed noise slab: [gumbel | eps] per time-major row
    noise = jnp.concatenate([gumbel.reshape(T * B, C), eps.reshape(T * B, Z)],
                            axis=1).astype(f32)

    kernel = functools.partial(_fused_kernel, inv_temp=float(1.0 / temperature),
                               B=B, T=T, E=E, H=H, Z=Z, C=C, pack_width=pack_width)

    packed = pl.pallas_call(
        kernel,
        out_shape=jax.ShapeDtypeStruct((T * B, pack_width), f32),
    )(x_tm, noise, enc_slab, rec_slab)

    packed = jnp.transpose(packed.reshape(T, B, pack_width), (1, 0, 2))   # [B, T, 128]
    o = np.cumsum([0, Z, Z, Z, H, C, C, C])
    return tuple(packed[..., o[i]:o[i + 1]] for i in range(7))
    # order: z_posterior, z_mean_posterior, z_logvar_posterior, h_out,
    #        cate_posterior, logits_out, posterior_prob_out


# --------------------------------------------------------------------------------------
# Parameter construction (deterministic, PyTorch-style fan-in uniform init)
# --------------------------------------------------------------------------------------
def init_params(key, E, H, Z, C):
    keys = iter(jax.random.split(key, 64))

    def lin(out_f, in_f):
        bound = 1.0 / np.sqrt(in_f)
        w = jax.random.uniform(next(keys), (out_f, in_f), jnp.float32, -bound, bound)
        b = jax.random.uniform(next(keys), (out_f,), jnp.float32, -bound, bound)
        return w, b

    def conv(out_c, in_c, k):
        bound = 1.0 / np.sqrt(in_c * k)
        w = jax.random.uniform(next(keys), (out_c, in_c, k), jnp.float32, -bound, bound)
        b = jax.random.uniform(next(keys), (out_c,), jnp.float32, -bound, bound)
        return w, b

    p = {}
    p['conv1_w'], p['conv1_b'] = conv(8, 1, 3)           # ConvUnit1d(1, 8, k=3, s=3)
    p['conv2_w'], p['conv2_b'] = conv(16, 8, 2)          # ConvUnit1d(8, 16, k=2, s=2)
    p['conv3_w'], p['conv3_b'] = conv(32, 16, 2)         # ConvUnit1d(16, 32, k=2, s=2)
    p['fc1_w'], p['fc1_b'] = lin(2 * E, 32 * 3)
    p['fc2_w'], p['fc2_b'] = lin(E, 2 * E)
    p['c1_w'], p['c1_b'] = lin(H, E + H)                 # xh_c_layer
    p['c2_w'], p['c2_b'] = lin(C, H)
    p['m1_w'], p['m1_b'] = lin(H, E + H + C)             # Pz_xhc_mean
    p['m2_w'], p['m2_b'] = lin(Z, H)
    p['v1_w'], p['v1_b'] = lin(H, E + H + C)             # Pz_xhc_logvar
    p['v2_w'], p['v2_b'] = lin(Z, H)
    p['p_w'], p['p_b'] = lin(2 * H, E + Z)               # phi_xz
    bound = 1.0 / np.sqrt(H)
    p['lstm_wih'] = jax.random.uniform(next(keys), (4 * H, 2 * H), jnp.float32, -bound, bound)
    p['lstm_whh'] = jax.random.uniform(next(keys), (4 * H, H), jnp.float32, -bound, bound)
    p['lstm_bih'] = jax.random.uniform(next(keys), (4 * H,), jnp.float32, -bound, bound)
    p['lstm_bhh'] = jax.random.uniform(next(keys), (4 * H,), jnp.float32, -bound, bound)
    return p


def _block_diag(block, n_rep):
    kin, kout = block.shape
    W = jnp.zeros((n_rep * kin, n_rep * kout), jnp.float32)
    for i in range(n_rep):
        W = W.at[i * kin:(i + 1) * kin, i * kout:(i + 1) * kout].set(block)
    return W


def kernelize_params(p, E, H, Z, C, n=36):
    """Rearrange PyTorch-layout weights into the fused layouts the Pallas kernel expects."""
    kp = {}
    # --- encoder: stride==kernel convs become block-diagonal matmuls on (pos, channel) slabs ---
    L1, L2, L3 = 12, 6, 3
    w1 = p['conv1_w'][:, 0, :].T                                   # [3, 8]
    kp['enc_w1'] = jnp.pad(_block_diag(w1, L1), ((0, KPAD - n), (0, 0)))     # [48, 96]
    kp['enc_b1'] = jnp.tile(p['conv1_b'], L1).reshape(1, -1)
    kp['enc_w2'] = _block_diag(jnp.transpose(p['conv2_w'], (2, 1, 0)).reshape(16, 16), L2)
    kp['enc_b2'] = jnp.tile(p['conv2_b'], L2).reshape(1, -1)
    kp['enc_w3'] = _block_diag(jnp.transpose(p['conv3_w'], (2, 1, 0)).reshape(32, 32), L3)
    kp['enc_b3'] = jnp.tile(p['conv3_b'], L3).reshape(1, -1)
    # PyTorch flattens conv output as (channel, length); our slab is (length, channel).
    perm = (np.arange(32)[None, :] * 3 + np.arange(3)[:, None]).reshape(-1)
    kp['enc_wfc1'] = p['fc1_w'][:, perm].T                         # [96, 2E]
    kp['enc_bfc1'] = p['fc1_b'].reshape(1, -1)
    kp['enc_wfc2'] = p['fc2_w'].T                                  # [2E, E]
    kp['enc_bfc2'] = p['fc2_b'].reshape(1, -1)

    # --- recurrence: fuse x-side, h-side, cate-side and mean/logvar second-layer weights ---
    wc1x, wc1h = p['c1_w'][:, :E].T, p['c1_w'][:, E:].T
    wm1x, wm1h, wm1c = p['m1_w'][:, :E].T, p['m1_w'][:, E:E + H].T, p['m1_w'][:, E + H:].T
    wv1x, wv1h, wv1c = p['v1_w'][:, :E].T, p['v1_w'][:, E:E + H].T, p['v1_w'][:, E + H:].T
    wpx, wpz = p['p_w'][:, :E].T, p['p_w'][:, E:].T
    wih, whh = p['lstm_wih'].T, p['lstm_whh'].T

    kp['wx'] = jnp.concatenate([wc1x, wm1x, wv1x, wpx], axis=1)    # [E, 5H]
    kp['bx'] = jnp.concatenate([p['c1_b'], p['m1_b'], p['v1_b'], p['p_b']]).reshape(1, -1)
    kp['wh'] = jnp.concatenate([wc1h, wm1h, wv1h, whh], axis=1)    # [H, 7H]
    kp['wc2'] = p['c2_w'].T                                        # [H, C]
    kp['bc2'] = p['c2_b'].reshape(1, -1)
    kp['wcmv'] = jnp.concatenate([wm1c, wv1c], axis=1)             # [C, 2H]
    wmv2 = jnp.zeros((2 * H, 2 * Z), jnp.float32)
    wmv2 = wmv2.at[:H, :Z].set(p['m2_w'].T).at[H:, Z:].set(p['v2_w'].T)
    kp['wmv2'] = wmv2                                              # block-diag [2H, 2Z]
    kp['bmv2'] = jnp.concatenate([p['m2_b'], p['v2_b']]).reshape(1, -1)
    kp['wpz'] = wpz                                                # [Z, 2H]
    kp['wih'] = wih                                                # [2H, 4H]
    kp['blstm'] = (p['lstm_bih'] + p['lstm_bhh']).reshape(1, -1)
    return kp


def pack_slabs(kp, E, H, Z, C):
    """Pack the 21 fused weight/bias arrays into two lane-dense f32 slabs (2 DMAs total)."""
    enc_off, enc_rows, enc_w = _enc_layout(E)
    enc = np.zeros((enc_rows, enc_w), np.float32)
    enc_map = {'w1': 'enc_w1', 'w2': 'enc_w2', 'w3': 'enc_w3',
               'wfc1': 'enc_wfc1', 'wfc2': 'enc_wfc2',
               'b1': 'enc_b1', 'b2': 'enc_b2', 'b3': 'enc_b3',
               'bfc1': 'enc_bfc1', 'bfc2': 'enc_bfc2'}
    for name, key in enc_map.items():
        r0, r1, nc = enc_off[name]
        enc[r0:r1, :nc] = np.asarray(kp[key], np.float32)

    rec_off, rec_rows, rec_w = _rec_layout(E, H, Z, C)
    rec = np.zeros((rec_rows, rec_w), np.float32)
    for name in ['wh', 'wx', 'wih', 'wmv2', 'wcmv', 'wpz', 'wc2',
                 'bx', 'bc2', 'bmv2', 'blstm']:
        r0, r1, nc = rec_off[name]
        rec[r0:r1, :nc] = np.asarray(kp[name], np.float32)
    return jnp.asarray(enc), jnp.asarray(rec)


# --------------------------------------------------------------------------------------
# Pure-JAX reference (mirrors the PyTorch module) for validation.
# --------------------------------------------------------------------------------------
def reference_forward(x, temperature, p, gumbel, eps, dims):
    B, T, n, E, H, Z, C = dims
    xf = x.reshape(B * T, 1, n).astype(jnp.float32)

    def conv1d(h, W, b, k, s):
        M, Cin, L = h.shape
        Lo = (L - k) // s + 1
        idx = jnp.arange(Lo)[:, None] * s + jnp.arange(k)[None, :]
        win = h[:, :, idx]                               # [M, Cin, Lo, k]
        return jnp.einsum('mclk,ock->mol', win, W) + b[None, :, None]

    h = _leaky(conv1d(xf, p['conv1_w'], p['conv1_b'], 3, 3))
    h = _leaky(conv1d(h, p['conv2_w'], p['conv2_b'], 2, 2))
    h = _leaky(conv1d(h, p['conv3_w'], p['conv3_b'], 2, 2))
    h = h.reshape(B * T, 32 * 3)
    h = _leaky(h @ p['fc1_w'].T + p['fc1_b'])
    h = _leaky(h @ p['fc2_w'].T + p['fc2_b'])
    x_hat = h.reshape(B, T, E)

    h_t = jnp.zeros((B, H), jnp.float32)
    c_t = jnp.zeros((B, H), jnp.float32)
    acc = {k: [] for k in ['z', 'zm', 'zlv', 'h', 'cate', 'logits', 'prob']}
    for t in range(T):
        x_t = x_hat[:, t, :]
        xh = jnp.concatenate([x_t, h_t], axis=1)
        logits = _leaky(_leaky(xh @ p['c1_w'].T + p['c1_b']) @ p['c2_w'].T + p['c2_b'])
        prob = jax.nn.softmax(logits, axis=-1)
        cate = jax.nn.softmax((logits + gumbel[t]) / temperature, axis=-1)
        xhc = jnp.concatenate([xh, cate], axis=1)
        zm = _leaky(_leaky(xhc @ p['m1_w'].T + p['m1_b']) @ p['m2_w'].T + p['m2_b'])
        zlv = _leaky(_leaky(xhc @ p['v1_w'].T + p['v1_b']) @ p['v2_w'].T + p['v2_b'])
        z = zm + eps[t] * jnp.exp(0.5 * zlv)
        for k, v in (('z', z), ('zm', zm), ('zlv', zlv), ('h', h_t),
                     ('cate', cate), ('logits', logits), ('prob', prob)):
            acc[k].append(v)
        xz = jnp.concatenate([x_t, z], axis=1)
        phi = _leaky(xz @ p['p_w'].T + p['p_b'])
        gates = phi @ p['lstm_wih'].T + p['lstm_bih'] + h_t @ p['lstm_whh'].T + p['lstm_bhh']
        i_g = jax.nn.sigmoid(gates[:, :H])
        f_g = jax.nn.sigmoid(gates[:, H:2 * H])
        g_g = jnp.tanh(gates[:, 2 * H:3 * H])
        o_g = jax.nn.sigmoid(gates[:, 3 * H:])
        c_t = f_g * c_t + i_g * g_g
        h_t = o_g * jnp.tanh(c_t)
    return tuple(jnp.stack(acc[k], axis=1)
                 for k in ['z', 'zm', 'zlv', 'h', 'cate', 'logits', 'prob'])


if __name__ == "__main__":
    # Small shapes consistent with the module: n must be 36 or 38 for EncX (n=36 branch here).
    B, T, n, w = 2, 8, 36, 1
    E, H, Z, C = 16, 32, 8, 8            # enc_dim, hidden_dim, z_dim, cate_dim
    temperature = 0.5
    dims = (B, T, n, E, H, Z, C)

    key = jax.random.PRNGKey(0)
    k_x, k_p, k_u, k_e = jax.random.split(key, 4)

    x = jax.random.normal(k_x, (B, 1, T, n, w), jnp.float32)   # [batch, 1, T, n, w]

    params = init_params(k_p, E, H, Z, C)
    kp = kernelize_params(params, E, H, Z, C, n=n)
    enc_slab, rec_slab = pack_slabs(kp, E, H, Z, C)

    # Stochastic parts of the forward pass (torch.rand / torch.randn_like) are sampled
    # host-side (time-major) and fed to the kernel so the computation is deterministic.
    U = jax.random.uniform(k_u, (T, B, C), jnp.float32)
    gumbel = -jnp.log(-jnp.log(U + 1e-20) + 1e-20)
    eps = jax.random.normal(k_e, (T, B, Z), jnp.float32)

    outs = inference_net_forward(x, temperature, enc_slab, rec_slab, gumbel, eps, dims)
    outs = jax.block_until_ready(outs)

    with jax.default_matmul_precision('float32'):
        refs = jax.block_until_ready(reference_forward(x, temperature, params, gumbel, eps, dims))

    names = ['z_posterior', 'z_mean_posterior', 'z_logvar_posterior', 'h_out',
             'cate_posterior', 'logits_out', 'posterior_prob_out']
    for name, o, r in zip(names, outs, refs):
        assert o.shape == r.shape, (name, o.shape, r.shape)
        np.testing.assert_allclose(np.asarray(o), np.asarray(r), rtol=1e-2, atol=1e-2)

    print("KERNEL_OK")
</pallas_src>

<mosaic_0001>
module attributes {stable_mosaic.version = 11 : i64} {
  func.func @_fused_kernel(%arg0: memref<16x48xf32, #tpu.memory_space<vmem>>, %arg1: memref<16x16xf32, #tpu.memory_space<vmem>>, %arg2: memref<376x96xf32, #tpu.memory_space<vmem>>, %arg3: memref<232x224xf32, #tpu.memory_space<vmem>>, %arg4: memref<16x128xf32, #tpu.memory_space<vmem>>) attributes {dimension_semantics = [], scalar_prefetch = 0 : i64, scratch_operands = 0 : i64, tpu.core_type = #tpu.core_type<tc>} {
    %c0 = arith.constant 0 : index
    %c0_0 = arith.constant 0 : index
    %0 = vector.load %arg0[%c0, %c0_0] : memref<16x48xf32, #tpu.memory_space<vmem>>, vector<16x48xf32>
    %c0_1 = arith.constant 0 : index
    %c0_2 = arith.constant 0 : index
    %1 = vector.load %arg2[%c0_1, %c0_2] : memref<376x96xf32, #tpu.memory_space<vmem>>, vector<48x96xf32>
    %cst = arith.constant dense<0.000000e+00> : vector<16x96xf32>
    %2 = tpu.matmul %0, %1, %cst {dimension_numbers = #tpu.dot_dimension_numbers<[1], [0], [0], [1], [0, 0, 1, 1], [], []>} : vector<16x48xf32>, vector<48x96xf32>, vector<16x96xf32> -> vector<16x96xf32>
    %c368 = arith.constant 368 : index
    %c0_3 = arith.constant 0 : index
    %3 = vector.load %arg2[%c368, %c0_3] : memref<376x96xf32, #tpu.memory_space<vmem>>, vector<1x96xf32>
    %4 = vector.broadcast %3 : vector<1x96xf32> to vector<16x96xf32>
    %5 = arith.addf %2, %4 : vector<16x96xf32>
    %cst_4 = arith.constant 0.000000e+00 : f32
    %6 = vector.broadcast %cst_4 : f32 to vector<16x96xf32>
    %7 = arith.cmpf oge, %5, %6 : vector<16x96xf32>
    %cst_5 = arith.constant 2.000000e-01 : f32
    %8 = vector.broadcast %cst_5 : f32 to vector<16x96xf32>
    %9 = arith.mulf %8, %5 : vector<16x96xf32>
    %10 = arith.select %7, %5, %9 : vector<16x96xi1>, vector<16x96xf32>
    %c48 = arith.constant 48 : index
    %c0_6 = arith.constant 0 : index
    %11 = vector.load %arg2[%c48, %c0_6] : memref<376x96xf32, #tpu.memory_space<vmem>>, vector<96x96xf32>
    %cst_7 = arith.constant dense<0.000000e+00> : vector<16x96xf32>
    %12 = tpu.matmul %10, %11, %cst_7 {dimension_numbers = #tpu.dot_dimension_numbers<[1], [0], [0], [1], [0, 0, 1, 1], [], []>} : vector<16x96xf32>, vector<96x96xf32>, vector<16x96xf32> -> vector<16x96xf32>
    %c369 = arith.constant 369 : index
    %c0_8 = arith.constant 0 : index
    %13 = vector.load %arg2[%c369, %c0_8] : memref<376x96xf32, #tpu.memory_space<vmem>>, vector<1x96xf32>
    %14 = vector.broadcast %13 : vector<1x96xf32> to vector<16x96xf32>
    %15 = arith.addf %12, %14 : vector<16x96xf32>
    %cst_9 = arith.constant 0.000000e+00 : f32
    %16 = vector.broadcast %cst_9 : f32 to vector<16x96xf32>
    %17 = arith.cmpf oge, %15, %16 : vector<16x96xf32>
    %cst_10 = arith.constant 2.000000e-01 : f32
    %18 = vector.broadcast %cst_10 : f32 to vector<16x96xf32>
    %19 = arith.mulf %18, %15 : vector<16x96xf32>
    %20 = arith.select %17, %15, %19 : vector<16x96xi1>, vector<16x96xf32>
    %c144 = arith.constant 144 : index
    %c0_11 = arith.constant 0 : index
    %21 = vector.load %arg2[%c144, %c0_11] : memref<376x96xf32, #tpu.memory_space<vmem>>, vector<96x96xf32>
    %cst_12 = arith.constant dense<0.000000e+00> : vector<16x96xf32>
    %22 = tpu.matmul %20, %21, %cst_12 {dimension_numbers = #tpu.dot_dimension_numbers<[1], [0], [0], [1], [0, 0, 1, 1], [], []>} : vector<16x96xf32>, vector<96x96xf32>, vector<16x96xf32> -> vector<16x96xf32>
    %c370 = arith.constant 370 : index
    %c0_13 = arith.constant 0 : index
    %23 = vector.load %arg2[%c370, %c0_13] : memref<376x96xf32, #tpu.memory_space<vmem>>, vector<1x96xf32>
    %24 = vector.broadcast %23 : vector<1x96xf32> to vector<16x96xf32>
    %25 = arith.addf %22, %24 : vector<16x96xf32>
    %cst_14 = arith.constant 0.000000e+00 : f32
    %26 = vector.broadcast %cst_14 : f32 to vector<16x96xf32>
    %27 = arith.cmpf oge, %25, %26 : vector<16x96xf32>
    %cst_15 = arith.constant 2.000000e-01 : f32
    %28 = vector.broadcast %cst_15 : f32 to vector<16x96xf32>
    %29 = arith.mulf %28, %25 : vector<16x96xf32>
    %30 = arith.select %27, %25, %29 : vector<16x96xi1>, vector<16x96xf32>
    %c240 = arith.constant 240 : index
    %c0_16 = arith.constant 0 : index
    %31 = vector.load %arg2[%c240, %c0_16] : memref<376x96xf32, #tpu.memory_space<vmem>>, vector<96x32xf32>
    %cst_17 = arith.constant dense<0.000000e+00> : vector<16x32xf32>
    %32 = tpu.matmul %30, %31, %cst_17 {dimension_numbers = #tpu.dot_dimension_numbers<[1], [0], [0], [1], [0, 0, 1, 1], [], []>} : vector<16x96xf32>, vector<96x32xf32>, vector<16x32xf32> -> vector<16x32xf32>
    %c371 = arith.constant 371 : index
    %c0_18 = arith.constant 0 : index
    %33 = vector.load %arg2[%c371, %c0_18] : memref<376x96xf32, #tpu.memory_space<vmem>>, vector<1x32xf32>
    %34 = vector.broadcast %33 : vector<1x32xf32> to vector<16x32xf32>
    %35 = arith.addf %32, %34 : vector<16x32xf32>
    %cst_19 = arith.constant 0.000000e+00 : f32
    %36 = vector.broadcast %cst_19 : f32 to vector<16x32xf32>
    %37 = arith.cmpf oge, %35, %36 : vector<16x32xf32>
    %cst_20 = arith.constant 2.000000e-01 : f32
    %38 = vector.broadcast %cst_20 : f32 to vector<16x32xf32>
    %39 = arith.mulf %38, %35 : vector<16x32xf32>
    %40 = arith.select %37, %35, %39 : vector<16x32xi1>, vector<16x32xf32>
    %c336 = arith.constant 336 : index
    %c0_21 = arith.constant 0 : index
    %41 = vector.load %arg2[%c336, %c0_21] : memref<376x96xf32, #tpu.memory_space<vmem>>, vector<32x16xf32>
    %cst_22 = arith.constant dense<0.000000e+00> : vector<16x16xf32>
    %42 = tpu.matmul %40, %41, %cst_22 {dimension_numbers = #tpu.dot_dimension_numbers<[1], [0], [0], [1], [0, 0, 1, 1], [], []>} : vector<16x32xf32>, vector<32x16xf32>, vector<16x16xf32> -> vector<16x16xf32>
    %c372 = arith.constant 372 : index
    %c0_23 = arith.constant 0 : index
    %43 = vector.load %arg2[%c372, %c0_23] : memref<376x96xf32, #tpu.memory_space<vmem>>, vector<1x16xf32>
    %44 = vector.broadcast %43 : vector<1x16xf32> to vector<16x16xf32>
    %45 = arith.addf %42, %44 : vector<16x16xf32>
    %cst_24 = arith.constant 0.000000e+00 : f32
    %46 = vector.broadcast %cst_24 : f32 to vector<16x16xf32>
    %47 = arith.cmpf oge, %45, %46 : vector<16x16xf32>
    %cst_25 = arith.constant 2.000000e-01 : f32
    %48 = vector.broadcast %cst_25 : f32 to vector<16x16xf32>
    %49 = arith.mulf %48, %45 : vector<16x16xf32>
    %50 = arith.select %47, %45, %49 : vector<16x16xi1>, vector<16x16xf32>
    %c32 = arith.constant 32 : index
    %c0_26 = arith.constant 0 : index
    %51 = vector.load %arg3[%c32, %c0_26] : memref<232x224xf32, #tpu.memory_space<vmem>>, vector<16x160xf32>
    %cst_27 = arith.constant dense<0.000000e+00> : vector<16x160xf32>
    %52 = tpu.matmul %50, %51, %cst_27 {dimension_numbers = #tpu.dot_dimension_numbers<[1], [0], [0], [1], [0, 0, 1, 1], [], []>} : vector<16x16xf32>, vector<16x160xf32>, vector<16x160xf32> -> vector<16x160xf32>
    %c224 = arith.constant 224 : index
    %c0_28 = arith.constant 0 : index
    %53 = vector.load %arg3[%c224, %c0_28] : memref<232x224xf32, #tpu.memory_space<vmem>>, vector<1x160xf32>
    %54 = vector.broadcast %53 : vector<1x160xf32> to vector<16x160xf32>
    %55 = arith.addf %52, %54 : vector<16x160xf32>
    %c225 = arith.constant 225 : index
    %c0_29 = arith.constant 0 : index
    %56 = vector.load %arg3[%c225, %c0_29] : memref<232x224xf32, #tpu.memory_space<vmem>>, vector<1x8xf32>
    %c226 = arith.constant 226 : index
    %c0_30 = arith.constant 0 : index
    %57 = vector.load %arg3[%c226, %c0_30] : memref<232x224xf32, #tpu.memory_space<vmem>>, vector<1x16xf32>
    %c227 = arith.constant 227 : index
    %c0_31 = arith.constant 0 : index
    %58 = vector.load %arg3[%c227, %c0_31] : memref<232x224xf32, #tpu.memory_space<vmem>>, vector<1x128xf32>
    %cst_32 = arith.constant 0.000000e+00 : f32
    %59 = vector.broadcast %cst_32 : f32 to vector<2x32xf32>
    %cst_33 = arith.constant 0.000000e+00 : f32
    %60 = vector.broadcast %cst_33 : f32 to vector<2x32xf32>
    %61 = vector.extract_strided_slice %55 {offsets = [0, 0], sizes = [2, 160], strides = [1, 1]} : vector<16x160xf32> to vector<2x160xf32>
    %c0_34 = arith.constant 0 : index
    %c0_35 = arith.constant 0 : index
    %62 = vector.load %arg1[%c0_34, %c0_35] : memref<16x16xf32, #tpu.memory_space<vmem>>, vector<2x8xf32>
    %c0_36 = arith.constant 0 : index
    %c8 = arith.constant 8 : index
    %63 = vector.load %arg1[%c0_36, %c8] : memref<16x16xf32, #tpu.memory_space<vmem>>, vector<2x8xf32>
    %c0_37 = arith.constant 0 : index
    %c0_38 = arith.constant 0 : index
    %64 = vector.load %arg3[%c0_37, %c0_38] : memref<232x224xf32, #tpu.memory_space<vmem>>, vector<32x224xf32>
    %cst_39 = arith.constant dense<0.000000e+00> : vector<2x224xf32>
    %65 = tpu.matmul %59, %64, %cst_39 {dimension_numbers = #tpu.dot_dimension_numbers<[1], [0], [0], [1], [0, 0, 1, 1], [], []>} : vector<2x32xf32>, vector<32x224xf32>, vector<2x224xf32> -> vector<2x224xf32>
    %66 = vector.extract_strided_slice %61 {offsets = [0, 0], sizes = [2, 32], strides = [1, 1]} : vector<2x160xf32> to vector<2x32xf32>
    %67 = vector.extract_strided_slice %65 {offsets = [0, 0], sizes = [2, 32], strides = [1, 1]} : vector<2x224xf32> to vector<2x32xf32>
    %68 = arith.addf %66, %67 : vector<2x32xf32>
    %cst_40 = arith.constant 0.000000e+00 : f32
    %69 = vector.broadcast %cst_40 : f32 to vector<2x32xf32>
    %70 = arith.cmpf oge, %68, %69 : vector<2x32xf32>
    %cst_41 = arith.constant 2.000000e-01 : f32
    %71 = vector.broadcast %cst_41 : f32 to vector<2x32xf32>
    %72 = arith.mulf %71, %68 : vector<2x32xf32>
    %73 = arith.select %70, %68, %72 : vector<2x32xi1>, vector<2x32xf32>
    %c192 = arith.constant 192 : index
    %c0_42 = arith.constant 0 : index
    %74 = vector.load %arg3[%c192, %c0_42] : memref<232x224xf32, #tpu.memory_space<vmem>>, vector<32x8xf32>
    %cst_43 = arith.constant dense<0.000000e+00> : vector<2x8xf32>
    %75 = tpu.matmul %73, %74, %cst_43 {dimension_numbers = #tpu.dot_dimension_numbers<[1], [0], [0], [1], [0, 0, 1, 1], [], []>} : vector<2x32xf32>, vector<32x8xf32>, vector<2x8xf32> -> vector<2x8xf32>
    %76 = vector.broadcast %56 : vector<1x8xf32> to vector<2x8xf32>
    %77 = arith.addf %75, %76 : vector<2x8xf32>
    %cst_44 = arith.constant 0.000000e+00 : f32
    %78 = vector.broadcast %cst_44 : f32 to vector<2x8xf32>
    %79 = arith.cmpf oge, %77, %78 : vector<2x8xf32>
    %cst_45 = arith.constant 2.000000e-01 : f32
    %80 = vector.broadcast %cst_45 : f32 to vector<2x8xf32>
    %81 = arith.mulf %80, %77 : vector<2x8xf32>
    %82 = arith.select %79, %77, %81 : vector<2x8xi1>, vector<2x8xf32>
    %83 = arith.addf %82, %62 : vector<2x8xf32>
    %cst_46 = arith.constant 2.000000e+00 : f32
    %84 = vector.broadcast %cst_46 : f32 to vector<2x8xf32>
    %85 = arith.mulf %83, %84 : vector<2x8xf32>
    %86 = tpu.concatenate %82, %85 in 0 : vector<2x8xf32>, vector<2x8xf32> -> vector<4x8xf32>
    %cst_47 = arith.constant dense<0xFF800000> : vector<4xf32>
    %87 = vector.multi_reduction <maximumf>, %86, %cst_47 [1] : vector<4x8xf32> to vector<4xf32>
    %88 = vector.shape_cast %87 : vector<4xf32> to vector<4x1xf32>
    %89 = vector.broadcast %88 : vector<4x1xf32> to vector<4x8xf32>
    %90 = arith.subf %86, %89 : vector<4x8xf32>
    %91 = math.exp %90 : vector<4x8xf32>
    %cst_48 = arith.constant dense<0.000000e+00> : vector<4xf32>
    %92 = vector.multi_reduction <add>, %91, %cst_48 [1] : vector<4x8xf32> to vector<4xf32>
    %93 = vector.shape_cast %92 : vector<4xf32> to vector<4x1xf32>
    %94 = tpu.reciprocal %93 {approx = true} : vector<4x1xf32> -> vector<4x1xf32>
    %95 = vector.broadcast %94 : vector<4x1xf32> to vector<4x8xf32>
    %96 = arith.mulf %91, %95 : vector<4x8xf32>
    %97 = vector.extract_strided_slice %96 {offsets = [0, 0], sizes = [2, 8], strides = [1, 1]} : vector<4x8xf32> to vector<2x8xf32>
    %98 = vector.extract_strided_slice %96 {offsets = [2, 0], sizes = [2, 8], strides = [1, 1]} : vector<4x8xf32> to vector<2x8xf32>
    %c176 = arith.constant 176 : index
    %c0_49 = arith.constant 0 : index
    %99 = vector.load %arg3[%c176, %c0_49] : memref<232x224xf32, #tpu.memory_space<vmem>>, vector<8x64xf32>
    %cst_50 = arith.constant dense<0.000000e+00> : vector<2x64xf32>
    %100 = tpu.matmul %98, %99, %cst_50 {dimension_numbers = #tpu.dot_dimension_numbers<[1], [0], [0], [1], [0, 0, 1, 1], [], []>} : vector<2x8xf32>, vector<8x64xf32>, vector<2x64xf32> -> vector<2x64xf32>
    %101 = vector.extract_strided_slice %61 {offsets = [0, 32], sizes = [2, 64], strides = [1, 1]} : vector<2x160xf32> to vector<2x64xf32>
    %102 = vector.extract_strided_slice %65 {offsets = [0, 32], sizes = [2, 64], strides = [1, 1]} : vector<2x224xf32> to vector<2x64xf32>
    %103 = arith.addf %101, %102 : vector<2x64xf32>
    %104 = arith.addf %103, %100 : vector<2x64xf32>
    %cst_51 = arith.constant 0.000000e+00 : f32
    %105 = vector.broadcast %cst_51 : f32 to vector<2x64xf32>
    %106 = arith.cmpf oge, %104, %105 : vector<2x64xf32>
    %cst_52 = arith.constant 2.000000e-01 : f32
    %107 = vector.broadcast %cst_52 : f32 to vector<2x64xf32>
    %108 = arith.mulf %107, %104 : vector<2x64xf32>
    %109 = arith.select %106, %104, %108 : vector<2x64xi1>, vector<2x64xf32>
    %c112 = arith.constant 112 : index
    %c0_53 = arith.constant 0 : index
    %110 = vector.load %arg3[%c112, %c0_53] : memref<232x224xf32, #tpu.memory_space<vmem>>, vector<64x16xf32>
    %cst_54 = arith.constant dense<0.000000e+00> : vector<2x16xf32>
    %111 = tpu.matmul %109, %110, %cst_54 {dimension_numbers = #tpu.dot_dimension_numbers<[1], [0], [0], [1], [0, 0, 1, 1], [], []>} : vector<2x64xf32>, vector<64x16xf32>, vector<2x16xf32> -> vector<2x16xf32>
    %112 = vector.broadcast %57 : vector<1x16xf32> to vector<2x16xf32>
    %113 = arith.addf %111, %112 : vector<2x16xf32>
    %cst_55 = arith.constant 0.000000e+00 : f32
    %114 = vector.broadcast %cst_55 : f32 to vector<2x16xf32>
    %115 = arith.cmpf oge, %113, %114 : vector<2x16xf32>
    %cst_56 = arith.constant 2.000000e-01 : f32
    %116 = vector.broadcast %cst_56 : f32 to vector<2x16xf32>
    %117 = arith.mulf %116, %113 : vector<2x16xf32>
    %118 = arith.select %115, %113, %117 : vector<2x16xi1>, vector<2x16xf32>
    %119 = vector.extract_strided_slice %118 {offsets = [0, 0], sizes = [2, 8], strides = [1, 1]} : vector<2x16xf32> to vector<2x8xf32>
    %120 = vector.extract_strided_slice %118 {offsets = [0, 8], sizes = [2, 8], strides = [1, 1]} : vector<2x16xf32> to vector<2x8xf32>
    %cst_57 = arith.constant 5.000000e-01 : f32
    %121 = vector.broadcast %cst_57 : f32 to vector<2x8xf32>
    %122 = arith.mulf %121, %120 : vector<2x8xf32>
    %123 = math.exp %122 : vector<2x8xf32>
    %124 = arith.mulf %63, %123 : vector<2x8xf32>
    %125 = arith.addf %119, %124 : vector<2x8xf32>
    %126 = vector.extract_strided_slice %61 {offsets = [0, 96], sizes = [2, 64], strides = [1, 1]} : vector<2x160xf32> to vector<2x64xf32>
    %c184 = arith.constant 184 : index
    %c0_58 = arith.constant 0 : index
    %127 = vector.load %arg3[%c184, %c0_58] : memref<232x224xf32, #tpu.memory_space<vmem>>, vector<8x64xf32>
    %cst_59 = arith.constant dense<0.000000e+00> : vector<2x64xf32>
    %128 = tpu.matmul %125, %127, %cst_59 {dimension_numbers = #tpu.dot_dimension_numbers<[1], [0], [0], [1], [0, 0, 1, 1], [], []>} : vector<2x8xf32>, vector<8x64xf32>, vector<2x64xf32> -> vector<2x64xf32>
    %129 = arith.addf %126, %128 : vector<2x64xf32>
    %cst_60 = arith.constant 0.000000e+00 : f32
    %130 = vector.broadcast %cst_60 : f32 to vector<2x64xf32>
    %131 = arith.cmpf oge, %129, %130 : vector<2x64xf32>
    %cst_61 = arith.constant 2.000000e-01 : f32
    %132 = vector.broadcast %cst_61 : f32 to vector<2x64xf32>
    %133 = arith.mulf %132, %129 : vector<2x64xf32>
    %134 = arith.select %131, %129, %133 : vector<2x64xi1>, vector<2x64xf32>
    %c48_62 = arith.constant 48 : index
    %c0_63 = arith.constant 0 : index
    %135 = vector.load %arg3[%c48_62, %c0_63] : memref<232x224xf32, #tpu.memory_space<vmem>>, vector<64x128xf32>
    %cst_64 = arith.constant dense<0.000000e+00> : vector<2x128xf32>
    %136 = tpu.matmul %134, %135, %cst_64 {dimension_numbers = #tpu.dot_dimension_numbers<[1], [0], [0], [1], [0, 0, 1, 1], [], []>} : vector<2x64xf32>, vector<64x128xf32>, vector<2x128xf32> -> vector<2x128xf32>
    %137 = vector.extract_strided_slice %65 {offsets = [0, 96], sizes = [2, 128], strides = [1, 1]} : vector<2x224xf32> to vector<2x128xf32>
    %138 = arith.addf %136, %137 : vector<2x128xf32>
    %139 = vector.broadcast %58 : vector<1x128xf32> to vector<2x128xf32>
    %140 = arith.addf %138, %139 : vector<2x128xf32>
    %141 = arith.negf %140 : vector<2x128xf32>
    %142 = math.exp %141 : vector<2x128xf32>
    %cst_65 = arith.constant 1.000000e+00 : f32
    %143 = vector.broadcast %cst_65 : f32 to vector<2x128xf32>
    %144 = arith.addf %143, %142 : vector<2x128xf32>
    %145 = arith.divf %143, %144 : vector<2x128xf32>
    %146 = math.tanh %140 : vector<2x128xf32>
    %147 = vector.extract_strided_slice %145 {offsets = [0, 32], sizes = [2, 32], strides = [1, 1]} : vector<2x128xf32> to vector<2x32xf32>
    %148 = arith.mulf %147, %60 : vector<2x32xf32>
    %149 = vector.extract_strided_slice %145 {offsets = [0, 0], sizes = [2, 32], strides = [1, 1]} : vector<2x128xf32> to vector<2x32xf32>
    %150 = vector.extract_strided_slice %146 {offsets = [0, 64], sizes = [2, 32], strides = [1, 1]} : vector<2x128xf32> to vector<2x32xf32>
    %151 = arith.mulf %149, %150 : vector<2x32xf32>
    %152 = arith.addf %148, %151 : vector<2x32xf32>
    %153 = vector.extract_strided_slice %145 {offsets = [0, 96], sizes = [2, 32], strides = [1, 1]} : vector<2x128xf32> to vector<2x32xf32>
    %154 = math.tanh %152 : vector<2x32xf32>
    %155 = arith.mulf %153, %154 : vector<2x32xf32>
    %156 = vector.extract_strided_slice %55 {offsets = [2, 0], sizes = [2, 160], strides = [1, 1]} : vector<16x160xf32> to vector<2x160xf32>
    %c2 = arith.constant 2 : index
    %c0_66 = arith.constant 0 : index
    %157 = vector.load %arg1[%c2, %c0_66] : memref<16x16xf32, #tpu.memory_space<vmem>>, vector<2x8xf32>
    %c2_67 = arith.constant 2 : index
    %c8_68 = arith.constant 8 : index
    %158 = vector.load %arg1[%c2_67, %c8_68] : memref<16x16xf32, #tpu.memory_space<vmem>>, vector<2x8xf32>
    %c0_69 = arith.constant 0 : index
    %c0_70 = arith.constant 0 : index
    %159 = vector.load %arg3[%c0_69, %c0_70] : memref<232x224xf32, #tpu.memory_space<vmem>>, vector<32x224xf32>
    %cst_71 = arith.constant dense<0.000000e+00> : vector<2x224xf32>
    %160 = tpu.matmul %155, %159, %cst_71 {dimension_numbers = #tpu.dot_dimension_numbers<[1], [0], [0], [1], [0, 0, 1, 1], [], []>} : vector<2x32xf32>, vector<32x224xf32>, vector<2x224xf32> -> vector<2x224xf32>
    %161 = vector.extract_strided_slice %156 {offsets = [0, 0], sizes = [2, 32], strides = [1, 1]} : vector<2x160xf32> to vector<2x32xf32>
    %162 = vector.extract_strided_slice %160 {offsets = [0, 0], sizes = [2, 32], strides = [1, 1]} : vector<2x224xf32> to vector<2x32xf32>
    %163 = arith.addf %161, %162 : vector<2x32xf32>
    %cst_72 = arith.constant 0.000000e+00 : f32
    %164 = vector.broadcast %cst_72 : f32 to vector<2x32xf32>
    %165 = arith.cmpf oge, %163, %164 : vector<2x32xf32>
    %cst_73 = arith.constant 2.000000e-01 : f32
    %166 = vector.broadcast %cst_73 : f32 to vector<2x32xf32>
    %167 = arith.mulf %166, %163 : vector<2x32xf32>
    %168 = arith.select %165, %163, %167 : vector<2x32xi1>, vector<2x32xf32>
    %c192_74 = arith.constant 192 : index
    %c0_75 = arith.constant 0 : index
    %169 = vector.load %arg3[%c192_74, %c0_75] : memref<232x224xf32, #tpu.memory_space<vmem>>, vector<32x8xf32>
    %cst_76 = arith.constant dense<0.000000e+00> : vector<2x8xf32>
    %170 = tpu.matmul %168, %169, %cst_76 {dimension_numbers = #tpu.dot_dimension_numbers<[1], [0], [0], [1], [0, 0, 1, 1], [], []>} : vector<2x32xf32>, vector<32x8xf32>, vector<2x8xf32> -> vector<2x8xf32>
    %171 = vector.broadcast %56 : vector<1x8xf32> to vector<2x8xf32>
    %172 = arith.addf %170, %171 : vector<2x8xf32>
    %cst_77 = arith.constant 0.000000e+00 : f32
    %173 = vector.broadcast %cst_77 : f32 to vector<2x8xf32>
    %174 = arith.cmpf oge, %172, %173 : vector<2x8xf32>
    %cst_78 = arith.constant 2.000000e-01 : f32
    %175 = vector.broadcast %cst_78 : f32 to vector<2x8xf32>
    %176 = arith.mulf %175, %172 : vector<2x8xf32>
    %177 = arith.select %174, %172, %176 : vector<2x8xi1>, vector<2x8xf32>
    %178 = arith.addf %177, %157 : vector<2x8xf32>
    %cst_79 = arith.constant 2.000000e+00 : f32
    %179 = vector.broadcast %cst_79 : f32 to vector<2x8xf32>
    %180 = arith.mulf %178, %179 : vector<2x8xf32>
    %181 = tpu.concatenate %177, %180 in 0 : vector<2x8xf32>, vector<2x8xf32> -> vector<4x8xf32>
    %cst_80 = arith.constant dense<0xFF800000> : vector<4xf32>
    %182 = vector.multi_reduction <maximumf>, %181, %cst_80 [1] : vector<4x8xf32> to vector<4xf32>
    %183 = vector.shape_cast %182 : vector<4xf32> to vector<4x1xf32>
    %184 = vector.broadcast %183 : vector<4x1xf32> to vector<4x8xf32>
    %185 = arith.subf %181, %184 : vector<4x8xf32>
    %186 = math.exp %185 : vector<4x8xf32>
    %cst_81 = arith.constant dense<0.000000e+00> : vector<4xf32>
    %187 = vector.multi_reduction <add>, %186, %cst_81 [1] : vector<4x8xf32> to vector<4xf32>
    %188 = vector.shape_cast %187 : vector<4xf32> to vector<4x1xf32>
    %189 = tpu.reciprocal %188 {approx = true} : vector<4x1xf32> -> vector<4x1xf32>
    %190 = vector.broadcast %189 : vector<4x1xf32> to vector<4x8xf32>
    %191 = arith.mulf %186, %190 : vector<4x8xf32>
    %192 = vector.extract_strided_slice %191 {offsets = [0, 0], sizes = [2, 8], strides = [1, 1]} : vector<4x8xf32> to vector<2x8xf32>
    %193 = vector.extract_strided_slice %191 {offsets = [2, 0], sizes = [2, 8], strides = [1, 1]} : vector<4x8xf32> to vector<2x8xf32>
    %c176_82 = arith.constant 176 : index
    %c0_83 = arith.constant 0 : index
    %194 = vector.load %arg3[%c176_82, %c0_83] : memref<232x224xf32, #tpu.memory_space<vmem>>, vector<8x64xf32>
    %cst_84 = arith.constant dense<0.000000e+00> : vector<2x64xf32>
    %195 = tpu.matmul %193, %194, %cst_84 {dimension_numbers = #tpu.dot_dimension_numbers<[1], [0], [0], [1], [0, 0, 1, 1], [], []>} : vector<2x8xf32>, vector<8x64xf32>, vector<2x64xf32> -> vector<2x64xf32>
    %196 = vector.extract_strided_slice %156 {offsets = [0, 32], sizes = [2, 64], strides = [1, 1]} : vector<2x160xf32> to vector<2x64xf32>
    %197 = vector.extract_strided_slice %160 {offsets = [0, 32], sizes = [2, 64], strides = [1, 1]} : vector<2x224xf32> to vector<2x64xf32>
    %198 = arith.addf %196, %197 : vector<2x64xf32>
    %199 = arith.addf %198, %195 : vector<2x64xf32>
    %cst_85 = arith.constant 0.000000e+00 : f32
    %200 = vector.broadcast %cst_85 : f32 to vector<2x64xf32>
    %201 = arith.cmpf oge, %199, %200 : vector<2x64xf32>
    %cst_86 = arith.constant 2.000000e-01 : f32
    %202 = vector.broadcast %cst_86 : f32 to vector<2x64xf32>
    %203 = arith.mulf %202, %199 : vector<2x64xf32>
    %204 = arith.select %201, %199, %203 : vector<2x64xi1>, vector<2x64xf32>
    %c112_87 = arith.constant 112 : index
    %c0_88 = arith.constant 0 : index
    %205 = vector.load %arg3[%c112_87, %c0_88] : memref<232x224xf32, #tpu.memory_space<vmem>>, vector<64x16xf32>
    %cst_89 = arith.constant dense<0.000000e+00> : vector<2x16xf32>
    %206 = tpu.matmul %204, %205, %cst_89 {dimension_numbers = #tpu.dot_dimension_numbers<[1], [0], [0], [1], [0, 0, 1, 1], [], []>} : vector<2x64xf32>, vector<64x16xf32>, vector<2x16xf32> -> vector<2x16xf32>
    %207 = vector.broadcast %57 : vector<1x16xf32> to vector<2x16xf32>
    %208 = arith.addf %206, %207 : vector<2x16xf32>
    %cst_90 = arith.constant 0.000000e+00 : f32
    %209 = vector.broadcast %cst_90 : f32 to vector<2x16xf32>
    %210 = arith.cmpf oge, %208, %209 : vector<2x16xf32>
    %cst_91 = arith.constant 2.000000e-01 : f32
    %211 = vector.broadcast %cst_91 : f32 to vector<2x16xf32>
    %212 = arith.mulf %211, %208 : vector<2x16xf32>
    %213 = arith.select %210, %208, %212 : vector<2x16xi1>, vector<2x16xf32>
    %214 = vector.extract_strided_slice %213 {offsets = [0, 0], sizes = [2, 8], strides = [1, 1]} : vector<2x16xf32> to vector<2x8xf32>
    %215 = vector.extract_strided_slice %213 {offsets = [0, 8], sizes = [2, 8], strides = [1, 1]} : vector<2x16xf32> to vector<2x8xf32>
    %cst_92 = arith.constant 5.000000e-01 : f32
    %216 = vector.broadcast %cst_92 : f32 to vector<2x8xf32>
    %217 = arith.mulf %216, %215 : vector<2x8xf32>
    %218 = math.exp %217 : vector<2x8xf32>
    %219 = arith.mulf %158, %218 : vector<2x8xf32>
    %220 = arith.addf %214, %219 : vector<2x8xf32>
    %221 = vector.extract_strided_slice %156 {offsets = [0, 96], sizes = [2, 64], strides = [1, 1]} : vector<2x160xf32> to vector<2x64xf32>
    %c184_93 = arith.constant 184 : index
    %c0_94 = arith.constant 0 : index
    %222 = vector.load %arg3[%c184_93, %c0_94] : memref<232x224xf32, #tpu.memory_space<vmem>>, vector<8x64xf32>
    %cst_95 = arith.constant dense<0.000000e+00> : vector<2x64xf32>
    %223 = tpu.matmul %220, %222, %cst_95 {dimension_numbers = #tpu.dot_dimension_numbers<[1], [0], [0], [1], [0, 0, 1, 1], [], []>} : vector<2x8xf32>, vector<8x64xf32>, vector<2x64xf32> -> vector<2x64xf32>
    %224 = arith.addf %221, %223 : vector<2x64xf32>
    %cst_96 = arith.constant 0.000000e+00 : f32
    %225 = vector.broadcast %cst_96 : f32 to vector<2x64xf32>
    %226 = arith.cmpf oge, %224, %225 : vector<2x64xf32>
    %cst_97 = arith.constant 2.000000e-01 : f32
    %227 = vector.broadcast %cst_97 : f32 to vector<2x64xf32>
    %228 = arith.mulf %227, %224 : vector<2x64xf32>
    %229 = arith.select %226, %224, %228 : vector<2x64xi1>, vector<2x64xf32>
    %c48_98 = arith.constant 48 : index
    %c0_99 = arith.constant 0 : index
    %230 = vector.load %arg3[%c48_98, %c0_99] : memref<232x224xf32, #tpu.memory_space<vmem>>, vector<64x128xf32>
    %cst_100 = arith.constant dense<0.000000e+00> : vector<2x128xf32>
    %231 = tpu.matmul %229, %230, %cst_100 {dimension_numbers = #tpu.dot_dimension_numbers<[1], [0], [0], [1], [0, 0, 1, 1], [], []>} : vector<2x64xf32>, vector<64x128xf32>, vector<2x128xf32> -> vector<2x128xf32>
    %232 = vector.extract_strided_slice %160 {offsets = [0, 96], sizes = [2, 128], strides = [1, 1]} : vector<2x224xf32> to vector<2x128xf32>
    %233 = arith.addf %231, %232 : vector<2x128xf32>
    %234 = vector.broadcast %58 : vector<1x128xf32> to vector<2x128xf32>
    %235 = arith.addf %233, %234 : vector<2x128xf32>
    %236 = arith.negf %235 : vector<2x128xf32>
    %237 = math.exp %236 : vector<2x128xf32>
    %cst_101 = arith.constant 1.000000e+00 : f32
    %238 = vector.broadcast %cst_101 : f32 to vector<2x128xf32>
    %239 = arith.addf %238, %237 : vector<2x128xf32>
    %240 = arith.divf %238, %239 : vector<2x128xf32>
    %241 = math.tanh %235 : vector<2x128xf32>
    %242 = vector.extract_strided_slice %240 {offsets = [0, 32], sizes = [2, 32], strides = [1, 1]} : vector<2x128xf32> to vector<2x32xf32>
    %243 = arith.mulf %242, %152 : vector<2x32xf32>
    %244 = vector.extract_strided_slice %240 {offsets = [0, 0], sizes = [2, 32], strides = [1, 1]} : vector<2x128xf32> to vector<2x32xf32>
    %245 = vector.extract_strided_slice %241 {offsets = [0, 64], sizes = [2, 32], strides = [1, 1]} : vector<2x128xf32> to vector<2x32xf32>
    %246 = arith.mulf %244, %245 : vector<2x32xf32>
    %247 = arith.addf %243, %246 : vector<2x32xf32>
    %248 = vector.extract_strided_slice %240 {offsets = [0, 96], sizes = [2, 32], strides = [1, 1]} : vector<2x128xf32> to vector<2x32xf32>
    %249 = math.tanh %247 : vector<2x32xf32>
    %250 = arith.mulf %248, %249 : vector<2x32xf32>
    %251 = vector.extract_strided_slice %55 {offsets = [4, 0], sizes = [2, 160], strides = [1, 1]} : vector<16x160xf32> to vector<2x160xf32>
    %c4 = arith.constant 4 : index
    %c0_102 = arith.constant 0 : index
    %252 = vector.load %arg1[%c4, %c0_102] : memref<16x16xf32, #tpu.memory_space<vmem>>, vector<2x8xf32>
    %c4_103 = arith.constant 4 : index
    %c8_104 = arith.constant 8 : index
    %253 = vector.load %arg1[%c4_103, %c8_104] : memref<16x16xf32, #tpu.memory_space<vmem>>, vector<2x8xf32>
    %c0_105 = arith.constant 0 : index
    %c0_106 = arith.constant 0 : index
    %254 = vector.load %arg3[%c0_105, %c0_106] : memref<232x224xf32, #tpu.memory_space<vmem>>, vector<32x224xf32>
    %cst_107 = arith.constant dense<0.000000e+00> : vector<2x224xf32>
    %255 = tpu.matmul %250, %254, %cst_107 {dimension_numbers = #tpu.dot_dimension_numbers<[1], [0], [0], [1], [0, 0, 1, 1], [], []>} : vector<2x32xf32>, vector<32x224xf32>, vector<2x224xf32> -> vector<2x224xf32>
    %256 = vector.extract_strided_slice %251 {offsets = [0, 0], sizes = [2, 32], strides = [1, 1]} : vector<2x160xf32> to vector<2x32xf32>
    %257 = vector.extract_strided_slice %255 {offsets = [0, 0], sizes = [2, 32], strides = [1, 1]} : vector<2x224xf32> to vector<2x32xf32>
    %258 = arith.addf %256, %257 : vector<2x32xf32>
    %cst_108 = arith.constant 0.000000e+00 : f32
    %259 = vector.broadcast %cst_108 : f32 to vector<2x32xf32>
    %260 = arith.cmpf oge, %258, %259 : vector<2x32xf32>
    %cst_109 = arith.constant 2.000000e-01 : f32
    %261 = vector.broadcast %cst_109 : f32 to vector<2x32xf32>
    %262 = arith.mulf %261, %258 : vector<2x32xf32>
    %263 = arith.select %260, %258, %262 : vector<2x32xi1>, vector<2x32xf32>
    %c192_110 = arith.constant 192 : index
    %c0_111 = arith.constant 0 : index
    %264 = vector.load %arg3[%c192_110, %c0_111] : memref<232x224xf32, #tpu.memory_space<vmem>>, vector<32x8xf32>
    %cst_112 = arith.constant dense<0.000000e+00> : vector<2x8xf32>
    %265 = tpu.matmul %263, %264, %cst_112 {dimension_numbers = #tpu.dot_dimension_numbers<[1], [0], [0], [1], [0, 0, 1, 1], [], []>} : vector<2x32xf32>, vector<32x8xf32>, vector<2x8xf32> -> vector<2x8xf32>
    %266 = vector.broadcast %56 : vector<1x8xf32> to vector<2x8xf32>
    %267 = arith.addf %265, %266 : vector<2x8xf32>
    %cst_113 = arith.constant 0.000000e+00 : f32
    %268 = vector.broadcast %cst_113 : f32 to vector<2x8xf32>
    %269 = arith.cmpf oge, %267, %268 : vector<2x8xf32>
    %cst_114 = arith.constant 2.000000e-01 : f32
    %270 = vector.broadcast %cst_114 : f32 to vector<2x8xf32>
    %271 = arith.mulf %270, %267 : vector<2x8xf32>
    %272 = arith.select %269, %267, %271 : vector<2x8xi1>, vector<2x8xf32>
    %273 = arith.addf %272, %252 : vector<2x8xf32>
    %cst_115 = arith.constant 2.000000e+00 : f32
    %274 = vector.broadcast %cst_115 : f32 to vector<2x8xf32>
    %275 = arith.mulf %273, %274 : vector<2x8xf32>
    %276 = tpu.concatenate %272, %275 in 0 : vector<2x8xf32>, vector<2x8xf32> -> vector<4x8xf32>
    %cst_116 = arith.constant dense<0xFF800000> : vector<4xf32>
    %277 = vector.multi_reduction <maximumf>, %276, %cst_116 [1] : vector<4x8xf32> to vector<4xf32>
    %278 = vector.shape_cast %277 : vector<4xf32> to vector<4x1xf32>
    %279 = vector.broadcast %278 : vector<4x1xf32> to vector<4x8xf32>
    %280 = arith.subf %276, %279 : vector<4x8xf32>
    %281 = math.exp %280 : vector<4x8xf32>
    %cst_117 = arith.constant dense<0.000000e+00> : vector<4xf32>
    %282 = vector.multi_reduction <add>, %281, %cst_117 [1] : vector<4x8xf32> to vector<4xf32>
    %283 = vector.shape_cast %282 : vector<4xf32> to vector<4x1xf32>
    %284 = tpu.reciprocal %283 {approx = true} : vector<4x1xf32> -> vector<4x1xf32>
    %285 = vector.broadcast %284 : vector<4x1xf32> to vector<4x8xf32>
    %286 = arith.mulf %281, %285 : vector<4x8xf32>
    %287 = vector.extract_strided_slice %286 {offsets = [0, 0], sizes = [2, 8], strides = [1, 1]} : vector<4x8xf32> to vector<2x8xf32>
    %288 = vector.extract_strided_slice %286 {offsets = [2, 0], sizes = [2, 8], strides = [1, 1]} : vector<4x8xf32> to vector<2x8xf32>
    %c176_118 = arith.constant 176 : index
    %c0_119 = arith.constant 0 : index
    %289 = vector.load %arg3[%c176_118, %c0_119] : memref<232x224xf32, #tpu.memory_space<vmem>>, vector<8x64xf32>
    %cst_120 = arith.constant dense<0.000000e+00> : vector<2x64xf32>
    %290 = tpu.matmul %288, %289, %cst_120 {dimension_numbers = #tpu.dot_dimension_numbers<[1], [0], [0], [1], [0, 0, 1, 1], [], []>} : vector<2x8xf32>, vector<8x64xf32>, vector<2x64xf32> -> vector<2x64xf32>
    %291 = vector.extract_strided_slice %251 {offsets = [0, 32], sizes = [2, 64], strides = [1, 1]} : vector<2x160xf32> to vector<2x64xf32>
    %292 = vector.extract_strided_slice %255 {offsets = [0, 32], sizes = [2, 64], strides = [1, 1]} : vector<2x224xf32> to vector<2x64xf32>
    %293 = arith.addf %291, %292 : vector<2x64xf32>
    %294 = arith.addf %293, %290 : vector<2x64xf32>
    %cst_121 = arith.constant 0.000000e+00 : f32
    %295 = vector.broadcast %cst_121 : f32 to vector<2x64xf32>
    %296 = arith.cmpf oge, %294, %295 : vector<2x64xf32>
    %cst_122 = arith.constant 2.000000e-01 : f32
    %297 = vector.broadcast %cst_122 : f32 to vector<2x64xf32>
    %298 = arith.mulf %297, %294 : vector<2x64xf32>
    %299 = arith.select %296, %294, %298 : vector<2x64xi1>, vector<2x64xf32>
    %c112_123 = arith.constant 112 : index
    %c0_124 = arith.constant 0 : index
    %300 = vector.load %arg3[%c112_123, %c0_124] : memref<232x224xf32, #tpu.memory_space<vmem>>, vector<64x16xf32>
    %cst_125 = arith.constant dense<0.000000e+00> : vector<2x16xf32>
    %301 = tpu.matmul %299, %300, %cst_125 {dimension_numbers = #tpu.dot_dimension_numbers<[1], [0], [0], [1], [0, 0, 1, 1], [], []>} : vector<2x64xf32>, vector<64x16xf32>, vector<2x16xf32> -> vector<2x16xf32>
    %302 = vector.broadcast %57 : vector<1x16xf32> to vector<2x16xf32>
    %303 = arith.addf %301, %302 : vector<2x16xf32>
    %cst_126 = arith.constant 0.000000e+00 : f32
    %304 = vector.broadcast %cst_126 : f32 to vector<2x16xf32>
    %305 = arith.cmpf oge, %303, %304 : vector<2x16xf32>
    %cst_127 = arith.constant 2.000000e-01 : f32
    %306 = vector.broadcast %cst_127 : f32 to vector<2x16xf32>
    %307 = arith.mulf %306, %303 : vector<2x16xf32>
    %308 = arith.select %305, %303, %307 : vector<2x16xi1>, vector<2x16xf32>
    %309 = vector.extract_strided_slice %308 {offsets = [0, 0], sizes = [2, 8], strides = [1, 1]} : vector<2x16xf32> to vector<2x8xf32>
    %310 = vector.extract_strided_slice %308 {offsets = [0, 8], sizes = [2, 8], strides = [1, 1]} : vector<2x16xf32> to vector<2x8xf32>
    %cst_128 = arith.constant 5.000000e-01 : f32
    %311 = vector.broadcast %cst_128 : f32 to vector<2x8xf32>
    %312 = arith.mulf %311, %310 : vector<2x8xf32>
    %313 = math.exp %312 : vector<2x8xf32>
    %314 = arith.mulf %253, %313 : vector<2x8xf32>
    %315 = arith.addf %309, %314 : vector<2x8xf32>
    %316 = vector.extract_strided_slice %251 {offsets = [0, 96], sizes = [2, 64], strides = [1, 1]} : vector<2x160xf32> to vector<2x64xf32>
    %c184_129 = arith.constant 184 : index
    %c0_130 = arith.constant 0 : index
    %317 = vector.load %arg3[%c184_129, %c0_130] : memref<232x224xf32, #tpu.memory_space<vmem>>, vector<8x64xf32>
    %cst_131 = arith.constant dense<0.000000e+00> : vector<2x64xf32>
    %318 = tpu.matmul %315, %317, %cst_131 {dimension_numbers = #tpu.dot_dimension_numbers<[1], [0], [0], [1], [0, 0, 1, 1], [], []>} : vector<2x8xf32>, vector<8x64xf32>, vector<2x64xf32> -> vector<2x64xf32>
    %319 = arith.addf %316, %318 : vector<2x64xf32>
    %cst_132 = arith.constant 0.000000e+00 : f32
    %320 = vector.broadcast %cst_132 : f32 to vector<2x64xf32>
    %321 = arith.cmpf oge, %319, %320 : vector<2x64xf32>
    %cst_133 = arith.constant 2.000000e-01 : f32
    %322 = vector.broadcast %cst_133 : f32 to vector<2x64xf32>
    %323 = arith.mulf %322, %319 : vector<2x64xf32>
    %324 = arith.select %321, %319, %323 : vector<2x64xi1>, vector<2x64xf32>
    %c48_134 = arith.constant 48 : index
    %c0_135 = arith.constant 0 : index
    %325 = vector.load %arg3[%c48_134, %c0_135] : memref<232x224xf32, #tpu.memory_space<vmem>>, vector<64x128xf32>
    %cst_136 = arith.constant dense<0.000000e+00> : vector<2x128xf32>
    %326 = tpu.matmul %324, %325, %cst_136 {dimension_numbers = #tpu.dot_dimension_numbers<[1], [0], [0], [1], [0, 0, 1, 1], [], []>} : vector<2x64xf32>, vector<64x128xf32>, vector<2x128xf32> -> vector<2x128xf32>
    %327 = vector.extract_strided_slice %255 {offsets = [0, 96], sizes = [2, 128], strides = [1, 1]} : vector<2x224xf32> to vector<2x128xf32>
    %328 = arith.addf %326, %327 : vector<2x128xf32>
    %329 = vector.broadcast %58 : vector<1x128xf32> to vector<2x128xf32>
    %330 = arith.addf %328, %329 : vector<2x128xf32>
    %331 = arith.negf %330 : vector<2x128xf32>
    %332 = math.exp %331 : vector<2x128xf32>
    %cst_137 = arith.constant 1.000000e+00 : f32
    %333 = vector.broadcast %cst_137 : f32 to vector<2x128xf32>
    %334 = arith.addf %333, %332 : vector<2x128xf32>
    %335 = arith.divf %333, %334 : vector<2x128xf32>
    %336 = math.tanh %330 : vector<2x128xf32>
    %337 = vector.extract_strided_slice %335 {offsets = [0, 32], sizes = [2, 32], strides = [1, 1]} : vector<2x128xf32> to vector<2x32xf32>
    %338 = arith.mulf %337, %247 : vector<2x32xf32>
    %339 = vector.extract_strided_slice %335 {offsets = [0, 0], sizes = [2, 32], strides = [1, 1]} : vector<2x128xf32> to vector<2x32xf32>
    %340 = vector.extract_strided_slice %336 {offsets = [0, 64], sizes = [2, 32], strides = [1, 1]} : vector<2x128xf32> to vector<2x32xf32>
    %341 = arith.mulf %339, %340 : vector<2x32xf32>
    %342 = arith.addf %338, %341 : vector<2x32xf32>
    %343 = vector.extract_strided_slice %335 {offsets = [0, 96], sizes = [2, 32], strides = [1, 1]} : vector<2x128xf32> to vector<2x32xf32>
    %344 = math.tanh %342 : vector<2x32xf32>
    %345 = arith.mulf %343, %344 : vector<2x32xf32>
    %346 = vector.extract_strided_slice %55 {offsets = [6, 0], sizes = [2, 160], strides = [1, 1]} : vector<16x160xf32> to vector<2x160xf32>
    %c6 = arith.constant 6 : index
    %c0_138 = arith.constant 0 : index
    %347 = vector.load %arg1[%c6, %c0_138] : memref<16x16xf32, #tpu.memory_space<vmem>>, vector<2x8xf32>
    %c6_139 = arith.constant 6 : index
    %c8_140 = arith.constant 8 : index
    %348 = vector.load %arg1[%c6_139, %c8_140] : memref<16x16xf32, #tpu.memory_space<vmem>>, vector<2x8xf32>
    %c0_141 = arith.constant 0 : index
    %c0_142 = arith.constant 0 : index
    %349 = vector.load %arg3[%c0_141, %c0_142] : memref<232x224xf32, #tpu.memory_space<vmem>>, vector<32x224xf32>
    %cst_143 = arith.constant dense<0.000000e+00> : vector<2x224xf32>
    %350 = tpu.matmul %345, %349, %cst_143 {dimension_numbers = #tpu.dot_dimension_numbers<[1], [0], [0], [1], [0, 0, 1, 1], [], []>} : vector<2x32xf32>, vector<32x224xf32>, vector<2x224xf32> -> vector<2x224xf32>
    %351 = vector.extract_strided_slice %346 {offsets = [0, 0], sizes = [2, 32], strides = [1, 1]} : vector<2x160xf32> to vector<2x32xf32>
    %352 = vector.extract_strided_slice %350 {offsets = [0, 0], sizes = [2, 32], strides = [1, 1]} : vector<2x224xf32> to vector<2x32xf32>
    %353 = arith.addf %351, %352 : vector<2x32xf32>
    %cst_144 = arith.constant 0.000000e+00 : f32
    %354 = vector.broadcast %cst_144 : f32 to vector<2x32xf32>
    %355 = arith.cmpf oge, %353, %354 : vector<2x32xf32>
    %cst_145 = arith.constant 2.000000e-01 : f32
    %356 = vector.broadcast %cst_145 : f32 to vector<2x32xf32>
    %357 = arith.mulf %356, %353 : vector<2x32xf32>
    %358 = arith.select %355, %353, %357 : vector<2x32xi1>, vector<2x32xf32>
    %c192_146 = arith.constant 192 : index
    %c0_147 = arith.constant 0 : index
    %359 = vector.load %arg3[%c192_146, %c0_147] : memref<232x224xf32, #tpu.memory_space<vmem>>, vector<32x8xf32>
    %cst_148 = arith.constant dense<0.000000e+00> : vector<2x8xf32>
    %360 = tpu.matmul %358, %359, %cst_148 {dimension_numbers = #tpu.dot_dimension_numbers<[1], [0], [0], [1], [0, 0, 1, 1], [], []>} : vector<2x32xf32>, vector<32x8xf32>, vector<2x8xf32> -> vector<2x8xf32>
    %361 = vector.broadcast %56 : vector<1x8xf32> to vector<2x8xf32>
    %362 = arith.addf %360, %361 : vector<2x8xf32>
    %cst_149 = arith.constant 0.000000e+00 : f32
    %363 = vector.broadcast %cst_149 : f32 to vector<2x8xf32>
    %364 = arith.cmpf oge, %362, %363 : vector<2x8xf32>
    %cst_150 = arith.constant 2.000000e-01 : f32
    %365 = vector.broadcast %cst_150 : f32 to vector<2x8xf32>
    %366 = arith.mulf %365, %362 : vector<2x8xf32>
    %367 = arith.select %364, %362, %366 : vector<2x8xi1>, vector<2x8xf32>
    %368 = arith.addf %367, %347 : vector<2x8xf32>
    %cst_151 = arith.constant 2.000000e+00 : f32
    %369 = vector.broadcast %cst_151 : f32 to vector<2x8xf32>
    %370 = arith.mulf %368, %369 : vector<2x8xf32>
    %371 = tpu.concatenate %367, %370 in 0 : vector<2x8xf32>, vector<2x8xf32> -> vector<4x8xf32>
    %cst_152 = arith.constant dense<0xFF800000> : vector<4xf32>
    %372 = vector.multi_reduction <maximumf>, %371, %cst_152 [1] : vector<4x8xf32> to vector<4xf32>
    %373 = vector.shape_cast %372 : vector<4xf32> to vector<4x1xf32>
    %374 = vector.broadcast %373 : vector<4x1xf32> to vector<4x8xf32>
    %375 = arith.subf %371, %374 : vector<4x8xf32>
    %376 = math.exp %375 : vector<4x8xf32>
    %cst_153 = arith.constant dense<0.000000e+00> : vector<4xf32>
    %377 = vector.multi_reduction <add>, %376, %cst_153 [1] : vector<4x8xf32> to vector<4xf32>
    %378 = vector.shape_cast %377 : vector<4xf32> to vector<4x1xf32>
    %379 = tpu.reciprocal %378 {approx = true} : vector<4x1xf32> -> vector<4x1xf32>
    %380 = vector.broadcast %379 : vector<4x1xf32> to vector<4x8xf32>
    %381 = arith.mulf %376, %380 : vector<4x8xf32>
    %382 = vector.extract_strided_slice %381 {offsets = [0, 0], sizes = [2, 8], strides = [1, 1]} : vector<4x8xf32> to vector<2x8xf32>
    %383 = vector.extract_strided_slice %381 {offsets = [2, 0], sizes = [2, 8], strides = [1, 1]} : vector<4x8xf32> to vector<2x8xf32>
    %c176_154 = arith.constant 176 : index
    %c0_155 = arith.constant 0 : index
    %384 = vector.load %arg3[%c176_154, %c0_155] : memref<232x224xf32, #tpu.memory_space<vmem>>, vector<8x64xf32>
    %cst_156 = arith.constant dense<0.000000e+00> : vector<2x64xf32>
    %385 = tpu.matmul %383, %384, %cst_156 {dimension_numbers = #tpu.dot_dimension_numbers<[1], [0], [0], [1], [0, 0, 1, 1], [], []>} : vector<2x8xf32>, vector<8x64xf32>, vector<2x64xf32> -> vector<2x64xf32>
    %386 = vector.extract_strided_slice %346 {offsets = [0, 32], sizes = [2, 64], strides = [1, 1]} : vector<2x160xf32> to vector<2x64xf32>
    %387 = vector.extract_strided_slice %350 {offsets = [0, 32], sizes = [2, 64], strides = [1, 1]} : vector<2x224xf32> to vector<2x64xf32>
    %388 = arith.addf %386, %387 : vector<2x64xf32>
    %389 = arith.addf %388, %385 : vector<2x64xf32>
    %cst_157 = arith.constant 0.000000e+00 : f32
    %390 = vector.broadcast %cst_157 : f32 to vector<2x64xf32>
    %391 = arith.cmpf oge, %389, %390 : vector<2x64xf32>
    %cst_158 = arith.constant 2.000000e-01 : f32
    %392 = vector.broadcast %cst_158 : f32 to vector<2x64xf32>
    %393 = arith.mulf %392, %389 : vector<2x64xf32>
    %394 = arith.select %391, %389, %393 : vector<2x64xi1>, vector<2x64xf32>
    %c112_159 = arith.constant 112 : index
    %c0_160 = arith.constant 0 : index
    %395 = vector.load %arg3[%c112_159, %c0_160] : memref<232x224xf32, #tpu.memory_space<vmem>>, vector<64x16xf32>
    %cst_161 = arith.constant dense<0.000000e+00> : vector<2x16xf32>
    %396 = tpu.matmul %394, %395, %cst_161 {dimension_numbers = #tpu.dot_dimension_numbers<[1], [0], [0], [1], [0, 0, 1, 1], [], []>} : vector<2x64xf32>, vector<64x16xf32>, vector<2x16xf32> -> vector<2x16xf32>
    %397 = vector.broadcast %57 : vector<1x16xf32> to vector<2x16xf32>
    %398 = arith.addf %396, %397 : vector<2x16xf32>
    %cst_162 = arith.constant 0.000000e+00 : f32
    %399 = vector.broadcast %cst_162 : f32 to vector<2x16xf32>
    %400 = arith.cmpf oge, %398, %399 : vector<2x16xf32>
    %cst_163 = arith.constant 2.000000e-01 : f32
    %401 = vector.broadcast %cst_163 : f32 to vector<2x16xf32>
    %402 = arith.mulf %401, %398 : vector<2x16xf32>
    %403 = arith.select %400, %398, %402 : vector<2x16xi1>, vector<2x16xf32>
    %404 = vector.extract_strided_slice %403 {offsets = [0, 0], sizes = [2, 8], strides = [1, 1]} : vector<2x16xf32> to vector<2x8xf32>
    %405 = vector.extract_strided_slice %403 {offsets = [0, 8], sizes = [2, 8], strides = [1, 1]} : vector<2x16xf32> to vector<2x8xf32>
    %cst_164 = arith.constant 5.000000e-01 : f32
    %406 = vector.broadcast %cst_164 : f32 to vector<2x8xf32>
    %407 = arith.mulf %406, %405 : vector<2x8xf32>
    %408 = math.exp %407 : vector<2x8xf32>
    %409 = arith.mulf %348, %408 : vector<2x8xf32>
    %410 = arith.addf %404, %409 : vector<2x8xf32>
    %411 = vector.extract_strided_slice %346 {offsets = [0, 96], sizes = [2, 64], strides = [1, 1]} : vector<2x160xf32> to vector<2x64xf32>
    %c184_165 = arith.constant 184 : index
    %c0_166 = arith.constant 0 : index
    %412 = vector.load %arg3[%c184_165, %c0_166] : memref<232x224xf32, #tpu.memory_space<vmem>>, vector<8x64xf32>
    %cst_167 = arith.constant dense<0.000000e+00> : vector<2x64xf32>
    %413 = tpu.matmul %410, %412, %cst_167 {dimension_numbers = #tpu.dot_dimension_numbers<[1], [0], [0], [1], [0, 0, 1, 1], [], []>} : vector<2x8xf32>, vector<8x64xf32>, vector<2x64xf32> -> vector<2x64xf32>
    %414 = arith.addf %411, %413 : vector<2x64xf32>
    %cst_168 = arith.constant 0.000000e+00 : f32
    %415 = vector.broadcast %cst_168 : f32 to vector<2x64xf32>
    %416 = arith.cmpf oge, %414, %415 : vector<2x64xf32>
    %cst_169 = arith.constant 2.000000e-01 : f32
    %417 = vector.broadcast %cst_169 : f32 to vector<2x64xf32>
    %418 = arith.mulf %417, %414 : vector<2x64xf32>
    %419 = arith.select %416, %414, %418 : vector<2x64xi1>, vector<2x64xf32>
    %c48_170 = arith.constant 48 : index
    %c0_171 = arith.constant 0 : index
    %420 = vector.load %arg3[%c48_170, %c0_171] : memref<232x224xf32, #tpu.memory_space<vmem>>, vector<64x128xf32>
    %cst_172 = arith.constant dense<0.000000e+00> : vector<2x128xf32>
    %421 = tpu.matmul %419, %420, %cst_172 {dimension_numbers = #tpu.dot_dimension_numbers<[1], [0], [0], [1], [0, 0, 1, 1], [], []>} : vector<2x64xf32>, vector<64x128xf32>, vector<2x128xf32> -> vector<2x128xf32>
    %422 = vector.extract_strided_slice %350 {offsets = [0, 96], sizes = [2, 128], strides = [1, 1]} : vector<2x224xf32> to vector<2x128xf32>
    %423 = arith.addf %421, %422 : vector<2x128xf32>
    %424 = vector.broadcast %58 : vector<1x128xf32> to vector<2x128xf32>
    %425 = arith.addf %423, %424 : vector<2x128xf32>
    %426 = arith.negf %425 : vector<2x128xf32>
    %427 = math.exp %426 : vector<2x128xf32>
    %cst_173 = arith.constant 1.000000e+00 : f32
    %428 = vector.broadcast %cst_173 : f32 to vector<2x128xf32>
    %429 = arith.addf %428, %427 : vector<2x128xf32>
    %430 = arith.divf %428, %429 : vector<2x128xf32>
    %431 = math.tanh %425 : vector<2x128xf32>
    %432 = vector.extract_strided_slice %430 {offsets = [0, 32], sizes = [2, 32], strides = [1, 1]} : vector<2x128xf32> to vector<2x32xf32>
    %433 = arith.mulf %432, %342 : vector<2x32xf32>
    %434 = vector.extract_strided_slice %430 {offsets = [0, 0], sizes = [2, 32], strides = [1, 1]} : vector<2x128xf32> to vector<2x32xf32>
    %435 = vector.extract_strided_slice %431 {offsets = [0, 64], sizes = [2, 32], strides = [1, 1]} : vector<2x128xf32> to vector<2x32xf32>
    %436 = arith.mulf %434, %435 : vector<2x32xf32>
    %437 = arith.addf %433, %436 : vector<2x32xf32>
    %438 = vector.extract_strided_slice %430 {offsets = [0, 96], sizes = [2, 32], strides = [1, 1]} : vector<2x128xf32> to vector<2x32xf32>
    %439 = math.tanh %437 : vector<2x32xf32>
    %440 = arith.mulf %438, %439 : vector<2x32xf32>
    %441 = vector.extract_strided_slice %55 {offsets = [8, 0], sizes = [2, 160], strides = [1, 1]} : vector<16x160xf32> to vector<2x160xf32>
    %c8_174 = arith.constant 8 : index
    %c0_175 = arith.constant 0 : index
    %442 = vector.load %arg1[%c8_174, %c0_175] : memref<16x16xf32, #tpu.memory_space<vmem>>, vector<2x8xf32>
    %c8_176 = arith.constant 8 : index
    %c8_177 = arith.constant 8 : index
    %443 = vector.load %arg1[%c8_176, %c8_177] : memref<16x16xf32, #tpu.memory_space<vmem>>, vector<2x8xf32>
    %c0_178 = arith.constant 0 : index
    %c0_179 = arith.constant 0 : index
    %444 = vector.load %arg3[%c0_178, %c0_179] : memref<232x224xf32, #tpu.memory_space<vmem>>, vector<32x224xf32>
    %cst_180 = arith.constant dense<0.000000e+00> : vector<2x224xf32>
    %445 = tpu.matmul %440, %444, %cst_180 {dimension_numbers = #tpu.dot_dimension_numbers<[1], [0], [0], [1], [0, 0, 1, 1], [], []>} : vector<2x32xf32>, vector<32x224xf32>, vector<2x224xf32> -> vector<2x224xf32>
    %446 = vector.extract_strided_slice %441 {offsets = [0, 0], sizes = [2, 32], strides = [1, 1]} : vector<2x160xf32> to vector<2x32xf32>
    %447 = vector.extract_strided_slice %445 {offsets = [0, 0], sizes = [2, 32], strides = [1, 1]} : vector<2x224xf32> to vector<2x32xf32>
    %448 = arith.addf %446, %447 : vector<2x32xf32>
    %cst_181 = arith.constant 0.000000e+00 : f32
    %449 = vector.broadcast %cst_181 : f32 to vector<2x32xf32>
    %450 = arith.cmpf oge, %448, %449 : vector<2x32xf32>
    %cst_182 = arith.constant 2.000000e-01 : f32
    %451 = vector.broadcast %cst_182 : f32 to vector<2x32xf32>
    %452 = arith.mulf %451, %448 : vector<2x32xf32>
    %453 = arith.select %450, %448, %452 : vector<2x32xi1>, vector<2x32xf32>
    %c192_183 = arith.constant 192 : index
    %c0_184 = arith.constant 0 : index
    %454 = vector.load %arg3[%c192_183, %c0_184] : memref<232x224xf32, #tpu.memory_space<vmem>>, vector<32x8xf32>
    %cst_185 = arith.constant dense<0.000000e+00> : vector<2x8xf32>
    %455 = tpu.matmul %453, %454, %cst_185 {dimension_numbers = #tpu.dot_dimension_numbers<[1], [0], [0], [1], [0, 0, 1, 1], [], []>} : vector<2x32xf32>, vector<32x8xf32>, vector<2x8xf32> -> vector<2x8xf32>
    %456 = vector.broadcast %56 : vector<1x8xf32> to vector<2x8xf32>
    %457 = arith.addf %455, %456 : vector<2x8xf32>
    %cst_186 = arith.constant 0.000000e+00 : f32
    %458 = vector.broadcast %cst_186 : f32 to vector<2x8xf32>
    %459 = arith.cmpf oge, %457, %458 : vector<2x8xf32>
    %cst_187 = arith.constant 2.000000e-01 : f32
    %460 = vector.broadcast %cst_187 : f32 to vector<2x8xf32>
    %461 = arith.mulf %460, %457 : vector<2x8xf32>
    %462 = arith.select %459, %457, %461 : vector<2x8xi1>, vector<2x8xf32>
    %463 = arith.addf %462, %442 : vector<2x8xf32>
    %cst_188 = arith.constant 2.000000e+00 : f32
    %464 = vector.broadcast %cst_188 : f32 to vector<2x8xf32>
    %465 = arith.mulf %463, %464 : vector<2x8xf32>
    %466 = tpu.concatenate %462, %465 in 0 : vector<2x8xf32>, vector<2x8xf32> -> vector<4x8xf32>
    %cst_189 = arith.constant dense<0xFF800000> : vector<4xf32>
    %467 = vector.multi_reduction <maximumf>, %466, %cst_189 [1] : vector<4x8xf32> to vector<4xf32>
    %468 = vector.shape_cast %467 : vector<4xf32> to vector<4x1xf32>
    %469 = vector.broadcast %468 : vector<4x1xf32> to vector<4x8xf32>
    %470 = arith.subf %466, %469 : vector<4x8xf32>
    %471 = math.exp %470 : vector<4x8xf32>
    %cst_190 = arith.constant dense<0.000000e+00> : vector<4xf32>
    %472 = vector.multi_reduction <add>, %471, %cst_190 [1] : vector<4x8xf32> to vector<4xf32>
    %473 = vector.shape_cast %472 : vector<4xf32> to vector<4x1xf32>
    %474 = tpu.reciprocal %473 {approx = true} : vector<4x1xf32> -> vector<4x1xf32>
    %475 = vector.broadcast %474 : vector<4x1xf32> to vector<4x8xf32>
    %476 = arith.mulf %471, %475 : vector<4x8xf32>
    %477 = vector.extract_strided_slice %476 {offsets = [0, 0], sizes = [2, 8], strides = [1, 1]} : vector<4x8xf32> to vector<2x8xf32>
    %478 = vector.extract_strided_slice %476 {offsets = [2, 0], sizes = [2, 8], strides = [1, 1]} : vector<4x8xf32> to vector<2x8xf32>
    %c176_191 = arith.constant 176 : index
    %c0_192 = arith.constant 0 : index
    %479 = vector.load %arg3[%c176_191, %c0_192] : memref<232x224xf32, #tpu.memory_space<vmem>>, vector<8x64xf32>
    %cst_193 = arith.constant dense<0.000000e+00> : vector<2x64xf32>
    %480 = tpu.matmul %478, %479, %cst_193 {dimension_numbers = #tpu.dot_dimension_numbers<[1], [0], [0], [1], [0, 0, 1, 1], [], []>} : vector<2x8xf32>, vector<8x64xf32>, vector<2x64xf32> -> vector<2x64xf32>
    %481 = vector.extract_strided_slice %441 {offsets = [0, 32], sizes = [2, 64], strides = [1, 1]} : vector<2x160xf32> to vector<2x64xf32>
    %482 = vector.extract_strided_slice %445 {offsets = [0, 32], sizes = [2, 64], strides = [1, 1]} : vector<2x224xf32> to vector<2x64xf32>
    %483 = arith.addf %481, %482 : vector<2x64xf32>
    %484 = arith.addf %483, %480 : vector<2x64xf32>
    %cst_194 = arith.constant 0.000000e+00 : f32
    %485 = vector.broadcast %cst_194 : f32 to vector<2x64xf32>
    %486 = arith.cmpf oge, %484, %485 : vector<2x64xf32>
    %cst_195 = arith.constant 2.000000e-01 : f32
    %487 = vector.broadcast %cst_195 : f32 to vector<2x64xf32>
    %488 = arith.mulf %487, %484 : vector<2x64xf32>
    %489 = arith.select %486, %484, %488 : vector<2x64xi1>, vector<2x64xf32>
    %c112_196 = arith.constant 112 : index
    %c0_197 = arith.constant 0 : index
    %490 = vector.load %arg3[%c112_196, %c0_197] : memref<232x224xf32, #tpu.memory_space<vmem>>, vector<64x16xf32>
    %cst_198 = arith.constant dense<0.000000e+00> : vector<2x16xf32>
    %491 = tpu.matmul %489, %490, %cst_198 {dimension_numbers = #tpu.dot_dimension_numbers<[1], [0], [0], [1], [0, 0, 1, 1], [], []>} : vector<2x64xf32>, vector<64x16xf32>, vector<2x16xf32> -> vector<2x16xf32>
    %492 = vector.broadcast %57 : vector<1x16xf32> to vector<2x16xf32>
    %493 = arith.addf %491, %492 : vector<2x16xf32>
    %cst_199 = arith.constant 0.000000e+00 : f32
    %494 = vector.broadcast %cst_199 : f32 to vector<2x16xf32>
    %495 = arith.cmpf oge, %493, %494 : vector<2x16xf32>
    %cst_200 = arith.constant 2.000000e-01 : f32
    %496 = vector.broadcast %cst_200 : f32 to vector<2x16xf32>
    %497 = arith.mulf %496, %493 : vector<2x16xf32>
    %498 = arith.select %495, %493, %497 : vector<2x16xi1>, vector<2x16xf32>
    %499 = vector.extract_strided_slice %498 {offsets = [0, 0], sizes = [2, 8], strides = [1, 1]} : vector<2x16xf32> to vector<2x8xf32>
    %500 = vector.extract_strided_slice %498 {offsets = [0, 8], sizes = [2, 8], strides = [1, 1]} : vector<2x16xf32> to vector<2x8xf32>
    %cst_201 = arith.constant 5.000000e-01 : f32
    %501 = vector.broadcast %cst_201 : f32 to vector<2x8xf32>
    %502 = arith.mulf %501, %500 : vector<2x8xf32>
    %503 = math.exp %502 : vector<2x8xf32>
    %504 = arith.mulf %443, %503 : vector<2x8xf32>
    %505 = arith.addf %499, %504 : vector<2x8xf32>
    %506 = vector.extract_strided_slice %441 {offsets = [0, 96], sizes = [2, 64], strides = [1, 1]} : vector<2x160xf32> to vector<2x64xf32>
    %c184_202 = arith.constant 184 : index
    %c0_203 = arith.constant 0 : index
    %507 = vector.load %arg3[%c184_202, %c0_203] : memref<232x224xf32, #tpu.memory_space<vmem>>, vector<8x64xf32>
    %cst_204 = arith.constant dense<0.000000e+00> : vector<2x64xf32>
    %508 = tpu.matmul %505, %507, %cst_204 {dimension_numbers = #tpu.dot_dimension_numbers<[1], [0], [0], [1], [0, 0, 1, 1], [], []>} : vector<2x8xf32>, vector<8x64xf32>, vector<2x64xf32> -> vector<2x64xf32>
    %509 = arith.addf %506, %508 : vector<2x64xf32>
    %cst_205 = arith.constant 0.000000e+00 : f32
    %510 = vector.broadcast %cst_205 : f32 to vector<2x64xf32>
    %511 = arith.cmpf oge, %509, %510 : vector<2x64xf32>
    %cst_206 = arith.constant 2.000000e-01 : f32
    %512 = vector.broadcast %cst_206 : f32 to vector<2x64xf32>
    %513 = arith.mulf %512, %509 : vector<2x64xf32>
    %514 = arith.select %511, %509, %513 : vector<2x64xi1>, vector<2x64xf32>
    %c48_207 = arith.constant 48 : index
    %c0_208 = arith.constant 0 : index
    %515 = vector.load %arg3[%c48_207, %c0_208] : memref<232x224xf32, #tpu.memory_space<vmem>>, vector<64x128xf32>
    %cst_209 = arith.constant dense<0.000000e+00> : vector<2x128xf32>
    %516 = tpu.matmul %514, %515, %cst_209 {dimension_numbers = #tpu.dot_dimension_numbers<[1], [0], [0], [1], [0, 0, 1, 1], [], []>} : vector<2x64xf32>, vector<64x128xf32>, vector<2x128xf32> -> vector<2x128xf32>
    %517 = vector.extract_strided_slice %445 {offsets = [0, 96], sizes = [2, 128], strides = [1, 1]} : vector<2x224xf32> to vector<2x128xf32>
    %518 = arith.addf %516, %517 : vector<2x128xf32>
    %519 = vector.broadcast %58 : vector<1x128xf32> to vector<2x128xf32>
    %520 = arith.addf %518, %519 : vector<2x128xf32>
    %521 = arith.negf %520 : vector<2x128xf32>
    %522 = math.exp %521 : vector<2x128xf32>
    %cst_210 = arith.constant 1.000000e+00 : f32
    %523 = vector.broadcast %cst_210 : f32 to vector<2x128xf32>
    %524 = arith.addf %523, %522 : vector<2x128xf32>
    %525 = arith.divf %523, %524 : vector<2x128xf32>
    %526 = math.tanh %520 : vector<2x128xf32>
    %527 = vector.extract_strided_slice %525 {offsets = [0, 32], sizes = [2, 32], strides = [1, 1]} : vector<2x128xf32> to vector<2x32xf32>
    %528 = arith.mulf %527, %437 : vector<2x32xf32>
    %529 = vector.extract_strided_slice %525 {offsets = [0, 0], sizes = [2, 32], strides = [1, 1]} : vector<2x128xf32> to vector<2x32xf32>
    %530 = vector.extract_strided_slice %526 {offsets = [0, 64], sizes = [2, 32], strides = [1, 1]} : vector<2x128xf32> to vector<2x32xf32>
    %531 = arith.mulf %529, %530 : vector<2x32xf32>
    %532 = arith.addf %528, %531 : vector<2x32xf32>
    %533 = vector.extract_strided_slice %525 {offsets = [0, 96], sizes = [2, 32], strides = [1, 1]} : vector<2x128xf32> to vector<2x32xf32>
    %534 = math.tanh %532 : vector<2x32xf32>
    %535 = arith.mulf %533, %534 : vector<2x32xf32>
    %536 = vector.extract_strided_slice %55 {offsets = [10, 0], sizes = [2, 160], strides = [1, 1]} : vector<16x160xf32> to vector<2x160xf32>
    %c10 = arith.constant 10 : index
    %c0_211 = arith.constant 0 : index
    %537 = vector.load %arg1[%c10, %c0_211] : memref<16x16xf32, #tpu.memory_space<vmem>>, vector<2x8xf32>
    %c10_212 = arith.constant 10 : index
    %c8_213 = arith.constant 8 : index
    %538 = vector.load %arg1[%c10_212, %c8_213] : memref<16x16xf32, #tpu.memory_space<vmem>>, vector<2x8xf32>
    %c0_214 = arith.constant 0 : index
    %c0_215 = arith.constant 0 : index
    %539 = vector.load %arg3[%c0_214, %c0_215] : memref<232x224xf32, #tpu.memory_space<vmem>>, vector<32x224xf32>
    %cst_216 = arith.constant dense<0.000000e+00> : vector<2x224xf32>
    %540 = tpu.matmul %535, %539, %cst_216 {dimension_numbers = #tpu.dot_dimension_numbers<[1], [0], [0], [1], [0, 0, 1, 1], [], []>} : vector<2x32xf32>, vector<32x224xf32>, vector<2x224xf32> -> vector<2x224xf32>
    %541 = vector.extract_strided_slice %536 {offsets = [0, 0], sizes = [2, 32], strides = [1, 1]} : vector<2x160xf32> to vector<2x32xf32>
    %542 = vector.extract_strided_slice %540 {offsets = [0, 0], sizes = [2, 32], strides = [1, 1]} : vector<2x224xf32> to vector<2x32xf32>
    %543 = arith.addf %541, %542 : vector<2x32xf32>
    %cst_217 = arith.constant 0.000000e+00 : f32
    %544 = vector.broadcast %cst_217 : f32 to vector<2x32xf32>
    %545 = arith.cmpf oge, %543, %544 : vector<2x32xf32>
    %cst_218 = arith.constant 2.000000e-01 : f32
    %546 = vector.broadcast %cst_218 : f32 to vector<2x32xf32>
    %547 = arith.mulf %546, %543 : vector<2x32xf32>
    %548 = arith.select %545, %543, %547 : vector<2x32xi1>, vector<2x32xf32>
    %c192_219 = arith.constant 192 : index
    %c0_220 = arith.constant 0 : index
    %549 = vector.load %arg3[%c192_219, %c0_220] : memref<232x224xf32, #tpu.memory_space<vmem>>, vector<32x8xf32>
    %cst_221 = arith.constant dense<0.000000e+00> : vector<2x8xf32>
    %550 = tpu.matmul %548, %549, %cst_221 {dimension_numbers = #tpu.dot_dimension_numbers<[1], [0], [0], [1], [0, 0, 1, 1], [], []>} : vector<2x32xf32>, vector<32x8xf32>, vector<2x8xf32> -> vector<2x8xf32>
    %551 = vector.broadcast %56 : vector<1x8xf32> to vector<2x8xf32>
    %552 = arith.addf %550, %551 : vector<2x8xf32>
    %cst_222 = arith.constant 0.000000e+00 : f32
    %553 = vector.broadcast %cst_222 : f32 to vector<2x8xf32>
    %554 = arith.cmpf oge, %552, %553 : vector<2x8xf32>
    %cst_223 = arith.constant 2.000000e-01 : f32
    %555 = vector.broadcast %cst_223 : f32 to vector<2x8xf32>
    %556 = arith.mulf %555, %552 : vector<2x8xf32>
    %557 = arith.select %554, %552, %556 : vector<2x8xi1>, vector<2x8xf32>
    %558 = arith.addf %557, %537 : vector<2x8xf32>
    %cst_224 = arith.constant 2.000000e+00 : f32
    %559 = vector.broadcast %cst_224 : f32 to vector<2x8xf32>
    %560 = arith.mulf %558, %559 : vector<2x8xf32>
    %561 = tpu.concatenate %557, %560 in 0 : vector<2x8xf32>, vector<2x8xf32> -> vector<4x8xf32>
    %cst_225 = arith.constant dense<0xFF800000> : vector<4xf32>
    %562 = vector.multi_reduction <maximumf>, %561, %cst_225 [1] : vector<4x8xf32> to vector<4xf32>
    %563 = vector.shape_cast %562 : vector<4xf32> to vector<4x1xf32>
    %564 = vector.broadcast %563 : vector<4x1xf32> to vector<4x8xf32>
    %565 = arith.subf %561, %564 : vector<4x8xf32>
    %566 = math.exp %565 : vector<4x8xf32>
    %cst_226 = arith.constant dense<0.000000e+00> : vector<4xf32>
    %567 = vector.multi_reduction <add>, %566, %cst_226 [1] : vector<4x8xf32> to vector<4xf32>
    %568 = vector.shape_cast %567 : vector<4xf32> to vector<4x1xf32>
    %569 = tpu.reciprocal %568 {approx = true} : vector<4x1xf32> -> vector<4x1xf32>
    %570 = vector.broadcast %569 : vector<4x1xf32> to vector<4x8xf32>
    %571 = arith.mulf %566, %570 : vector<4x8xf32>
    %572 = vector.extract_strided_slice %571 {offsets = [0, 0], sizes = [2, 8], strides = [1, 1]} : vector<4x8xf32> to vector<2x8xf32>
    %573 = vector.extract_strided_slice %571 {offsets = [2, 0], sizes = [2, 8], strides = [1, 1]} : vector<4x8xf32> to vector<2x8xf32>
    %c176_227 = arith.constant 176 : index
    %c0_228 = arith.constant 0 : index
    %574 = vector.load %arg3[%c176_227, %c0_228] : memref<232x224xf32, #tpu.memory_space<vmem>>, vector<8x64xf32>
    %cst_229 = arith.constant dense<0.000000e+00> : vector<2x64xf32>
    %575 = tpu.matmul %573, %574, %cst_229 {dimension_numbers = #tpu.dot_dimension_numbers<[1], [0], [0], [1], [0, 0, 1, 1], [], []>} : vector<2x8xf32>, vector<8x64xf32>, vector<2x64xf32> -> vector<2x64xf32>
    %576 = vector.extract_strided_slice %536 {offsets = [0, 32], sizes = [2, 64], strides = [1, 1]} : vector<2x160xf32> to vector<2x64xf32>
    %577 = vector.extract_strided_slice %540 {offsets = [0, 32], sizes = [2, 64], strides = [1, 1]} : vector<2x224xf32> to vector<2x64xf32>
    %578 = arith.addf %576, %577 : vector<2x64xf32>
    %579 = arith.addf %578, %575 : vector<2x64xf32>
    %cst_230 = arith.constant 0.000000e+00 : f32
    %580 = vector.broadcast %cst_230 : f32 to vector<2x64xf32>
    %581 = arith.cmpf oge, %579, %580 : vector<2x64xf32>
    %cst_231 = arith.constant 2.000000e-01 : f32
    %582 = vector.broadcast %cst_231 : f32 to vector<2x64xf32>
    %583 = arith.mulf %582, %579 : vector<2x64xf32>
    %584 = arith.select %581, %579, %583 : vector<2x64xi1>, vector<2x64xf32>
    %c112_232 = arith.constant 112 : index
    %c0_233 = arith.constant 0 : index
    %585 = vector.load %arg3[%c112_232, %c0_233] : memref<232x224xf32, #tpu.memory_space<vmem>>, vector<64x16xf32>
    %cst_234 = arith.constant dense<0.000000e+00> : vector<2x16xf32>
    %586 = tpu.matmul %584, %585, %cst_234 {dimension_numbers = #tpu.dot_dimension_numbers<[1], [0], [0], [1], [0, 0, 1, 1], [], []>} : vector<2x64xf32>, vector<64x16xf32>, vector<2x16xf32> -> vector<2x16xf32>
    %587 = vector.broadcast %57 : vector<1x16xf32> to vector<2x16xf32>
    %588 = arith.addf %586, %587 : vector<2x16xf32>
    %cst_235 = arith.constant 0.000000e+00 : f32
    %589 = vector.broadcast %cst_235 : f32 to vector<2x16xf32>
    %590 = arith.cmpf oge, %588, %589 : vector<2x16xf32>
    %cst_236 = arith.constant 2.000000e-01 : f32
    %591 = vector.broadcast %cst_236 : f32 to vector<2x16xf32>
    %592 = arith.mulf %591, %588 : vector<2x16xf32>
    %593 = arith.select %590, %588, %592 : vector<2x16xi1>, vector<2x16xf32>
    %594 = vector.extract_strided_slice %593 {offsets = [0, 0], sizes = [2, 8], strides = [1, 1]} : vector<2x16xf32> to vector<2x8xf32>
    %595 = vector.extract_strided_slice %593 {offsets = [0, 8], sizes = [2, 8], strides = [1, 1]} : vector<2x16xf32> to vector<2x8xf32>
    %cst_237 = arith.constant 5.000000e-01 : f32
    %596 = vector.broadcast %cst_237 : f32 to vector<2x8xf32>
    %597 = arith.mulf %596, %595 : vector<2x8xf32>
    %598 = math.exp %597 : vector<2x8xf32>
    %599 = arith.mulf %538, %598 : vector<2x8xf32>
    %600 = arith.addf %594, %599 : vector<2x8xf32>
    %601 = vector.extract_strided_slice %536 {offsets = [0, 96], sizes = [2, 64], strides = [1, 1]} : vector<2x160xf32> to vector<2x64xf32>
    %c184_238 = arith.constant 184 : index
    %c0_239 = arith.constant 0 : index
    %602 = vector.load %arg3[%c184_238, %c0_239] : memref<232x224xf32, #tpu.memory_space<vmem>>, vector<8x64xf32>
    %cst_240 = arith.constant dense<0.000000e+00> : vector<2x64xf32>
    %603 = tpu.matmul %600, %602, %cst_240 {dimension_numbers = #tpu.dot_dimension_numbers<[1], [0], [0], [1], [0, 0, 1, 1], [], []>} : vector<2x8xf32>, vector<8x64xf32>, vector<2x64xf32> -> vector<2x64xf32>
    %604 = arith.addf %601, %603 : vector<2x64xf32>
    %cst_241 = arith.constant 0.000000e+00 : f32
    %605 = vector.broadcast %cst_241 : f32 to vector<2x64xf32>
    %606 = arith.cmpf oge, %604, %605 : vector<2x64xf32>
    %cst_242 = arith.constant 2.000000e-01 : f32
    %607 = vector.broadcast %cst_242 : f32 to vector<2x64xf32>
    %608 = arith.mulf %607, %604 : vector<2x64xf32>
    %609 = arith.select %606, %604, %608 : vector<2x64xi1>, vector<2x64xf32>
    %c48_243 = arith.constant 48 : index
    %c0_244 = arith.constant 0 : index
    %610 = vector.load %arg3[%c48_243, %c0_244] : memref<232x224xf32, #tpu.memory_space<vmem>>, vector<64x128xf32>
    %cst_245 = arith.constant dense<0.000000e+00> : vector<2x128xf32>
    %611 = tpu.matmul %609, %610, %cst_245 {dimension_numbers = #tpu.dot_dimension_numbers<[1], [0], [0], [1], [0, 0, 1, 1], [], []>} : vector<2x64xf32>, vector<64x128xf32>, vector<2x128xf32> -> vector<2x128xf32>
    %612 = vector.extract_strided_slice %540 {offsets = [0, 96], sizes = [2, 128], strides = [1, 1]} : vector<2x224xf32> to vector<2x128xf32>
    %613 = arith.addf %611, %612 : vector<2x128xf32>
    %614 = vector.broadcast %58 : vector<1x128xf32> to vector<2x128xf32>
    %615 = arith.addf %613, %614 : vector<2x128xf32>
    %616 = arith.negf %615 : vector<2x128xf32>
    %617 = math.exp %616 : vector<2x128xf32>
    %cst_246 = arith.constant 1.000000e+00 : f32
    %618 = vector.broadcast %cst_246 : f32 to vector<2x128xf32>
    %619 = arith.addf %618, %617 : vector<2x128xf32>
    %620 = arith.divf %618, %619 : vector<2x128xf32>
    %621 = math.tanh %615 : vector<2x128xf32>
    %622 = vector.extract_strided_slice %620 {offsets = [0, 32], sizes = [2, 32], strides = [1, 1]} : vector<2x128xf32> to vector<2x32xf32>
    %623 = arith.mulf %622, %532 : vector<2x32xf32>
    %624 = vector.extract_strided_slice %620 {offsets = [0, 0], sizes = [2, 32], strides = [1, 1]} : vector<2x128xf32> to vector<2x32xf32>
    %625 = vector.extract_strided_slice %621 {offsets = [0, 64], sizes = [2, 32], strides = [1, 1]} : vector<2x128xf32> to vector<2x32xf32>
    %626 = arith.mulf %624, %625 : vector<2x32xf32>
    %627 = arith.addf %623, %626 : vector<2x32xf32>
    %628 = vector.extract_strided_slice %620 {offsets = [0, 96], sizes = [2, 32], strides = [1, 1]} : vector<2x128xf32> to vector<2x32xf32>
    %629 = math.tanh %627 : vector<2x32xf32>
    %630 = arith.mulf %628, %629 : vector<2x32xf32>
    %631 = vector.extract_strided_slice %55 {offsets = [12, 0], sizes = [2, 160], strides = [1, 1]} : vector<16x160xf32> to vector<2x160xf32>
    %c12 = arith.constant 12 : index
    %c0_247 = arith.constant 0 : index
    %632 = vector.load %arg1[%c12, %c0_247] : memref<16x16xf32, #tpu.memory_space<vmem>>, vector<2x8xf32>
    %c12_248 = arith.constant 12 : index
    %c8_249 = arith.constant 8 : index
    %633 = vector.load %arg1[%c12_248, %c8_249] : memref<16x16xf32, #tpu.memory_space<vmem>>, vector<2x8xf32>
    %c0_250 = arith.constant 0 : index
    %c0_251 = arith.constant 0 : index
    %634 = vector.load %arg3[%c0_250, %c0_251] : memref<232x224xf32, #tpu.memory_space<vmem>>, vector<32x224xf32>
    %cst_252 = arith.constant dense<0.000000e+00> : vector<2x224xf32>
    %635 = tpu.matmul %630, %634, %cst_252 {dimension_numbers = #tpu.dot_dimension_numbers<[1], [0], [0], [1], [0, 0, 1, 1], [], []>} : vector<2x32xf32>, vector<32x224xf32>, vector<2x224xf32> -> vector<2x224xf32>
    %636 = vector.extract_strided_slice %631 {offsets = [0, 0], sizes = [2, 32], strides = [1, 1]} : vector<2x160xf32> to vector<2x32xf32>
    %637 = vector.extract_strided_slice %635 {offsets = [0, 0], sizes = [2, 32], strides = [1, 1]} : vector<2x224xf32> to vector<2x32xf32>
    %638 = arith.addf %636, %637 : vector<2x32xf32>
    %cst_253 = arith.constant 0.000000e+00 : f32
    %639 = vector.broadcast %cst_253 : f32 to vector<2x32xf32>
    %640 = arith.cmpf oge, %638, %639 : vector<2x32xf32>
    %cst_254 = arith.constant 2.000000e-01 : f32
    %641 = vector.broadcast %cst_254 : f32 to vector<2x32xf32>
    %642 = arith.mulf %641, %638 : vector<2x32xf32>
    %643 = arith.select %640, %638, %642 : vector<2x32xi1>, vector<2x32xf32>
    %c192_255 = arith.constant 192 : index
    %c0_256 = arith.constant 0 : index
    %644 = vector.load %arg3[%c192_255, %c0_256] : memref<232x224xf32, #tpu.memory_space<vmem>>, vector<32x8xf32>
    %cst_257 = arith.constant dense<0.000000e+00> : vector<2x8xf32>
    %645 = tpu.matmul %643, %644, %cst_257 {dimension_numbers = #tpu.dot_dimension_numbers<[1], [0], [0], [1], [0, 0, 1, 1], [], []>} : vector<2x32xf32>, vector<32x8xf32>, vector<2x8xf32> -> vector<2x8xf32>
    %646 = vector.broadcast %56 : vector<1x8xf32> to vector<2x8xf32>
    %647 = arith.addf %645, %646 : vector<2x8xf32>
    %cst_258 = arith.constant 0.000000e+00 : f32
    %648 = vector.broadcast %cst_258 : f32 to vector<2x8xf32>
    %649 = arith.cmpf oge, %647, %648 : vector<2x8xf32>
    %cst_259 = arith.constant 2.000000e-01 : f32
    %650 = vector.broadcast %cst_259 : f32 to vector<2x8xf32>
    %651 = arith.mulf %650, %647 : vector<2x8xf32>
    %652 = arith.select %649, %647, %651 : vector<2x8xi1>, vector<2x8xf32>
    %653 = arith.addf %652, %632 : vector<2x8xf32>
    %cst_260 = arith.constant 2.000000e+00 : f32
    %654 = vector.broadcast %cst_260 : f32 to vector<2x8xf32>
    %655 = arith.mulf %653, %654 : vector<2x8xf32>
    %656 = tpu.concatenate %652, %655 in 0 : vector<2x8xf32>, vector<2x8xf32> -> vector<4x8xf32>
    %cst_261 = arith.constant dense<0xFF800000> : vector<4xf32>
    %657 = vector.multi_reduction <maximumf>, %656, %cst_261 [1] : vector<4x8xf32> to vector<4xf32>
    %658 = vector.shape_cast %657 : vector<4xf32> to vector<4x1xf32>
    %659 = vector.broadcast %658 : vector<4x1xf32> to vector<4x8xf32>
    %660 = arith.subf %656, %659 : vector<4x8xf32>
    %661 = math.exp %660 : vector<4x8xf32>
    %cst_262 = arith.constant dense<0.000000e+00> : vector<4xf32>
    %662 = vector.multi_reduction <add>, %661, %cst_262 [1] : vector<4x8xf32> to vector<4xf32>
    %663 = vector.shape_cast %662 : vector<4xf32> to vector<4x1xf32>
    %664 = tpu.reciprocal %663 {approx = true} : vector<4x1xf32> -> vector<4x1xf32>
    %665 = vector.broadcast %664 : vector<4x1xf32> to vector<4x8xf32>
    %666 = arith.mulf %661, %665 : vector<4x8xf32>
    %667 = vector.extract_strided_slice %666 {offsets = [0, 0], sizes = [2, 8], strides = [1, 1]} : vector<4x8xf32> to vector<2x8xf32>
    %668 = vector.extract_strided_slice %666 {offsets = [2, 0], sizes = [2, 8], strides = [1, 1]} : vector<4x8xf32> to vector<2x8xf32>
    %c176_263 = arith.constant 176 : index
    %c0_264 = arith.constant 0 : index
    %669 = vector.load %arg3[%c176_263, %c0_264] : memref<232x224xf32, #tpu.memory_space<vmem>>, vector<8x64xf32>
    %cst_265 = arith.constant dense<0.000000e+00> : vector<2x64xf32>
    %670 = tpu.matmul %668, %669, %cst_265 {dimension_numbers = #tpu.dot_dimension_numbers<[1], [0], [0], [1], [0, 0, 1, 1], [], []>} : vector<2x8xf32>, vector<8x64xf32>, vector<2x64xf32> -> vector<2x64xf32>
    %671 = vector.extract_strided_slice %631 {offsets = [0, 32], sizes = [2, 64], strides = [1, 1]} : vector<2x160xf32> to vector<2x64xf32>
    %672 = vector.extract_strided_slice %635 {offsets = [0, 32], sizes = [2, 64], strides = [1, 1]} : vector<2x224xf32> to vector<2x64xf32>
    %673 = arith.addf %671, %672 : vector<2x64xf32>
    %674 = arith.addf %673, %670 : vector<2x64xf32>
    %cst_266 = arith.constant 0.000000e+00 : f32
    %675 = vector.broadcast %cst_266 : f32 to vector<2x64xf32>
    %676 = arith.cmpf oge, %674, %675 : vector<2x64xf32>
    %cst_267 = arith.constant 2.000000e-01 : f32
    %677 = vector.broadcast %cst_267 : f32 to vector<2x64xf32>
    %678 = arith.mulf %677, %674 : vector<2x64xf32>
    %679 = arith.select %676, %674, %678 : vector<2x64xi1>, vector<2x64xf32>
    %c112_268 = arith.constant 112 : index
    %c0_269 = arith.constant 0 : index
    %680 = vector.load %arg3[%c112_268, %c0_269] : memref<232x224xf32, #tpu.memory_space<vmem>>, vector<64x16xf32>
    %cst_270 = arith.constant dense<0.000000e+00> : vector<2x16xf32>
    %681 = tpu.matmul %679, %680, %cst_270 {dimension_numbers = #tpu.dot_dimension_numbers<[1], [0], [0], [1], [0, 0, 1, 1], [], []>} : vector<2x64xf32>, vector<64x16xf32>, vector<2x16xf32> -> vector<2x16xf32>
    %682 = vector.broadcast %57 : vector<1x16xf32> to vector<2x16xf32>
    %683 = arith.addf %681, %682 : vector<2x16xf32>
    %cst_271 = arith.constant 0.000000e+00 : f32
    %684 = vector.broadcast %cst_271 : f32 to vector<2x16xf32>
    %685 = arith.cmpf oge, %683, %684 : vector<2x16xf32>
    %cst_272 = arith.constant 2.000000e-01 : f32
    %686 = vector.broadcast %cst_272 : f32 to vector<2x16xf32>
    %687 = arith.mulf %686, %683 : vector<2x16xf32>
    %688 = arith.select %685, %683, %687 : vector<2x16xi1>, vector<2x16xf32>
    %689 = vector.extract_strided_slice %688 {offsets = [0, 0], sizes = [2, 8], strides = [1, 1]} : vector<2x16xf32> to vector<2x8xf32>
    %690 = vector.extract_strided_slice %688 {offsets = [0, 8], sizes = [2, 8], strides = [1, 1]} : vector<2x16xf32> to vector<2x8xf32>
    %cst_273 = arith.constant 5.000000e-01 : f32
    %691 = vector.broadcast %cst_273 : f32 to vector<2x8xf32>
    %692 = arith.mulf %691, %690 : vector<2x8xf32>
    %693 = math.exp %692 : vector<2x8xf32>
    %694 = arith.mulf %633, %693 : vector<2x8xf32>
    %695 = arith.addf %689, %694 : vector<2x8xf32>
    %696 = vector.extract_strided_slice %631 {offsets = [0, 96], sizes = [2, 64], strides = [1, 1]} : vector<2x160xf32> to vector<2x64xf32>
    %c184_274 = arith.constant 184 : index
    %c0_275 = arith.constant 0 : index
    %697 = vector.load %arg3[%c184_274, %c0_275] : memref<232x224xf32, #tpu.memory_space<vmem>>, vector<8x64xf32>
    %cst_276 = arith.constant dense<0.000000e+00> : vector<2x64xf32>
    %698 = tpu.matmul %695, %697, %cst_276 {dimension_numbers = #tpu.dot_dimension_numbers<[1], [0], [0], [1], [0, 0, 1, 1], [], []>} : vector<2x8xf32>, vector<8x64xf32>, vector<2x64xf32> -> vector<2x64xf32>
    %699 = arith.addf %696, %698 : vector<2x64xf32>
    %cst_277 = arith.constant 0.000000e+00 : f32
    %700 = vector.broadcast %cst_277 : f32 to vector<2x64xf32>
    %701 = arith.cmpf oge, %699, %700 : vector<2x64xf32>
    %cst_278 = arith.constant 2.000000e-01 : f32
    %702 = vector.broadcast %cst_278 : f32 to vector<2x64xf32>
    %703 = arith.mulf %702, %699 : vector<2x64xf32>
    %704 = arith.select %701, %699, %703 : vector<2x64xi1>, vector<2x64xf32>
    %c48_279 = arith.constant 48 : index
    %c0_280 = arith.constant 0 : index
    %705 = vector.load %arg3[%c48_279, %c0_280] : memref<232x224xf32, #tpu.memory_space<vmem>>, vector<64x128xf32>
    %cst_281 = arith.constant dense<0.000000e+00> : vector<2x128xf32>
    %706 = tpu.matmul %704, %705, %cst_281 {dimension_numbers = #tpu.dot_dimension_numbers<[1], [0], [0], [1], [0, 0, 1, 1], [], []>} : vector<2x64xf32>, vector<64x128xf32>, vector<2x128xf32> -> vector<2x128xf32>
    %707 = vector.extract_strided_slice %635 {offsets = [0, 96], sizes = [2, 128], strides = [1, 1]} : vector<2x224xf32> to vector<2x128xf32>
    %708 = arith.addf %706, %707 : vector<2x128xf32>
    %709 = vector.broadcast %58 : vector<1x128xf32> to vector<2x128xf32>
    %710 = arith.addf %708, %709 : vector<2x128xf32>
    %711 = arith.negf %710 : vector<2x128xf32>
    %712 = math.exp %711 : vector<2x128xf32>
    %cst_282 = arith.constant 1.000000e+00 : f32
    %713 = vector.broadcast %cst_282 : f32 to vector<2x128xf32>
    %714 = arith.addf %713, %712 : vector<2x128xf32>
    %715 = arith.divf %713, %714 : vector<2x128xf32>
    %716 = math.tanh %710 : vector<2x128xf32>
    %717 = vector.extract_strided_slice %715 {offsets = [0, 32], sizes = [2, 32], strides = [1, 1]} : vector<2x128xf32> to vector<2x32xf32>
    %718 = arith.mulf %717, %627 : vector<2x32xf32>
    %719 = vector.extract_strided_slice %715 {offsets = [0, 0], sizes = [2, 32], strides = [1, 1]} : vector<2x128xf32> to vector<2x32xf32>
    %720 = vector.extract_strided_slice %716 {offsets = [0, 64], sizes = [2, 32], strides = [1, 1]} : vector<2x128xf32> to vector<2x32xf32>
    %721 = arith.mulf %719, %720 : vector<2x32xf32>
    %722 = arith.addf %718, %721 : vector<2x32xf32>
    %723 = vector.extract_strided_slice %715 {offsets = [0, 96], sizes = [2, 32], strides = [1, 1]} : vector<2x128xf32> to vector<2x32xf32>
    %724 = math.tanh %722 : vector<2x32xf32>
    %725 = arith.mulf %723, %724 : vector<2x32xf32>
    %726 = vector.extract_strided_slice %55 {offsets = [14, 0], sizes = [2, 160], strides = [1, 1]} : vector<16x160xf32> to vector<2x160xf32>
    %c14 = arith.constant 14 : index
    %c0_283 = arith.constant 0 : index
    %727 = vector.load %arg1[%c14, %c0_283] : memref<16x16xf32, #tpu.memory_space<vmem>>, vector<2x8xf32>
    %c14_284 = arith.constant 14 : index
    %c8_285 = arith.constant 8 : index
    %728 = vector.load %arg1[%c14_284, %c8_285] : memref<16x16xf32, #tpu.memory_space<vmem>>, vector<2x8xf32>
    %c0_286 = arith.constant 0 : index
    %c0_287 = arith.constant 0 : index
    %729 = vector.load %arg3[%c0_286, %c0_287] : memref<232x224xf32, #tpu.memory_space<vmem>>, vector<32x224xf32>
    %cst_288 = arith.constant dense<0.000000e+00> : vector<2x224xf32>
    %730 = tpu.matmul %725, %729, %cst_288 {dimension_numbers = #tpu.dot_dimension_numbers<[1], [0], [0], [1], [0, 0, 1, 1], [], []>} : vector<2x32xf32>, vector<32x224xf32>, vector<2x224xf32> -> vector<2x224xf32>
    %731 = vector.extract_strided_slice %726 {offsets = [0, 0], sizes = [2, 32], strides = [1, 1]} : vector<2x160xf32> to vector<2x32xf32>
    %732 = vector.extract_strided_slice %730 {offsets = [0, 0], sizes = [2, 32], strides = [1, 1]} : vector<2x224xf32> to vector<2x32xf32>
    %733 = arith.addf %731, %732 : vector<2x32xf32>
    %cst_289 = arith.constant 0.000000e+00 : f32
    %734 = vector.broadcast %cst_289 : f32 to vector<2x32xf32>
    %735 = arith.cmpf oge, %733, %734 : vector<2x32xf32>
    %cst_290 = arith.constant 2.000000e-01 : f32
    %736 = vector.broadcast %cst_290 : f32 to vector<2x32xf32>
    %737 = arith.mulf %736, %733 : vector<2x32xf32>
    %738 = arith.select %735, %733, %737 : vector<2x32xi1>, vector<2x32xf32>
    %c192_291 = arith.constant 192 : index
    %c0_292 = arith.constant 0 : index
    %739 = vector.load %arg3[%c192_291, %c0_292] : memref<232x224xf32, #tpu.memory_space<vmem>>, vector<32x8xf32>
    %cst_293 = arith.constant dense<0.000000e+00> : vector<2x8xf32>
    %740 = tpu.matmul %738, %739, %cst_293 {dimension_numbers = #tpu.dot_dimension_numbers<[1], [0], [0], [1], [0, 0, 1, 1], [], []>} : vector<2x32xf32>, vector<32x8xf32>, vector<2x8xf32> -> vector<2x8xf32>
    %741 = vector.broadcast %56 : vector<1x8xf32> to vector<2x8xf32>
    %742 = arith.addf %740, %741 : vector<2x8xf32>
    %cst_294 = arith.constant 0.000000e+00 : f32
    %743 = vector.broadcast %cst_294 : f32 to vector<2x8xf32>
    %744 = arith.cmpf oge, %742, %743 : vector<2x8xf32>
    %cst_295 = arith.constant 2.000000e-01 : f32
    %745 = vector.broadcast %cst_295 : f32 to vector<2x8xf32>
    %746 = arith.mulf %745, %742 : vector<2x8xf32>
    %747 = arith.select %744, %742, %746 : vector<2x8xi1>, vector<2x8xf32>
    %748 = arith.addf %747, %727 : vector<2x8xf32>
    %cst_296 = arith.constant 2.000000e+00 : f32
    %749 = vector.broadcast %cst_296 : f32 to vector<2x8xf32>
    %750 = arith.mulf %748, %749 : vector<2x8xf32>
    %751 = tpu.concatenate %747, %750 in 0 : vector<2x8xf32>, vector<2x8xf32> -> vector<4x8xf32>
    %cst_297 = arith.constant dense<0xFF800000> : vector<4xf32>
    %752 = vector.multi_reduction <maximumf>, %751, %cst_297 [1] : vector<4x8xf32> to vector<4xf32>
    %753 = vector.shape_cast %752 : vector<4xf32> to vector<4x1xf32>
    %754 = vector.broadcast %753 : vector<4x1xf32> to vector<4x8xf32>
    %755 = arith.subf %751, %754 : vector<4x8xf32>
    %756 = math.exp %755 : vector<4x8xf32>
    %cst_298 = arith.constant dense<0.000000e+00> : vector<4xf32>
    %757 = vector.multi_reduction <add>, %756, %cst_298 [1] : vector<4x8xf32> to vector<4xf32>
    %758 = vector.shape_cast %757 : vector<4xf32> to vector<4x1xf32>
    %759 = tpu.reciprocal %758 {approx = true} : vector<4x1xf32> -> vector<4x1xf32>
    %760 = vector.broadcast %759 : vector<4x1xf32> to vector<4x8xf32>
    %761 = arith.mulf %756, %760 : vector<4x8xf32>
    %762 = vector.extract_strided_slice %761 {offsets = [0, 0], sizes = [2, 8], strides = [1, 1]} : vector<4x8xf32> to vector<2x8xf32>
    %763 = vector.extract_strided_slice %761 {offsets = [2, 0], sizes = [2, 8], strides = [1, 1]} : vector<4x8xf32> to vector<2x8xf32>
    %c176_299 = arith.constant 176 : index
    %c0_300 = arith.constant 0 : index
    %764 = vector.load %arg3[%c176_299, %c0_300] : memref<232x224xf32, #tpu.memory_space<vmem>>, vector<8x64xf32>
    %cst_301 = arith.constant dense<0.000000e+00> : vector<2x64xf32>
    %765 = tpu.matmul %763, %764, %cst_301 {dimension_numbers = #tpu.dot_dimension_numbers<[1], [0], [0], [1], [0, 0, 1, 1], [], []>} : vector<2x8xf32>, vector<8x64xf32>, vector<2x64xf32> -> vector<2x64xf32>
    %766 = vector.extract_strided_slice %726 {offsets = [0, 32], sizes = [2, 64], strides = [1, 1]} : vector<2x160xf32> to vector<2x64xf32>
    %767 = vector.extract_strided_slice %730 {offsets = [0, 32], sizes = [2, 64], strides = [1, 1]} : vector<2x224xf32> to vector<2x64xf32>
    %768 = arith.addf %766, %767 : vector<2x64xf32>
    %769 = arith.addf %768, %765 : vector<2x64xf32>
    %cst_302 = arith.constant 0.000000e+00 : f32
    %770 = vector.broadcast %cst_302 : f32 to vector<2x64xf32>
    %771 = arith.cmpf oge, %769, %770 : vector<2x64xf32>
    %cst_303 = arith.constant 2.000000e-01 : f32
    %772 = vector.broadcast %cst_303 : f32 to vector<2x64xf32>
    %773 = arith.mulf %772, %769 : vector<2x64xf32>
    %774 = arith.select %771, %769, %773 : vector<2x64xi1>, vector<2x64xf32>
    %c112_304 = arith.constant 112 : index
    %c0_305 = arith.constant 0 : index
    %775 = vector.load %arg3[%c112_304, %c0_305] : memref<232x224xf32, #tpu.memory_space<vmem>>, vector<64x16xf32>
    %cst_306 = arith.constant dense<0.000000e+00> : vector<2x16xf32>
    %776 = tpu.matmul %774, %775, %cst_306 {dimension_numbers = #tpu.dot_dimension_numbers<[1], [0], [0], [1], [0, 0, 1, 1], [], []>} : vector<2x64xf32>, vector<64x16xf32>, vector<2x16xf32> -> vector<2x16xf32>
    %777 = vector.broadcast %57 : vector<1x16xf32> to vector<2x16xf32>
    %778 = arith.addf %776, %777 : vector<2x16xf32>
    %cst_307 = arith.constant 0.000000e+00 : f32
    %779 = vector.broadcast %cst_307 : f32 to vector<2x16xf32>
    %780 = arith.cmpf oge, %778, %779 : vector<2x16xf32>
    %cst_308 = arith.constant 2.000000e-01 : f32
    %781 = vector.broadcast %cst_308 : f32 to vector<2x16xf32>
    %782 = arith.mulf %781, %778 : vector<2x16xf32>
    %783 = arith.select %780, %778, %782 : vector<2x16xi1>, vector<2x16xf32>
    %784 = vector.extract_strided_slice %783 {offsets = [0, 0], sizes = [2, 8], strides = [1, 1]} : vector<2x16xf32> to vector<2x8xf32>
    %785 = vector.extract_strided_slice %783 {offsets = [0, 8], sizes = [2, 8], strides = [1, 1]} : vector<2x16xf32> to vector<2x8xf32>
    %cst_309 = arith.constant 5.000000e-01 : f32
    %786 = vector.broadcast %cst_309 : f32 to vector<2x8xf32>
    %787 = arith.mulf %786, %785 : vector<2x8xf32>
    %788 = math.exp %787 : vector<2x8xf32>
    %789 = arith.mulf %728, %788 : vector<2x8xf32>
    %790 = arith.addf %784, %789 : vector<2x8xf32>
    %791 = tpu.concatenate %125, %220, %315, %410, %505, %600, %695, %790 in 0 : vector<2x8xf32>, vector<2x8xf32>, vector<2x8xf32>, vector<2x8xf32>, vector<2x8xf32>, vector<2x8xf32>, vector<2x8xf32>, vector<2x8xf32> -> vector<16x8xf32>
    %792 = tpu.concatenate %119, %214, %309, %404, %499, %594, %689, %784 in 0 : vector<2x8xf32>, vector<2x8xf32>, vector<2x8xf32>, vector<2x8xf32>, vector<2x8xf32>, vector<2x8xf32>, vector<2x8xf32>, vector<2x8xf32> -> vector<16x8xf32>
    %793 = tpu.concatenate %120, %215, %310, %405, %500, %595, %690, %785 in 0 : vector<2x8xf32>, vector<2x8xf32>, vector<2x8xf32>, vector<2x8xf32>, vector<2x8xf32>, vector<2x8xf32>, vector<2x8xf32>, vector<2x8xf32> -> vector<16x8xf32>
    %794 = tpu.concatenate %59, %155, %250, %345, %440, %535, %630, %725 in 0 : vector<2x32xf32>, vector<2x32xf32>, vector<2x32xf32>, vector<2x32xf32>, vector<2x32xf32>, vector<2x32xf32>, vector<2x32xf32>, vector<2x32xf32> -> vector<16x32xf32>
    %795 = tpu.concatenate %98, %193, %288, %383, %478, %573, %668, %763 in 0 : vector<2x8xf32>, vector<2x8xf32>, vector<2x8xf32>, vector<2x8xf32>, vector<2x8xf32>, vector<2x8xf32>, vector<2x8xf32>, vector<2x8xf32> -> vector<16x8xf32>
    %796 = tpu.concatenate %82, %177, %272, %367, %462, %557, %652, %747 in 0 : vector<2x8xf32>, vector<2x8xf32>, vector<2x8xf32>, vector<2x8xf32>, vector<2x8xf32>, vector<2x8xf32>, vector<2x8xf32>, vector<2x8xf32> -> vector<16x8xf32>
    %797 = tpu.concatenate %97, %192, %287, %382, %477, %572, %667, %762 in 0 : vector<2x8xf32>, vector<2x8xf32>, vector<2x8xf32>, vector<2x8xf32>, vector<2x8xf32>, vector<2x8xf32>, vector<2x8xf32>, vector<2x8xf32> -> vector<16x8xf32>
    %cst_310 = arith.constant 0.000000e+00 : f32
    %798 = vector.broadcast %cst_310 : f32 to vector<16x48xf32>
    %799 = tpu.concatenate %791, %792, %793, %794, %795, %796, %797, %798 in 1 : vector<16x8xf32>, vector<16x8xf32>, vector<16x8xf32>, vector<16x32xf32>, vector<16x8xf32>, vector<16x8xf32>, vector<16x8xf32>, vector<16x48xf32> -> vector<16x128xf32>
    %c0_311 = arith.constant 0 : index
    %c0_312 = arith.constant 0 : index
    %800 = vector.load %arg4[%c0_311, %c0_312] : memref<16x128xf32, #tpu.memory_space<vmem>>, vector<16x128xf32>
    tpu.vector_store %arg4[%c0_311, %c0_312], %799 {strides = array<i32>} : memref<16x128xf32, #tpu.memory_space<vmem>>, vector<16x128xf32>,
    return
  }
}

</mosaic_0001>

<bundles_post_ra>
// kernel: tpu_custom_call.1
= control target key start
LH: loop header
LB: loop body
LE: loop exit
PB: predicated region body
PF: predicated region fallthrough
CT: control target
= control target key end

     0   :  { %vm31_vm0 = vcmask 392192   ;;  %s7757_s0 = inlined_call_operand.vmem [shape: f32[16,48], index: 0, kind: input, shape index: {}]   ;;  %s7758_s1 = inlined_call_operand.vmem [shape: f32[16,16], index: 1, kind: input, shape index: {}]   ;;  %s7759_s2 = inlined_call_operand.vmem [shape: f32[376,96], index: 2, kind: input, shape index: {}]   ;;  %s7760_s3 = inlined_call_operand.vmem [shape: f32[232,224], index: 3, kind: input, shape index: {}]   ;;  %s7761_s4 = inlined_call_operand.hbm [shape: f32[16,128], index: 4, kind: output, shape index: {}]  }
   0x1   :  { %v20_v0 = vld [vmem:[%s7759_s2] sm:$0xff]  ;;  %v21_v1 = vld [vmem:[%s7759_s2 + $0x8] sm:$0xff]  ;;  %v22_v2 = vld [vmem:[%s7759_s2 + $0x10] sm:$0xff] }
   0x2   :  { %v5927_v3 = vpack.c.bf16 %v21_v1, %v20_v0  ;;  %v23_v4 = vld [vmem:[%s7759_s2 + $0x18] sm:$0xff]  ;;  %v24_v5 = vld [vmem:[%s7759_s2 + $0x20] sm:$0xff]  ;;  %v25_v7 = vld [vmem:[%s7759_s2 + $0x28] sm:$0xff] }
   0x3   :  { %v5931_v6 = vpack.c.bf16 %v23_v4, %v22_v2  ;;  %v18_v8 = vld [vmem:[%s7757_s0] sm:$0xff]  ;;  %v119_v9 = vld [vmem:[%s7759_s2 + $0x30] sm:$0xff]  ;;  %v120_v10 = vld [vmem:[%s7759_s2 + $0x38] sm:$0xff]  ;;  %v5935_v15 = vpack.c.bf16 %v25_v7, %v24_v5 }
   0x4   :  { %5928 = vmatprep.subr.bf16.mxu0 %v5927_v3  ;;  %5384 = vmatprep.mubr.msk.f32.mxu0 %vm31_vm0, %v18_v8  ;;  %v121_v11 = vld [vmem:[%s7759_s2 + $0x40] sm:$0xff]  ;;  %v122_v12 = vld [vmem:[%s7759_s2 + $0x48] sm:$0xff]  ;;  %v5939_v13 = vpack.c.bf16 %v120_v10, %v119_v9  ;;  %v123_v16 = vld [vmem:[%s7759_s2 + $0x50] sm:$0xff] }
   0x5   :  { %5930 = vmatpush3.bf16.msra.mxu0 %v5927_v3  ;;  %v5943_v14 = vpack.c.bf16 %v122_v12, %v121_v11  ;;  %v124_v17 = vld [vmem:[%s7759_s2 + $0x58] sm:$0xff] }
   0x6   :  { %5932 = vmatprep.subr.bf16.mxu0 %v5931_v6 }
   0x7   :  { %9 = vsyncpa [#allocation3], 0  ;;  %5940 = vmatprep.subr.bf16.mxu1 %v5939_v13  ;;  %v5947_v18 = vpack.c.bf16 %v124_v17, %v123_v16  ;;  %v125_v19 = vld [vmem:[%s7759_s2 + $0x60] sm:$0xff]  ;;  %v126_v20 = vld [vmem:[%s7759_s2 + $0x68] sm:$0xff]  ;;  %vm136_vm3 = vcmask 785408   ;;  %vm441_vm10 = vcmask 261120  }
   0x8   :  { %5942 = vmatpush3.bf16.msra.mxu1 %v5939_v13  ;;  %v19_v21 = vld [vmem:[%s7757_s0 + $0x8] sm:$0xff]  ;;  %v5951_v22 = vpack.c.bf16 %v126_v20, %v125_v19  ;;  %v127_v23 = vld [vmem:[%s7759_s2 + $0x70] sm:$0xff]  ;;  %v128_v24 = vld [vmem:[%s7759_s2 + $0x78] sm:$0xff]  ;;  %vm546_vm12 = vcmask 130048   ;;  %vm6464_vm14 = vmmov 0   ;;  %s6465_s10 = smov 32  }
   0x9   :  { %5934 = vmatpush3.bf16.msra.mxu0 %v5931_v6  ;;  %5944 = vmatprep.subr.bf16.mxu1 %v5943_v14  ;;  %v5955_v25 = vpack.c.bf16 %v128_v24, %v127_v23  ;;  %v129_v26 = vld [vmem:[%s7759_s2 + $0x80] sm:$0xff]  ;;  %v130_v27 = vld [vmem:[%s7759_s2 + $0x88] sm:$0xff]  ;;  %v224_v29 = vld [vmem:[%s7759_s2 + $0x90] sm:$0xff]  ;;  %s6466_s15 = smov 96   ;;  %s6467_s20 = smov 120  }
   0xa   :  { %5936 = vmatprep.subr.bf16.mxu0 %v5935_v15  ;;  %v5959_v28 = vpack.c.bf16 %v130_v27, %v129_v26  ;;  %v225_v30 = vld [vmem:[%s7759_s2 + $0x98] sm:$0xff]  ;;  %v226_v31 = vld [vmem:[%s7759_s2 + $0xa0] sm:$0xff]  ;;  %v227_v33 = vld [vmem:[%s7759_s2 + $0xa8] sm:$0xff]  ;;  %s6468_s12 = smov 64   ;;  %s6472_s13 = smov 72  }
   0xb   :  { %v5963_v32 = vpack.c.bf16 %v225_v30, %v224_v29  ;;  %v5967_v34 = vpack.c.bf16 %v227_v33, %v226_v31  ;;  %v228_v35 = vld [vmem:[%s7759_s2 + $0xb0] sm:$0xff]  ;;  %v229_v36 = vld [vmem:[%s7759_s2 + $0xb8] sm:$0xff]  ;;  %v230_v38 = vld [vmem:[%s7759_s2 + $0xc0] sm:$0xff] }
   0xc   :  { %5946 = vmatpush3.bf16.msra.mxu1 %v5943_v14  ;;  %v5971_v37 = vpack.c.bf16 %v229_v36, %v228_v35  ;;  %v231_v39 = vld [vmem:[%s7759_s2 + $0xc8] sm:$0xff]  ;;  %v5041_v41 = vld [vmem:[%s7759_s2 + $0x170] ss:$0 sm:$0xff]  ;;  %v233_v51 = vld [vmem:[%s7759_s2 + $0xd8] sm:$0xff] }
   0xd   :  { %5938 = vmatpush3.bf16.msra.mxu0 %v5935_v15  ;;  %5948 = vmatprep.subr.bf16.mxu1 %v5947_v18  ;;  %v5975_v40 = vpack.c.bf16 %v231_v39, %v230_v38  ;;  %v232_v50 = vld [vmem:[%s7759_s2 + $0xd0] sm:$0xff]  ;;  %v234_v53 = vld [vmem:[%s7759_s2 + $0xe0] sm:$0xff]  ;;  %v235_v54 = vld [vmem:[%s7759_s2 + $0xe8] sm:$0xff] }
   0xe   :  { %5964 = vmatprep.subr.bf16.mxu0 %v5963_v32  ;;  %v5979_v52 = vpack.c.bf16 %v233_v51, %v232_v50  ;;  %v5983_v55 = vpack.c.bf16 %v235_v54, %v234_v53  ;;  %v328_v56 = vld [vmem:[%s7759_s2 + $0xf0] sm:$0xff]  ;;  %v329_v57 = vld [vmem:[%s7759_s2 + $0xf8] sm:$0xff]  ;;  %v330_v58 = vld [vmem:[%s7759_s2 + $0x100] sm:$0xff] }
   0xf   :  { %v5987_v59 = vpack.c.bf16 %v329_v57, %v328_v56  ;;  %v331_v60 = vld [vmem:[%s7759_s2 + $0x108] sm:$0xff]  ;;  %v332_v62 = vld [vmem:[%s7759_s2 + $0x110] sm:$0xff]  ;;  %v333_v63 = vld [vmem:[%s7759_s2 + $0x118] sm:$0xff] }
  0x10   :  { %5385 = vmatmul.mubr.msk.f32.vlgmr.msra.gmra.mrb[0].mxu0 %vm31_vm0, %v19_v21  ;;  %5950 = vmatpush3.bf16.msra.mxu1 %v5947_v18  ;;  %v5991_v61 = vpack.c.bf16 %v331_v60, %v330_v58  ;;  %v5995_v0 = vpack.c.bf16 %v333_v63, %v332_v62  ;;  %v334_v1 = vld [vmem:[%s7759_s2 + $0x120] sm:$0xff]  ;;  %v335_v2 = vld [vmem:[%s7759_s2 + $0x128] sm:$0xff]  ;;  %v5044_v4 = vld [vmem:[%s7759_s2 + $0x171] ss:$0 sm:$0xff] }
  0x11   :  { %5952 = vmatprep.subr.bf16.mxu1 %v5951_v22  ;;  %5966 = vmatpush3.bf16.msra.mxu0 %v5963_v32  ;;  %v5999_v3 = vpack.c.bf16 %v335_v2, %v334_v1  ;;  %v336_v13 = vld [vmem:[%s7759_s2 + $0x130] sm:$0xff]  ;;  %v337_v14 = vld [vmem:[%s7759_s2 + $0x138] sm:$0xff]  ;;  %v338_v16 = vld [vmem:[%s7759_s2 + $0x140] sm:$0xff] }
  0x12   :  { %5968 = vmatprep.subr.bf16.mxu0 %v5967_v34  ;;  %v6003_v15 = vpack.c.bf16 %v337_v14, %v336_v13  ;;  %v339_v17 = vld [vmem:[%s7759_s2 + $0x148] sm:$0xff]  ;;  %v5047_v19 = vld [vmem:[%s7759_s2 + $0x172] ss:$0 sm:$0xff]  ;;  %v433_v29 = vld [vmem:[%s7759_s2 + $0x158] sm:$0xff]  ;;  %v536_v14 = vlaneseq }
  0x13   :  { %v6007_v18 = vpack.c.bf16 %v339_v17, %v338_v16  ;;  %v434_v31 = vld [vmem:[%s7759_s2 + $0x160] sm:$0xff]  ;;  %v435_v32 = vld [vmem:[%s7759_s2 + $0x168] sm:$0xff]  ;;  %v637_v50 = vld [vmem:[%s7760_s3 + $0x18] sm:$0xff] }
  0x14   :  { %5954 = vmatpush3.bf16.msra.mxu1 %v5951_v22  ;;  %v6015_v33 = vpack.c.bf16 %v435_v32, %v434_v31  ;;  %v5053_v53 = vld [vmem:[%s7759_s2 + $0x174] ss:$0 sm:$0xff]  ;;  %v634_v56 = vld [vmem:[%s7760_s3] sm:$0xff]  ;;  %v639_v60 = vld [vmem:[%s7760_s3 + $0x28] sm:$0xff] }
  0x15   :  { %5956 = vmatprep.subr.bf16.mxu1 %v5955_v25  ;;  %5970 = vmatpush3.bf16.msra.mxu0 %v5967_v34  ;;  %v5050_v34 = vld [vmem:[%s7759_s2 + $0x173] ss:$0 sm:$0xff]  ;;  %v638_v1 = vld [vmem:[%s7760_s3 + $0x20] sm:$0xff] }
  0x16   :  { %5972 = vmatprep.subr.bf16.mxu0 %v5971_v37  ;;  %v636_v57 = vld [vmem:[%s7760_s3 + $0x10] sm:$0xff]  ;;  %v5056_v17 = vld [vmem:[%s7760_s3 + $0x1c0] ss:$8 sm:$0x3] }
  0x17   :  { %v6703_v63 = vpack.c.bf16 %v636_v57, %v634_v56  ;;  %v640_v2 = vld [vmem:[%s7760_s3 + $0x30] sm:$0xff]  ;;  %v903_v57 = vld [vmem:[%s7760_s3 + $0xe0] sm:$0xff] }
  0x18   :  { %5958 = vmatpush3.bf16.msra.mxu1 %v5955_v25 }
  0x19   :  { %5960 = vmatprep.subr.bf16.mxu1 %v5959_v28  ;;  %5974 = vmatpush3.bf16.msra.mxu0 %v5971_v37 }
  0x1a   :  { %5976 = vmatprep.subr.bf16.mxu0 %v5975_v40 }
  0x1c   :  { %5962 = vmatpush3.bf16.msra.mxu1 %v5959_v28  ;;  %v432_v28 = vld [vmem:[%s7759_s2 + $0x150] sm:$0xff] }
  0x1d   :  { %5978 = vmatpush3.bf16.msra.mxu0 %v5975_v40  ;;  %5988 = vmatprep.subr.bf16.mxu1 %v5987_v59  ;;  %v6011_v30 = vpack.c.bf16 %v433_v29, %v432_v28 }
  0x1e   :  { %5980 = vmatprep.subr.bf16.mxu0 %v5979_v52 }
  0x21   :  { %5982 = vmatpush3.bf16.msra.mxu0 %v5979_v52  ;;  %v6462_v52 = vmov 0.0  }
  0x22   :  { %5984 = vmatprep.subr.bf16.mxu0 %v5983_v55 }
  0x25   :  { %5986 = vmatpush3.bf16.msra.mxu0 %v5983_v55 }
  0x26   :  { %6012 = vmatprep.subr.bf16.mxu0 %v6011_v30 }
  0xe3   :  { %v5386_v42 = vpop.f32.mrb[0].mxu0 }
  0xe4   :  { %v110_v43 = vadd.f32 %v5386_v42, %v5041_v41  ;;  %v104_v44 = vpop.f32.mrb[1].mxu0 }
  0xe5   :  { %v105_v45 = vadd.f32 %v5041_v41, %v104_v44  ;;  %v532_v44 = vld [vmem:[%s7760_s3 + $0x58] sm:$0xff] }
  0xe6   :  { %v116_v46 = vmul.f32 0.2, %v110_v43  ;;  %vm114_vm1 = vcmp.ge.f32.partialorder %v110_v43, 0.0 }
  0xe7   :  { %vm113_vm2 = vcmp.ge.f32.partialorder %v105_v45, 0.0  ;;  %v115_v47 = vmul.f32 0.2, %v105_v45 }
  0xe8   :  { %v118_v49 = vsel %vm114_vm1, %v110_v43, %v116_v46  ;;  %v530_v43 = vld [vmem:[%s7760_s3 + $0x48] sm:$0xff]  ;;  %v529_v46 = vld [vmem:[%s7760_s3 + $0x40] sm:$0xff]  ;;  %vm805_vm1 = vcmask 1041408  }
  0xe9   :  { %v117_v48 = vsel %vm113_vm2, %v105_v45, %v115_v47  ;;  %v6019_v45 = vpack.c.bf16 %v532_v44, %v530_v43  ;;  %v531_v47 = vld [vmem:[%s7760_s3 + $0x50] sm:$0xff]  ;;  %vm807_vm2 = vcmask 60416  }
  0xea   :  { %5411 = vmatprep.mubr.msk.f32.mxu1 %vm136_vm3, %v117_v48  ;;  %v6021_v48 = vpack.c.bf16 %v531_v47, %v529_v46 }
  0xeb   :  { %5412 = vmatmul.mubr.msk.f32.vlgmr.msra.gmra.mrb[0].mxu1 %vm136_vm3, %v118_v49  ;;  %v635_v49 = vld [vmem:[%s7760_s3 + $0x8] sm:$0xff] }
  0xec   :  { %5990 = vmatpush3.bf16.msra.mxu1 %v5987_v59  ;;  %v6684_v51 = vpack.c.bf16 %v637_v50, %v635_v49  ;;  %v6799_v50 = vld [vmem:[%s7760_s3 + $0x160] sm:$0xff] }
  0xed   :  { %5992 = vmatprep.subr.bf16.mxu1 %v5991_v61 }
  0xf0   :  { %5994 = vmatpush3.bf16.msra.mxu1 %v5991_v61  ;;  %v641_v61 = vld [vmem:[%s7760_s3 + $0x38] sm:$0xff] }
  0xf1   :  { %5996 = vmatprep.subr.bf16.mxu1 %v5995_v0 }
  0xf4   :  { %5998 = vmatpush3.bf16.msra.mxu1 %v5995_v0  ;;  %v6705_v0 = vpack.c.bf16 %v641_v61, %v639_v60  ;;  %v906_v61 = vld [vmem:[%s7760_s3 + $0x110] sm:$0xff] }
  0xf5   :  { %6000 = vmatprep.subr.bf16.mxu1 %v5999_v3 }
  0xf8   :  { %6002 = vmatpush3.bf16.msra.mxu1 %v5999_v3 }
  0xf9   :  { %6004 = vmatprep.subr.bf16.mxu1 %v6003_v15 }
  0xfc   :  { %6006 = vmatpush3.bf16.msra.mxu1 %v6003_v15  ;;  %v537_v15 = vshrl.u32 %v536_v14, 7 }
  0xfd   :  { %6008 = vmatprep.subr.bf16.mxu1 %v6007_v18 }
  0xfe   :  { %v538_v16 = vsub.s32 0, %v537_v15 }
 0x100   :  { %6010 = vmatpush3.bf16.msra.mxu1 %v6007_v18 }
 0x1be   :  { %v5413_v5 = vpop.f32.mrb[0].mxu1 }
 0x1bf   :  { %v215_v6 = vadd.f32 %v5413_v5, %v5044_v4  ;;  %v209_v7 = vpop.f32.mrb[1].mxu1  ;;  %v6716_v5 = vpack.c.bf16 %v640_v2, %v638_v1  ;;  %v907_v1 = vld [vmem:[%s7760_s3 + $0x120] sm:$0xff]  ;;  %v908_v2 = vld [vmem:[%s7760_s3 + $0x130] sm:$0xff] }
 0x1c0   :  { %v210_v8 = vadd.f32 %v5044_v4, %v209_v7  ;;  %v720_v7 = vld [vmem:[%s7760_s3 + $0x180] sm:$0xff] }
 0x1c1   :  { %v221_v9 = vmul.f32 0.2, %v215_v6  ;;  %vm219_vm4 = vcmp.ge.f32.partialorder %v215_v6, 0.0 }
 0x1c2   :  { %vm218_vm5 = vcmp.ge.f32.partialorder %v210_v8, 0.0  ;;  %v220_v10 = vmul.f32 0.2, %v210_v8 }
 0x1c3   :  { %v223_v12 = vsel %vm219_vm4, %v215_v6, %v221_v9 }
 0x1c4   :  { %v222_v11 = vsel %vm218_vm5, %v210_v8, %v220_v10  ;;  %v721_v8 = vld [vmem:[%s7760_s3 + $0x190] sm:$0xff]  ;;  %v7762_v10 = vmov 0.0|0.0   ;;  %vm914_vm5 = vcmask 523264  }
 0x1c5   :  { %5438 = vmatprep.mubr.msk.f32.mxu0 %vm136_vm3, %v222_v11  ;;  %v6729_v9 = vpack.c.bf16 %v721_v8, %v720_v7  ;;  %6037 = vmatprep.subr.bf16.mxu1 %v7762_v10  ;;  %v722_v11 = vld [vmem:[%s7760_s3 + $0x1a0] sm:$0xff]  ;;  %v910_v8 = vld [vmem:[%s7760_s3 + $0x150] sm:$0xff] }
 0x1c6   :  { %5439 = vmatmul.mubr.msk.f32.vlgmr.msra.gmra.mrb[2].mxu0 %vm136_vm3, %v223_v12  ;;  %v723_v12 = vld [vmem:[%s7760_s3 + $0x1b0] sm:$0xff]  ;;  %v909_v7 = vld [vmem:[%s7760_s3 + $0x140] sm:$0xff] }
 0x1c7   :  { %6014 = vmatpush3.bf16.msra.mxu0 %v6011_v30  ;;  %v6741_v13 = vpack.c.bf16 %v723_v12, %v722_v11  ;;  %v6847_v11 = vpack.c.bf16 %v910_v8, %v909_v7 }
 0x1c8   :  { %6016 = vmatprep.subr.bf16.mxu0 %v6015_v33 }
 0x1cb   :  { %6018 = vmatpush3.bf16.msra.mxu0 %v6015_v33  ;;  %v6780_v33 = vld [vmem:[%s7760_s3 + $0x1c1] ss:$0 sm:$0xff] }
 0x1cc   :  { %6020 = vmatprep.subr.bf16.mxu0 %v6019_v45 }
 0x299   :  { %v5440_v20 = vpop.f32.mrb[2].mxu0 }
 0x29a   :  { %v319_v21 = vadd.f32 %v5440_v20, %v5047_v19  ;;  %v313_v22 = vpop.f32.mrb[3].mxu0 }
 0x29b   :  { %v314_v23 = vadd.f32 %v5047_v19, %v313_v22  ;;  %v542_v19 = vsub.s32 1, %v537_v15 }
 0x29c   :  { %v325_v24 = vmul.f32 0.2, %v319_v21  ;;  %vm323_vm6 = vcmp.ge.f32.partialorder %v319_v21, 0.0 }
 0x29d   :  { %vm322_vm7 = vcmp.ge.f32.partialorder %v314_v23, 0.0  ;;  %v324_v25 = vmul.f32 0.2, %v314_v23  ;;  %v6754_v22 = vrot.slane %v5056_v17, %v542_v19  ;;  %v6870_v19 = vld [vmem:[%s7760_s3 + $0x1c2] ss:$0 sm:$0xff] }
 0x29e   :  { %v327_v27 = vsel %vm323_vm6, %v319_v21, %v325_v24  ;;  %v539_v21 = vrot.slane %v5056_v17, %v538_v16 }
 0x29f   :  { %v326_v26 = vsel %vm322_vm7, %v314_v23, %v324_v25 }
 0x2a0   :  { %5465 = vmatprep.mubr.msk.f32.mxu1 %vm136_vm3, %v326_v26 }
 0x2a1   :  { %5466 = vmatmul.mubr.msk.f32.vlgmr.msra.gmra.mrb[2].mxu1 %vm136_vm3, %v327_v27  ;;  %vm822_vm3 = vcmask 64512  }
 0x2a2   :  { %5511 = vmatprep.mubr.msk.f32.mxu1 %vm6464_vm14, %v6462_v52 }
 0x374   :  { %v5467_v35 = vpop.f32.mrb[2].mxu1 }
 0x375   :  { %v423_v36 = vadd.f32 %v5467_v35, %v5050_v34  ;;  %v417_v37 = vpop.f32.mrb[3].mxu1 }
 0x376   :  { %v418_v38 = vadd.f32 %v5050_v34, %v417_v37 }
 0x377   :  { %v429_v39 = vmul.f32 0.2, %v423_v36  ;;  %vm427_vm8 = vcmp.ge.f32.partialorder %v423_v36, 0.0 }
 0x378   :  { %vm426_vm9 = vcmp.ge.f32.partialorder %v418_v38, 0.0  ;;  %v428_v40 = vmul.f32 0.2, %v418_v38 }
 0x379   :  { %v431_v42 = vsel %vm427_vm8, %v423_v36, %v429_v39 }
 0x37a   :  { %v430_v41 = vsel %vm426_vm9, %v418_v38, %v428_v40  ;;  %v6786_v38 = vld [vmem:[%s7758_s1] sm:$0x3] }
 0x37b   :  { %5476 = vmatprep.mubr.msk.f32.mxu0 %vm441_vm10, %v430_v41 }
 0x37c   :  { %5477 = vmatmul.mubr.msk.f32.vlgmr.msra.gmra.mrb[4].mxu0 %vm441_vm10, %v431_v42 }
 0x37d   :  { %6022 = vmatpush1.bf16.msra.mxu0 %v6021_v48  ;;  %617 = vmatprep.mubr.f32.mxu0 %v6462_v52 }
 0x37e   :  { %6024 = vmatprep.subr.bf16.mxu0 %v6684_v51 }
 0x44f   :  { %v5478_v54 = vpop.f32.mrb[4].mxu0 }
 0x450   :  { %v514_v55 = vpop.f32.mrb[5].mxu0  ;;  %v520_v58 = vadd.f32 %v5478_v54, %v5053_v53 }
 0x451   :  { %v515_v59 = vadd.f32 %v5053_v53, %v514_v55 }
 0x452   :  { %v526_v3 = vmul.f32 0.2, %v520_v58  ;;  %vm524_vm13 = vcmp.ge.f32.partialorder %v520_v58, 0.0 }
 0x453   :  { %vm523_vm11 = vcmp.ge.f32.partialorder %v515_v59, 0.0  ;;  %v525_v62 = vmul.f32 0.2, %v515_v59 }
 0x454   :  { %v528_v6 = vsel %vm524_vm13, %v520_v58, %v526_v3  ;;  %v904_v58 = vld [vmem:[%s7760_s3 + $0xf0] sm:$0xff] }
 0x455   :  { %v527_v4 = vsel %vm523_vm11, %v515_v59, %v525_v62  ;;  %v905_v59 = vld [vmem:[%s7760_s3 + $0x100] sm:$0xff]  ;;  %v6820_v60 = vpack.c.bf16 %v904_v58, %v903_v57  ;;  %v1092_v57 = vld [vmem:[%s7760_s3 + $0xd0] sm:$0xff] }
 0x456   :  { %5057 = vmatmul.mubr.msk.f32.vlgmr.msra.gmra.mrb[6].mxu0 %vm546_vm12, %v527_v4  ;;  %v6826_v62 = vpack.c.bf16 %v906_v61, %v905_v59  ;;  %v6836_v4 = vpack.c.bf16 %v908_v2, %v907_v1 }
 0x457   :  { %6026 = vmatpush1.bf16.msra.mxu0 %v6703_v63  ;;  %623 = vmatprep.mubr.f32.mxu0 %v6462_v52 }
 0x458   :  { %6028 = vmatprep.subr.bf16.mxu0 %v6705_v0  ;;  %6039 = vmatpush3.bf16.msra.mxu1 %v6820_v60 }
 0x459   :  { %6040 = vmatprep.subr.bf16.mxu1 %v7762_v10 }
 0x45a   :  { %5058 = vmatmul.mubr.msk.f32.gmra.mrb[8].mxu0 %vm546_vm12, %v528_v6 }
 0x45b   :  { %6030 = vmatpush1.bf16.msra.mxu0 %v6716_v5  ;;  %709 = vmatprep.mubr.f32.mxu0 %v6462_v52 }
 0x45c   :  { %6031 = vmatprep.subr.bf16.mxu0 %v7762_v10  ;;  %6042 = vmatpush3.bf16.msra.mxu1 %v6826_v62 }
 0x45d   :  { %6043 = vmatprep.subr.bf16.mxu1 %v7762_v10 }
 0x45e   :  { %710 = vmatmul.mubr.f32.vlgmr.msra.gmra.mrb[10].mxu0 %v6462_v52 }
 0x45f   :  { %6033 = vmatpush3.bf16.msra.mxu0 %v6729_v9  ;;  %5487 = vmatprep.mubr.msk.f32.mxu0 %vm6464_vm14, %v6462_v52 }
 0x460   :  { %6034 = vmatprep.subr.bf16.mxu0 %v7762_v10  ;;  %6045 = vmatpush3.bf16.msra.mxu1 %v6836_v4 }
 0x461   :  { %6046 = vmatprep.subr.bf16.mxu1 %v7762_v10 }
 0x463   :  { %6036 = vmatpush3.bf16.msra.mxu0 %v6741_v13 }
 0x464   :  { %5490 = vmatprep.subr.mxu0 %v6462_v52  ;;  %6048 = vmatpush3.bf16.msra.mxu1 %v6847_v11 }
 0x465   :  { %6062 = vmatprep.subr.bf16.mxu1 %v6684_v51 }
 0x529   :  { %v619_v18 = vpop.f32.mrb[6].mxu0 }
 0x52a   :  { %v6752_v20 = vpop.f32.mrb[7].mxu0  ;;  %v6761_v27 = vadd.f32 %v619_v18, %v539_v21  ;;  %v6863_v18 = vld [vmem:[%s7760_s3 + $0x170] sm:$0xff] }
 0x52b   :  { %v6928_v59 = vadd.f32 %v6752_v20, %v6754_v22 }
 0x52d   :  { %v625_v23 = vpop.f32.mrb[8].mxu0 }
 0x52e   :  { %v6756_v24 = vadd.f32 %v625_v23, %v539_v21  ;;  %v627_v25 = vpop.f32.mrb[9].mxu0 }
 0x52f   :  { %v6759_v26 = vadd.f32 %v627_v25, %v6754_v22 }
 0x531   :  { %v6763_v28 = vpop.f32.mrb[10].mxu0 }
 0x532   :  { %v6767_v29 = vadd.f32 %v6763_v28, %v6761_v27  ;;  %v6769_v30 = vpop.f32.mrb[11].mxu0 }
 0x534   :  { %v718_v31 = vmul.f32 0.2, %v6767_v29  ;;  %vm717_vm15 = vcmp.ge.f32.partialorder %v6767_v29, 0.0 }
 0x536   :  { %v719_v32 = vsel %vm717_vm15, %v6767_v29, %v718_v31 }
 0x537   :  { %5488 = vmatmul.mubr.msk.f32.vlgmr.msra.gmra.mrb[12].mxu0 %vm441_vm10, %v719_v32 }
 0x538   :  { %5492 = vmatprep.mubr.msk.f32.mxu0 %vm6464_vm14, %v6462_v52  ;;  %5491 = vmatpush3.msra.mxu0 %v6799_v50 }
 0x539   :  { %5514 = vmatprep.subr.mxu0 %v6462_v52 }
 0x60a   :  { %v793_v34 = vpop.f32.mrb[12].mxu0 }
 0x60b   :  { %v794_v35 = vadd.f32 %v793_v34, %v6780_v33  ;;  %v5489_v36 = vpop.f32.mrb[13].mxu0 }
 0x60d   :  { %vm797_vm0 = vcmp.ge.f32.partialorder %v794_v35, 0.0  ;;  %v798_v37 = vmul.f32 0.2, %v794_v35 }
 0x60f   :  { %v6788_v39 = vsel %vm797_vm0, %v794_v35, %v798_v37 }
 0x610   :  { %v800_v40 = vadd.f32 %v6788_v39, %v6786_v38 }
 0x612   :  { %v801_v41 = vmul.f32 2.0, %v800_v40 }
 0x614   :  { %v803_v42 = vrot.slane %v801_v41, 6 }
 0x616   :  { %v806_v43 = vsel %vm805_vm1, %v6788_v39, %v803_v42 }
 0x617   :  { %v808_v44 = vsel %vm807_vm2, %v806_v43, -inf }
 0x618   :  { %809 = vmax.xlane.f32.xlu0 %v808_v44  ;;  %v1087_v44 = vld [vmem:[%s7760_s3 + $0x80] sm:$0xff] }
 0x6a5   :  { %v810_v45 = vpop.xlane.xlu0 %809 }
 0x6a6   :  { %v811_v46 = vsub.f32 %v806_v43, %v810_v45  ;;  %v1086_v43 = vld [vmem:[%s7760_s3 + $0x70] sm:$0xff] }
 0x6a8   :  { %v812_v47 = vmul.f32 1.442695, %v811_v46  ;;  %v1088_v46 = vld [vmem:[%s7760_s3 + $0x90] sm:$0xff] }
 0x6aa   :  { %6328 = vpow2.f32 %v812_v47  ;;  %v6901_v47 = vpack.c.bf16 %v1088_v46, %v1087_v44 }
 0x6b4   :  { %v6329_v48 = vpop.eup %6328 }
 0x6b5   :  { %v814_v49 = vsel %vm807_vm2, %v6329_v48, 0.0 }
 0x6b6   :  { %815 = vadd.xlane.f32.xlu0 %v814_v49  ;;  %v1090_v49 = vld [vmem:[%s7760_s3 + $0xb0] sm:$0xff] }
 0x743   :  { %v816_v53 = vpop.xlane.xlu0 %815 }
 0x744   :  { %6330 = vrcp.f32 %v816_v53 }
 0x74e   :  { %v6331_v54 = vpop.eup %6330 }
 0x74f   :  { %v6803_v55 = vmul.f32 %v6331_v54, %v6329_v48  ;;  %v1089_v48 = vld [vmem:[%s7760_s3 + $0xa0] sm:$0xff] }
 0x750   :  { %v6911_v53 = vpack.c.bf16 %v1090_v49, %v1089_v48  ;;  %v1091_v54 = vld [vmem:[%s7760_s3 + $0xc0] sm:$0xff] }
 0x751   :  { %v821_v56 = vrot.slane %v6803_v55, 2  ;;  %v6922_v58 = vpack.c.bf16 %v1092_v57, %v1091_v54 }
 0x753   :  { %5493 = vmatmul.mubr.msk.f32.vlgmr.msra.gmra.mrb[14].mxu0 %vm822_vm3, %v821_v56 }
 0x754   :  { %5516 = vmatprep.mubr.msk.f32.mxu0 %vm6464_vm14, %v6462_v52  ;;  %5515 = vmatpush3.msra.mxu0 %v6863_v18 }
 0x755   :  { %6049 = vmatprep.subr.bf16.mxu0 %v7762_v10 }
 0x826   :  { %v891_v3 = vpop.f32.mrb[14].mxu0 }
 0x827   :  { %896 = vrot.lane.b32.xlu1 %v891_v3, %s6465_s10  ;;  %v5494_v6 = vpop.f32.mrb[15].mxu0 }
 0x899   :  { %v897_v12 = vpop.permute.xlu1 %896 }
 0x89a   :  { %v899_v14 = vadd.f32 %v897_v12, %v6767_v29 }
 0x89c   :  { %vm900_vm4 = vcmp.ge.f32.partialorder %v899_v14, 0.0  ;;  %v901_v15 = vmul.f32 0.2, %v899_v14 }
 0x89e   :  { %v902_v16 = vsel %vm900_vm4, %v899_v14, %v901_v15 }
 0x89f   :  { %912 = vrot.lane.b32.xlu1 %v902_v16, %s6466_s15 }
 0x911   :  { %v913_v17 = vpop.permute.xlu1 %912 }
 0x912   :  { %5512 = vmatmul.mubr.msk.f32.vlgmr.msra.gmra.mrb[4].mxu1 %vm914_vm5, %v913_v17 }
 0x913   :  { %6064 = vmatpush1.bf16.msra.mxu1 %v6703_v63  ;;  %1275 = vmatprep.mubr.f32.mxu1 %v6462_v52 }
 0x914   :  { %6066 = vmatprep.subr.bf16.mxu1 %v6705_v0 }
 0x917   :  { %6068 = vmatpush1.bf16.msra.mxu1 %v6716_v5 }
 0x918   :  { %5549 = vmatprep.subr.mxu1 %v6462_v52 }
 0x9e5   :  { %v983_v21 = vpop.f32.mrb[4].mxu1 }
 0x9e6   :  { %v984_v23 = vadd.f32 %v983_v21, %v6870_v19  ;;  %v5513_v25 = vpop.f32.mrb[5].mxu1 }
 0x9e8   :  { %vm987_vm6 = vcmp.ge.f32.partialorder %v984_v23, 0.0  ;;  %v988_v29 = vmul.f32 0.2, %v984_v23 }
 0x9ea   :  { %v6873_v31 = vsel %vm987_vm6, %v984_v23, %v988_v29 }
 0x9eb   :  { %v990_v32 = vmul.f32 0.5, %v6873_v31 }
 0x9ed   :  { %v991_v34 = vmul.f32 1.442695, %v990_v32 }
 0x9ef   :  { %6332 = vpow2.f32 %v991_v34 }
 0x9f9   :  { %v6333_v35 = vpop.eup %6332 }
 0x9fa   :  { %v993_v36 = vmul.f32 %v6333_v35, %v6786_v38  ;;  %v1085_v38 = vld [vmem:[%s7760_s3 + $0x60] sm:$0xff] }
 0x9fb   :  { %v6895_v45 = vpack.c.bf16 %v1086_v43, %v1085_v38 }
 0x9fc   :  { %995 = vrot.lane.b32.xlu0 %v993_v36, %s6467_s20 }
 0xa6e   :  { %v996_v37 = vpop.permute.xlu0 %995 }
 0xa6f   :  { %v6879_v40 = vadd.f32 %v996_v37, %v6873_v31 }
 0xa71   :  { %5517 = vmatmul.mubr.msk.f32.vlgmr.msra.gmra.mrb[16].mxu0 %vm822_vm3, %v6879_v40 }
 0xa72   :  { %5535 = vmatprep.mubr.msk.f32.mxu0 %vm6464_vm14, %v6462_v52  ;;  %6051 = vmatpush3.bf16.msra.mxu0 %v6895_v45 }
 0xa73   :  { %6052 = vmatprep.subr.bf16.mxu0 %v7762_v10 }
 0xa76   :  { %6054 = vmatpush3.bf16.msra.mxu0 %v6901_v47 }
 0xa77   :  { %6055 = vmatprep.subr.bf16.mxu0 %v7762_v10 }
 0xa7a   :  { %6057 = vmatpush3.bf16.msra.mxu0 %v6911_v53 }
 0xa7b   :  { %6058 = vmatprep.subr.bf16.mxu0 %v7762_v10 }
 0xa7e   :  { %6060 = vmatpush3.bf16.msra.mxu0 %v6922_v58 }
 0xa7f   :  { %6069 = vmatprep.subr.bf16.mxu0 %v7762_v10 }
 0xb44   :  { %v1069_v41 = vpop.f32.mrb[16].mxu0 }
 0xb45   :  { %1074 = vrot.lane.b32.xlu1 %v1069_v41, %s6466_s15  ;;  %v5518_v42 = vpop.f32.mrb[17].mxu0 }
 0xbb7   :  { %v1075_v61 = vpop.permute.xlu1 %1074 }
 0xbb8   :  { %v1077_v1 = vadd.f32 %v1075_v61, %v6761_v27  ;;  %v1078_v2 = vadd.f32 %v1075_v61, %v6928_v59 }
 0xbba   :  { %vm1079_vm7 = vcmp.ge.f32.partialorder %v1077_v1, 0.0  ;;  %v1081_v3 = vmul.f32 0.2, %v1077_v1  ;;  %v1082_v7 = vmul.f32 0.2, %v1078_v2  ;;  %vm1080_vm8 = vcmp.ge.f32.partialorder %v1078_v2, 0.0 }
 0xbbc   :  { %v1083_v6 = vsel %vm1079_vm7, %v1077_v1, %v1081_v3  ;;  %v1084_v8 = vsel %vm1080_vm8, %v1078_v2, %v1082_v7  ;;  %vm4847_vm8 = vcmask 1043456  }
 0xbbd   :  { %1095 = vrot.lane.b32.xlu1 %v1083_v6, %s6465_s10 }
 0xbc1   :  { %1097 = vrot.lane.b32.xlu1 %v1084_v8, %s6465_s10 }
 0xbc5   :  { %1102 = vrot.lane.b32.xlu1 %v6763_v28, %s6465_s10 }
 0xbc9   :  { %1104 = vrot.lane.b32.xlu1 %v6769_v30, %s6465_s10  ;;  %v6949_v30 = vld [vmem:[%s7760_s3 + $0x1c3] ss:$0 sm:$0xff] }
 0xc2f   :  { %v1096_v20 = vpop.permute.xlu1 %1095 }
 0xc33   :  { %v1098_v22 = vpop.permute.xlu1 %1097 }
 0xc34   :  { %v1099_v12 = vsel %vm441_vm10, %v1096_v20, %v1098_v22  ;;  %v1205_v22 = vld [vmem:[%s7758_s1 + $0x2] sm:$0x3] }
 0xc35   :  { %5536 = vmatmul.mubr.msk.f32.vlgmr.msra.gmra.mrb[18].mxu0 %vm914_vm5, %v1099_v12 }
 0xc36   :  { %6071 = vmatpush3.bf16.msra.mxu0 %v6729_v9  ;;  %5546 = vmatprep.mubr.msk.f32.mxu0 %vm6464_vm14, %v6462_v52 }
 0xc37   :  { %6072 = vmatprep.subr.bf16.mxu0 %v7762_v10  ;;  %v1103_v28 = vpop.permute.xlu1 %1102 }
 0xc3a   :  { %6074 = vmatpush3.bf16.msra.mxu0 %v6741_v13 }
 0xc3b   :  { %5573 = vmatprep.subr.mxu0 %v6462_v52  ;;  %v1105_v14 = vpop.permute.xlu1 %1104 }
 0xc3c   :  { %v1106_v15 = vsel %vm441_vm10, %v1103_v28, %v1105_v14 }
 0xd08   :  { %v1176_v16 = vpop.f32.mrb[18].mxu0 }
 0xd09   :  { %v1177_v17 = vadd.f32 %v1176_v16, %v1106_v15  ;;  %v5537_v21 = vpop.f32.mrb[19].mxu0 }
 0xd0b   :  { %v1180_v23 = vadd.f32 %v1177_v17, %v6949_v30 }
 0xd0d   :  { %6334 = vtanh.f32 %v1180_v23  ;;  %v5064_v29 = vmul.f32 -1.442695, %v1180_v23 }
 0xd0f   :  { %6336 = vpow2.f32 %v5064_v29 }
 0xd17   :  { %v6335_v25 = vpop.eup %6334 }
 0xd18   :  { %1190 = vrot.lane.b32.xlu1 %v6335_v25, %s6468_s12 }
 0xd19   :  { %v6337_v32 = vpop.eup %6336 }
 0xd1a   :  { %v1184_v34 = vadd.f32 1.0, %v6337_v32 }
 0xd1c   :  { %6338 = vrcp.f32 %v1184_v34 }
 0xd26   :  { %v6339_v35 = vpop.eup %6338 }
 0xd27   :  { %v1188_v41 = vmul.f32 0.0, %v6339_v35 }
 0xd8a   :  { %v1191_v36 = vpop.permute.xlu1 %1190 }
 0xd8b   :  { %v1193_v37 = vmul.f32 %v6339_v35, %v1191_v36 }
 0xd8d   :  { %1195 = vrot.lane.b32.xlu0 %v1193_v37, %s6465_s10 }
 0xdff   :  { %v1196_v42 = vpop.permute.xlu0 %1195 }
 0xe00   :  { %v6955_v38 = vadd.f32 %v1196_v42, %v1188_v41 }
 0xe02   :  { %6340 = vtanh.f32 %v6955_v38 }
 0xe0c   :  { %v6341_v43 = vpop.eup %6340 }
 0xe0d   :  { %1201 = vrot.lane.b32.xlu1 %v6341_v43, %s6468_s12 }
 0xe7f   :  { %v1202_v44 = vpop.permute.xlu1 %1201 }
 0xe80   :  { %v6959_v46 = vmul.f32 %v6339_v35, %v1202_v44 }
 0xe82   :  { %1207 = vrot.lane.b32.xlu0 %v6959_v46, %s6465_s10 }
 0xef4   :  { %v1208_v48 = vpop.permute.xlu0 %1207 }
 0xef5   :  { %5065 = vmatmul.mubr.msk.f32.vlgmr.msra.gmra.mrb[6].mxu1 %vm441_vm10, %v1208_v48 }
 0xef6   :  { %5550 = vmatpush3.msra.mxu1 %v6799_v50  ;;  %5551 = vmatprep.mubr.msk.f32.mxu1 %vm6464_vm14, %v6462_v52 }
 0xef7   :  { %6075 = vmatprep.subr.bf16.mxu1 %v7762_v10 }
 0xfc8   :  { %v6968_v49 = vpop.f32.mrb[6].mxu1 }
 0xfc9   :  { %v1283_v54 = vrot.slane %v6968_v49, 6  ;;  %v6971_v57 = vpop.f32.mrb[7].mxu1 }
 0xfcb   :  { %v1285_v61 = vadd.f32 %v1283_v54, %v6761_v27 }
 0xfcd   :  { %vm1286_vm9 = vcmp.ge.f32.partialorder %v1285_v61, 0.0  ;;  %v1287_v1 = vmul.f32 0.2, %v1285_v61 }
 0xfcf   :  { %v1288_v2 = vsel %vm1286_vm9, %v1285_v61, %v1287_v1 }
 0xfd0   :  { %v1290_v3 = vrot.slane %v1288_v2, 2 }
 0xfd2   :  { %5547 = vmatmul.mubr.msk.f32.vlgmr.msra.gmra.mrb[20].mxu0 %vm441_vm10, %v1290_v3 }
 0xfd3   :  { %5574 = vmatpush3.msra.mxu0 %v6863_v18  ;;  %5575 = vmatprep.mubr.msk.f32.mxu0 %vm6464_vm14, %v6462_v52 }
 0xfd4   :  { %6087 = vmatprep.subr.bf16.mxu0 %v7762_v10 }
0x10a5   :  { %v1359_v6 = vpop.f32.mrb[20].mxu0 }
0x10a6   :  { %v1360_v7 = vadd.f32 %v1359_v6, %v6780_v33  ;;  %v5548_v8 = vpop.f32.mrb[21].mxu0 }
0x10a8   :  { %vm1363_vm11 = vcmp.ge.f32.partialorder %v1360_v7, 0.0  ;;  %v1364_v20 = vmul.f32 0.2, %v1360_v7 }
0x10aa   :  { %v6983_v12 = vsel %vm1363_vm11, %v1360_v7, %v1364_v20 }
0x10ab   :  { %v1366_v28 = vadd.f32 %v6983_v12, %v1205_v22 }
0x10ad   :  { %v1367_v14 = vmul.f32 2.0, %v1366_v28 }
0x10af   :  { %v1369_v15 = vrot.slane %v1367_v14, 6 }
0x10b1   :  { %v1371_v16 = vsel %vm805_vm1, %v6983_v12, %v1369_v15 }
0x10b2   :  { %v1372_v17 = vsel %vm807_vm2, %v1371_v16, -inf }
0x10b3   :  { %1373 = vmax.xlane.f32.xlu1 %v1372_v17 }
0x1140   :  { %v1374_v21 = vpop.xlane.xlu1 %1373 }
0x1141   :  { %v1375_v23 = vsub.f32 %v1371_v16, %v1374_v21 }
0x1143   :  { %v1376_v25 = vmul.f32 1.442695, %v1375_v23 }
0x1145   :  { %6342 = vpow2.f32 %v1376_v25 }
0x114f   :  { %v6343_v29 = vpop.eup %6342 }
0x1150   :  { %v1378_v32 = vsel %vm807_vm2, %v6343_v29, 0.0 }
0x1151   :  { %1379 = vadd.xlane.f32.xlu0 %v1378_v32 }
0x11de   :  { %v1380_v34 = vpop.xlane.xlu0 %1379 }
0x11df   :  { %6344 = vrcp.f32 %v1380_v34 }
0x11e9   :  { %v6345_v35 = vpop.eup %6344 }
0x11ea   :  { %v6990_v36 = vmul.f32 %v6345_v35, %v6343_v29 }
0x11ec   :  { %v1384_v37 = vrot.slane %v6990_v36, 2 }
0x11ee   :  { %5552 = vmatmul.mubr.msk.f32.vlgmr.msra.gmra.mrb[8].mxu1 %vm822_vm3, %v1384_v37 }
0x11ef   :  { %6077 = vmatpush3.bf16.msra.mxu1 %v6820_v60  ;;  %5570 = vmatprep.mubr.msk.f32.mxu1 %vm6464_vm14, %v6462_v52 }
0x11f0   :  { %6078 = vmatprep.subr.bf16.mxu1 %v7762_v10 }
0x11f3   :  { %6080 = vmatpush3.bf16.msra.mxu1 %v6826_v62 }
0x11f4   :  { %6081 = vmatprep.subr.bf16.mxu1 %v7762_v10 }
0x11f7   :  { %6083 = vmatpush3.bf16.msra.mxu1 %v6836_v4 }
0x11f8   :  { %6084 = vmatprep.subr.bf16.mxu1 %v7762_v10 }
0x11fb   :  { %6086 = vmatpush3.bf16.msra.mxu1 %v6847_v11 }
0x11fc   :  { %6100 = vmatprep.subr.bf16.mxu1 %v6684_v51 }
0x12c1   :  { %v1453_v41 = vpop.f32.mrb[8].mxu1 }
0x12c2   :  { %v1458_v42 = vrot.slane %v1453_v41, 6  ;;  %v5553_v43 = vpop.f32.mrb[9].mxu1 }
0x12c4   :  { %1459 = vrot.lane.b32.xlu0 %v1458_v42, %s6465_s10 }
0x1336   :  { %v1460_v44 = vpop.permute.xlu0 %1459 }
0x1337   :  { %v1462_v48 = vadd.f32 %v1460_v44, %v1285_v61 }
0x1339   :  { %vm1463_vm13 = vcmp.ge.f32.partialorder %v1462_v48, 0.0  ;;  %v1464_v54 = vmul.f32 0.2, %v1462_v48 }
0x133b   :  { %v1465_v1 = vsel %vm1463_vm13, %v1462_v48, %v1464_v54 }
0x133c   :  { %v1467_v2 = vrot.slane %v1465_v1, 2 }
0x133e   :  { %1468 = vrot.lane.b32.xlu1 %v1467_v2, %s6466_s15 }
0x13b0   :  { %v1469_v3 = vpop.permute.xlu1 %1468 }
0x13b1   :  { %5571 = vmatmul.mubr.msk.f32.vlgmr.msra.gmra.mrb[10].mxu1 %vm914_vm5, %v1469_v3 }
0x13b2   :  { %6102 = vmatpush1.bf16.msra.mxu1 %v6703_v63  ;;  %1823 = vmatprep.mubr.f32.mxu1 %v6462_v52 }
0x13b3   :  { %6104 = vmatprep.subr.bf16.mxu1 %v6705_v0 }
0x13b6   :  { %6106 = vmatpush1.bf16.msra.mxu1 %v6716_v5 }
0x13b7   :  { %5608 = vmatprep.subr.mxu1 %v6462_v52 }
0x1484   :  { %v1538_v61 = vpop.f32.mrb[10].mxu1 }
0x1485   :  { %v1539_v6 = vadd.f32 %v1538_v61, %v6870_v19  ;;  %v5572_v7 = vpop.f32.mrb[11].mxu1 }
0x1487   :  { %vm1542_vm15 = vcmp.ge.f32.partialorder %v1539_v6, 0.0  ;;  %v1543_v8 = vmul.f32 0.2, %v1539_v6 }
0x1489   :  { %v7013_v20 = vsel %vm1542_vm15, %v1539_v6, %v1543_v8 }
0x148a   :  { %v1545_v28 = vmul.f32 0.5, %v7013_v20 }
0x148c   :  { %v1546_v14 = vmul.f32 1.442695, %v1545_v28 }
0x148e   :  { %6346 = vpow2.f32 %v1546_v14 }
0x1498   :  { %v6347_v15 = vpop.eup %6346 }
0x1499   :  { %v1548_v16 = vmul.f32 %v6347_v15, %v1205_v22 }
0x149b   :  { %1550 = vrot.lane.b32.xlu1 %v1548_v16, %s6467_s20 }
0x150d   :  { %v1551_v17 = vpop.permute.xlu1 %1550 }
0x150e   :  { %v7018_v21 = vadd.f32 %v1551_v17, %v7013_v20 }
0x1510   :  { %5576 = vmatmul.mubr.msk.f32.vlgmr.msra.gmra.mrb[22].mxu0 %vm822_vm3, %v7018_v21 }
0x1511   :  { %6089 = vmatpush3.bf16.msra.mxu0 %v6895_v45  ;;  %5594 = vmatprep.mubr.msk.f32.mxu0 %vm6464_vm14, %v6462_v52 }
0x1512   :  { %6090 = vmatprep.subr.bf16.mxu0 %v7762_v10 }
0x1515   :  { %6092 = vmatpush3.bf16.msra.mxu0 %v6901_v47 }
0x1516   :  { %6093 = vmatprep.subr.bf16.mxu0 %v7762_v10 }
0x1519   :  { %6095 = vmatpush3.bf16.msra.mxu0 %v6911_v53 }
0x151a   :  { %6096 = vmatprep.subr.bf16.mxu0 %v7762_v10 }
0x151d   :  { %6098 = vmatpush3.bf16.msra.mxu0 %v6922_v58 }
0x151e   :  { %6107 = vmatprep.subr.bf16.mxu0 %v7762_v10 }
0x15e3   :  { %v1623_v22 = vpop.f32.mrb[22].mxu0 }
0x15e4   :  { %v1628_v23 = vrot.slane %v1623_v22, 6  ;;  %v5577_v25 = vpop.f32.mrb[23].mxu0 }
0x15e6   :  { %1629 = vrot.lane.b32.xlu0 %v1628_v23, %s6466_s15 }
0x1658   :  { %v1630_v29 = vpop.permute.xlu0 %1629 }
0x1659   :  { %v1632_v32 = vadd.f32 %v1630_v29, %v6761_v27  ;;  %v1633_v34 = vadd.f32 %v1630_v29, %v6928_v59 }
0x165b   :  { %v1636_v35 = vmul.f32 0.2, %v1632_v32  ;;  %v1637_v37 = vmul.f32 0.2, %v1633_v34  ;;  %vm1635_vm0 = vcmp.ge.f32.partialorder %v1633_v34, 0.0  ;;  %vm1634_vm4 = vcmp.ge.f32.partialorder %v1632_v32, 0.0 }
0x165d   :  { %v1639_v41 = vsel %vm1635_vm0, %v1633_v34, %v1637_v37  ;;  %v1638_v42 = vsel %vm1634_vm4, %v1632_v32, %v1636_v35 }
0x165e   :  { %v1643_v43 = vrot.slane %v1639_v41, 2  ;;  %v1642_v44 = vrot.slane %v1638_v42, 2 }
0x1660   :  { %1646 = vrot.lane.b32.xlu0 %v1643_v43, %s6465_s10  ;;  %1644 = vrot.lane.b32.xlu1 %v1642_v44, %s6465_s10 }
0x1664   :  { %1652 = vrot.lane.b32.xlu0 %v6971_v57, %s6465_s10  ;;  %1650 = vrot.lane.b32.xlu1 %v6968_v49, %s6465_s10 }
0x16d2   :  { %v1647_v48 = vpop.permute.xlu0 %1646  ;;  %v1645_v54 = vpop.permute.xlu1 %1644 }
0x16d3   :  { %v1648_v1 = vsel %vm441_vm10, %v1645_v54, %v1647_v48 }
0x16d4   :  { %5595 = vmatmul.mubr.msk.f32.vlgmr.msra.gmra.mrb[24].mxu0 %vm914_vm5, %v1648_v1 }
0x16d5   :  { %6109 = vmatpush3.bf16.msra.mxu0 %v6729_v9  ;;  %5605 = vmatprep.mubr.msk.f32.mxu0 %vm6464_vm14, %v6462_v52 }
0x16d6   :  { %6110 = vmatprep.subr.bf16.mxu0 %v7762_v10  ;;  %v1653_v57 = vpop.permute.xlu0 %1652  ;;  %v1651_v2 = vpop.permute.xlu1 %1650 }
0x16d7   :  { %v1654_v49 = vsel %vm441_vm10, %v1651_v2, %v1653_v57 }
0x16d9   :  { %6112 = vmatpush3.bf16.msra.mxu0 %v6741_v13 }
0x16da   :  { %5632 = vmatprep.subr.mxu0 %v6462_v52 }
0x17a7   :  { %v1724_v3 = vpop.f32.mrb[24].mxu0 }
0x17a8   :  { %v1725_v61 = vadd.f32 %v1724_v3, %v1654_v49  ;;  %v5596_v6 = vpop.f32.mrb[25].mxu0  ;;  %v4926_v49 = vrot.slane %v6983_v12, 6 }
0x17aa   :  { %v1728_v7 = vadd.f32 %v1725_v61, %v6949_v30  ;;  %v7083_v61 = vld [vmem:[%s7758_s1 + $0x4] sm:$0x3] }
0x17ac   :  { %6348 = vtanh.f32 %v1728_v7  ;;  %v5071_v28 = vmul.f32 -1.442695, %v1728_v7 }
0x17ae   :  { %6350 = vpow2.f32 %v5071_v28  ;;  %v4943_v28 = vsel %vm805_vm1, %v6788_v39, %v4926_v49 }
0x17b6   :  { %v6349_v8 = vpop.eup %6348 }
0x17b7   :  { %1738 = vrot.lane.b32.xlu1 %v6349_v8, %s6468_s12 }
0x17b8   :  { %v6351_v14 = vpop.eup %6350 }
0x17b9   :  { %v1732_v15 = vadd.f32 1.0, %v6351_v14 }
0x17bb   :  { %6352 = vrcp.f32 %v1732_v15 }
0x17c5   :  { %v6353_v16 = vpop.eup %6352 }
0x17c6   :  { %v1736_v23 = vmul.f32 %v6353_v16, %v6955_v38 }
0x1829   :  { %v1739_v17 = vpop.permute.xlu1 %1738 }
0x182a   :  { %v1741_v22 = vmul.f32 %v6353_v16, %v1739_v17 }
0x182c   :  { %1743 = vrot.lane.b32.xlu0 %v1741_v22, %s6465_s10 }
0x189e   :  { %v1744_v25 = vpop.permute.xlu0 %1743 }
0x189f   :  { %v7054_v29 = vadd.f32 %v1744_v25, %v1736_v23 }
0x18a1   :  { %6354 = vtanh.f32 %v7054_v29 }
0x18ab   :  { %v6355_v32 = vpop.eup %6354 }
0x18ac   :  { %1749 = vrot.lane.b32.xlu1 %v6355_v32, %s6468_s12 }
0x191e   :  { %v1750_v34 = vpop.permute.xlu1 %1749 }
0x191f   :  { %v7058_v35 = vmul.f32 %v6353_v16, %v1750_v34 }
0x1921   :  { %1755 = vrot.lane.b32.xlu0 %v7058_v35, %s6465_s10 }
0x1993   :  { %v1756_v37 = vpop.permute.xlu0 %1755 }
0x1994   :  { %5072 = vmatmul.mubr.msk.f32.vlgmr.msra.gmra.mrb[12].mxu1 %vm441_vm10, %v1756_v37 }
0x1995   :  { %5609 = vmatpush3.msra.mxu1 %v6799_v50  ;;  %5610 = vmatprep.mubr.msk.f32.mxu1 %vm6464_vm14, %v6462_v52 }
0x1996   :  { %6113 = vmatprep.subr.bf16.mxu1 %v7762_v10 }
0x1a67   :  { %v7067_v38 = vpop.f32.mrb[12].mxu1 }
0x1a68   :  { %v1831_v41 = vrot.slane %v7067_v38, 4  ;;  %v7070_v42 = vpop.f32.mrb[13].mxu1 }
0x1a6a   :  { %v1833_v43 = vadd.f32 %v1831_v41, %v6761_v27  ;;  %v4949_v41 = vrot.slane %v6990_v36, 6 }
0x1a6c   :  { %vm1834_vm6 = vcmp.ge.f32.partialorder %v1833_v43, 0.0  ;;  %v1835_v44 = vmul.f32 0.2, %v1833_v43 }
0x1a6e   :  { %v1836_v48 = vsel %vm1834_vm6, %v1833_v43, %v1835_v44  ;;  %vm4849_vm6 = vcmask 1045504  }
0x1a6f   :  { %v1838_v54 = vrot.slane %v1836_v48, 4 }
0x1a71   :  { %5606 = vmatmul.mubr.msk.f32.vlgmr.msra.gmra.mrb[26].mxu0 %vm441_vm10, %v1838_v54 }
0x1a72   :  { %5633 = vmatpush3.msra.mxu0 %v6863_v18  ;;  %5634 = vmatprep.mubr.msk.f32.mxu0 %vm6464_vm14, %v6462_v52 }
0x1a73   :  { %6125 = vmatprep.subr.bf16.mxu0 %v7762_v10 }
0x1b44   :  { %v1907_v1 = vpop.f32.mrb[26].mxu0 }
0x1b45   :  { %v1908_v57 = vadd.f32 %v1907_v1, %v6780_v33  ;;  %v5607_v2 = vpop.f32.mrb[27].mxu0 }
0x1b46   :  { %v4959_v2 = vsel %vm805_vm1, %v6803_v55, %v4949_v41 }
0x1b47   :  { %vm1911_vm7 = vcmp.ge.f32.partialorder %v1908_v57, 0.0  ;;  %v1912_v3 = vmul.f32 0.2, %v1908_v57 }
0x1b49   :  { %v1913_v6 = vsel %vm1911_vm7, %v1908_v57, %v1912_v3  ;;  %v4919_v57 = vsel %vm805_vm1, %v821_v56, %v6990_v36 }
0x1b4a   :  { %v1914_v7 = vadd.f32 %v1913_v6, %v7083_v61  ;;  %v4929_v8 = vrot.slane %v1913_v6, 4 }
0x1b4c   :  { %v1915_v14 = vmul.f32 2.0, %v1914_v7  ;;  %v7089_v15 = vsel %vm4847_vm8, %v4943_v28, %v4929_v8 }
0x1b4e   :  { %v1917_v12 = vrot.slane %v1915_v14, 6 }
0x1b50   :  { %v1919_v16 = vsel %vm805_vm1, %v1913_v6, %v1917_v12 }
0x1b51   :  { %v1920_v17 = vsel %vm807_vm2, %v1919_v16, -inf }
0x1b52   :  { %1921 = vmax.xlane.f32.xlu1 %v1920_v17 }
0x1bdf   :  { %v1922_v22 = vpop.xlane.xlu1 %1921 }
0x1be0   :  { %v1923_v23 = vsub.f32 %v1919_v16, %v1922_v22 }
0x1be2   :  { %v1924_v25 = vmul.f32 1.442695, %v1923_v23 }
0x1be4   :  { %6356 = vpow2.f32 %v1924_v25 }
0x1bee   :  { %v6357_v32 = vpop.eup %6356 }
0x1bef   :  { %v1926_v34 = vsel %vm807_vm2, %v6357_v32, 0.0 }
0x1bf0   :  { %1927 = vadd.xlane.f32.xlu0 %v1926_v34 }
0x1c7d   :  { %v1928_v37 = vpop.xlane.xlu0 %1927 }
0x1c7e   :  { %6358 = vrcp.f32 %v1928_v37 }
0x1c88   :  { %v6359_v39 = vpop.eup %6358 }
0x1c89   :  { %v1930_v44 = vmul.f32 %v6359_v39, %v6357_v32  ;;  %v4833_v39 = vrot.slane %v7018_v21, 6 }
0x1c8b   :  { %v1932_v48 = vrot.slane %v1930_v44, 2  ;;  %v4910_v54 = vrot.slane %v1930_v44, 6  ;;  %v4951_v1 = vrot.slane %v1930_v44, 4 }
0x1c8d   :  { %5611 = vmatmul.mubr.msk.f32.vlgmr.msra.gmra.mrb[14].mxu1 %vm822_vm3, %v1932_v48  ;;  %v7103_v49 = vsel %vm4847_vm8, %v4919_v57, %v4910_v54  ;;  %v7106_v3 = vsel %vm4847_vm8, %v4959_v2, %v4951_v1  ;;  %v4846_v54 = vsel %vm805_vm1, %v6879_v40, %v4833_v39 }
0x1c8e   :  { %6115 = vmatpush3.bf16.msra.mxu1 %v6820_v60  ;;  %5629 = vmatprep.mubr.msk.f32.mxu1 %vm6464_vm14, %v6462_v52 }
0x1c8f   :  { %6116 = vmatprep.subr.bf16.mxu1 %v7762_v10 }
0x1c92   :  { %6118 = vmatpush3.bf16.msra.mxu1 %v6826_v62 }
0x1c93   :  { %6119 = vmatprep.subr.bf16.mxu1 %v7762_v10 }
0x1c96   :  { %6121 = vmatpush3.bf16.msra.mxu1 %v6836_v4 }
0x1c97   :  { %6122 = vmatprep.subr.bf16.mxu1 %v7762_v10 }
0x1c9a   :  { %6124 = vmatpush3.bf16.msra.mxu1 %v6847_v11 }
0x1c9b   :  { %6138 = vmatprep.subr.bf16.mxu1 %v6684_v51 }
0x1d60   :  { %v2001_v55 = vpop.f32.mrb[14].mxu1 }
0x1d61   :  { %v2006_v56 = vrot.slane %v2001_v55, 4  ;;  %v5612_v36 = vpop.f32.mrb[15].mxu1 }
0x1d63   :  { %2007 = vrot.lane.b32.xlu0 %v2006_v56, %s6465_s10 }
0x1dd5   :  { %v2008_v6 = vpop.permute.xlu0 %2007 }
0x1dd6   :  { %v2010_v7 = vadd.f32 %v2008_v6, %v1833_v43 }
0x1dd8   :  { %vm2011_vm9 = vcmp.ge.f32.partialorder %v2010_v7, 0.0  ;;  %v2012_v8 = vmul.f32 0.2, %v2010_v7 }
0x1dda   :  { %v2013_v28 = vsel %vm2011_vm9, %v2010_v7, %v2012_v8 }
0x1ddb   :  { %v2015_v14 = vrot.slane %v2013_v28, 4 }
0x1ddd   :  { %2016 = vrot.lane.b32.xlu1 %v2015_v14, %s6466_s15 }
0x1e4f   :  { %v2017_v12 = vpop.permute.xlu1 %2016 }
0x1e50   :  { %5630 = vmatmul.mubr.msk.f32.vlgmr.msra.gmra.mrb[16].mxu1 %vm914_vm5, %v2017_v12 }
0x1e51   :  { %6140 = vmatpush1.bf16.msra.mxu1 %v6703_v63  ;;  %2371 = vmatprep.mubr.f32.mxu1 %v6462_v52 }
0x1e52   :  { %6142 = vmatprep.subr.bf16.mxu1 %v6705_v0 }
0x1e55   :  { %6144 = vmatpush1.bf16.msra.mxu1 %v6716_v5 }
0x1e56   :  { %5667 = vmatprep.subr.mxu1 %v6462_v52 }
0x1f23   :  { %v2086_v43 = vpop.f32.mrb[16].mxu1 }
0x1f24   :  { %v2087_v16 = vadd.f32 %v2086_v43, %v6870_v19  ;;  %v5631_v17 = vpop.f32.mrb[17].mxu1 }
0x1f26   :  { %vm2090_vm11 = vcmp.ge.f32.partialorder %v2087_v16, 0.0  ;;  %v2091_v22 = vmul.f32 0.2, %v2087_v16 }
0x1f28   :  { %v7127_v23 = vsel %vm2090_vm11, %v2087_v16, %v2091_v22 }
0x1f29   :  { %v2093_v25 = vmul.f32 0.5, %v7127_v23 }
0x1f2b   :  { %v2094_v32 = vmul.f32 1.442695, %v2093_v25 }
0x1f2d   :  { %6360 = vpow2.f32 %v2094_v32 }
0x1f37   :  { %v6361_v34 = vpop.eup %6360 }
0x1f38   :  { %v2096_v37 = vmul.f32 %v6361_v34, %v7083_v61 }
0x1f3a   :  { %2098 = vrot.lane.b32.xlu1 %v2096_v37, %s6467_s20 }
0x1fac   :  { %v2099_v41 = vpop.permute.xlu1 %2098 }
0x1fad   :  { %v2101_v44 = vadd.f32 %v2099_v41, %v7127_v23 }
0x1faf   :  { %v4835_v48 = vrot.slane %v2101_v44, 4  ;;  %5635 = vmatmul.mubr.msk.f32.vlgmr.msra.gmra.mrb[28].mxu0 %vm822_vm3, %v2101_v44 }
0x1fb0   :  { %6127 = vmatpush3.bf16.msra.mxu0 %v6895_v45  ;;  %5653 = vmatprep.mubr.msk.f32.mxu0 %vm6464_vm14, %v6462_v52 }
0x1fb1   :  { %6128 = vmatprep.subr.bf16.mxu0 %v7762_v10  ;;  %v7142_v61 = vsel %vm4847_vm8, %v4846_v54, %v4835_v48 }
0x1fb4   :  { %6130 = vmatpush3.bf16.msra.mxu0 %v6901_v47 }
0x1fb5   :  { %6131 = vmatprep.subr.bf16.mxu0 %v7762_v10 }
0x1fb8   :  { %6133 = vmatpush3.bf16.msra.mxu0 %v6911_v53 }
0x1fb9   :  { %6134 = vmatprep.subr.bf16.mxu0 %v7762_v10 }
0x1fbc   :  { %6136 = vmatpush3.bf16.msra.mxu0 %v6922_v58 }
0x1fbd   :  { %6145 = vmatprep.subr.bf16.mxu0 %v7762_v10 }
0x2082   :  { %v2171_v40 = vpop.f32.mrb[28].mxu0 }
0x2083   :  { %v2176_v21 = vrot.slane %v2171_v40, 4  ;;  %v5636_v1 = vpop.f32.mrb[29].mxu0 }
0x2085   :  { %2177 = vrot.lane.b32.xlu0 %v2176_v21, %s6466_s15 }
0x20f7   :  { %v2178_v57 = vpop.permute.xlu0 %2177 }
0x20f8   :  { %v2180_v2 = vadd.f32 %v2178_v57, %v6761_v27  ;;  %v2181_v55 = vadd.f32 %v2178_v57, %v6928_v59 }
0x20fa   :  { %vm2182_vm13 = vcmp.ge.f32.partialorder %v2180_v2, 0.0  ;;  %vm2183_vm15 = vcmp.ge.f32.partialorder %v2181_v55, 0.0  ;;  %v2184_v56 = vmul.f32 0.2, %v2180_v2  ;;  %v2185_v36 = vmul.f32 0.2, %v2181_v55 }
0x20fc   :  { %v2187_v6 = vsel %vm2183_vm15, %v2181_v55, %v2185_v36  ;;  %v2186_v7 = vsel %vm2182_vm13, %v2180_v2, %v2184_v56 }
0x20fd   :  { %v2191_v8 = vrot.slane %v2187_v6, 4  ;;  %v2190_v28 = vrot.slane %v2186_v7, 4 }
0x20ff   :  { %2194 = vrot.lane.b32.xlu0 %v2191_v8, %s6465_s10  ;;  %2192 = vrot.lane.b32.xlu1 %v2190_v28, %s6465_s10 }
0x2103   :  { %2200 = vrot.lane.b32.xlu0 %v7070_v42, %s6465_s10  ;;  %2198 = vrot.lane.b32.xlu1 %v7067_v38, %s6465_s10 }
0x2171   :  { %v2195_v14 = vpop.permute.xlu0 %2194  ;;  %v2193_v12 = vpop.permute.xlu1 %2192 }
0x2172   :  { %v2196_v43 = vsel %vm441_vm10, %v2193_v12, %v2195_v14 }
0x2173   :  { %5654 = vmatmul.mubr.msk.f32.vlgmr.msra.gmra.mrb[30].mxu0 %vm914_vm5, %v2196_v43 }
0x2174   :  { %6147 = vmatpush3.bf16.msra.mxu0 %v6729_v9  ;;  %5664 = vmatprep.mubr.msk.f32.mxu0 %vm6464_vm14, %v6462_v52 }
0x2175   :  { %6148 = vmatprep.subr.bf16.mxu0 %v7762_v10  ;;  %v2201_v42 = vpop.permute.xlu0 %2200  ;;  %v2199_v16 = vpop.permute.xlu1 %2198 }
0x2176   :  { %v2202_v38 = vsel %vm441_vm10, %v2199_v16, %v2201_v42  ;;  %v7200_v16 = vld [vmem:[%s7758_s1 + $0x6] sm:$0x3] }
0x2178   :  { %6150 = vmatpush3.bf16.msra.mxu0 %v6741_v13 }
0x2179   :  { %5691 = vmatprep.subr.mxu0 %v6462_v52 }
0x2246   :  { %v2272_v17 = vpop.f32.mrb[30].mxu0 }
0x2247   :  { %v2273_v22 = vadd.f32 %v2272_v17, %v2202_v38  ;;  %v5655_v25 = vpop.f32.mrb[31].mxu0 }
0x2249   :  { %v2276_v32 = vadd.f32 %v2273_v22, %v6949_v30 }
0x224b   :  { %6362 = vtanh.f32 %v2276_v32  ;;  %v5078_v37 = vmul.f32 -1.442695, %v2276_v32 }
0x224d   :  { %6364 = vpow2.f32 %v5078_v37 }
0x2255   :  { %v6363_v34 = vpop.eup %6362 }
0x2256   :  { %2286 = vrot.lane.b32.xlu1 %v6363_v34, %s6468_s12 }
0x2257   :  { %v6365_v39 = vpop.eup %6364 }
0x2258   :  { %v2280_v41 = vadd.f32 1.0, %v6365_v39 }
0x225a   :  { %6366 = vrcp.f32 %v2280_v41 }
0x2264   :  { %v6367_v44 = vpop.eup %6366 }
0x2265   :  { %v2284_v40 = vmul.f32 %v6367_v44, %v7054_v29 }
0x22c8   :  { %v2287_v48 = vpop.permute.xlu1 %2286 }
0x22c9   :  { %v2289_v54 = vmul.f32 %v6367_v44, %v2287_v48 }
0x22cb   :  { %2291 = vrot.lane.b32.xlu0 %v2289_v54, %s6465_s10 }
0x233d   :  { %v2292_v21 = vpop.permute.xlu0 %2291 }
0x233e   :  { %v7172_v1 = vadd.f32 %v2292_v21, %v2284_v40 }
0x2340   :  { %6368 = vtanh.f32 %v7172_v1 }
0x234a   :  { %v6369_v57 = vpop.eup %6368 }
0x234b   :  { %2297 = vrot.lane.b32.xlu1 %v6369_v57, %s6468_s12 }
0x23bd   :  { %v2298_v2 = vpop.permute.xlu1 %2297 }
0x23be   :  { %v7176_v55 = vmul.f32 %v6367_v44, %v2298_v2 }
0x23c0   :  { %2303 = vrot.lane.b32.xlu0 %v7176_v55, %s6465_s10 }
0x2432   :  { %v2304_v56 = vpop.permute.xlu0 %2303 }
0x2433   :  { %5079 = vmatmul.mubr.msk.f32.vlgmr.msra.gmra.mrb[18].mxu1 %vm441_vm10, %v2304_v56 }
0x2434   :  { %5668 = vmatpush3.msra.mxu1 %v6799_v50  ;;  %5669 = vmatprep.mubr.msk.f32.mxu1 %vm6464_vm14, %v6462_v52 }
0x2435   :  { %6151 = vmatprep.subr.bf16.mxu1 %v7762_v10 }
0x2506   :  { %v7185_v29 = vpop.f32.mrb[18].mxu1 }
0x2507   :  { %v2379_v36 = vrot.slane %v7185_v29, 2  ;;  %v7188_v6 = vpop.f32.mrb[19].mxu1 }
0x2509   :  { %v2381_v7 = vadd.f32 %v2379_v36, %v6761_v27 }
0x250b   :  { %vm2382_vm0 = vcmp.ge.f32.partialorder %v2381_v7, 0.0  ;;  %v2383_v8 = vmul.f32 0.2, %v2381_v7 }
0x250d   :  { %v2384_v28 = vsel %vm2382_vm0, %v2381_v7, %v2383_v8 }
0x250e   :  { %v2386_v14 = vrot.slane %v2384_v28, 6 }
0x2510   :  { %5665 = vmatmul.mubr.msk.f32.vlgmr.msra.gmra.mrb[32].mxu0 %vm441_vm10, %v2386_v14 }
0x2511   :  { %5692 = vmatpush3.msra.mxu0 %v6863_v18  ;;  %5693 = vmatprep.mubr.msk.f32.mxu0 %vm6464_vm14, %v6462_v52 }
0x2512   :  { %6163 = vmatprep.subr.bf16.mxu0 %v7762_v10 }
0x25e3   :  { %v2455_v50 = vpop.f32.mrb[32].mxu0 }
0x25e4   :  { %v2456_v12 = vadd.f32 %v2455_v50, %v6780_v33  ;;  %v5666_v43 = vpop.f32.mrb[33].mxu0 }
0x25e6   :  { %vm2459_vm4 = vcmp.ge.f32.partialorder %v2456_v12, 0.0  ;;  %v2460_v42 = vmul.f32 0.2, %v2456_v12 }
0x25e8   :  { %v2461_v38 = vsel %vm2459_vm4, %v2456_v12, %v2460_v42 }
0x25e9   :  { %v2462_v18 = vadd.f32 %v2461_v38, %v7200_v16  ;;  %v4932_v17 = vrot.slane %v2461_v38, 2 }
0x25eb   :  { %v2463_v22 = vmul.f32 2.0, %v2462_v18  ;;  %v7205_v25 = vsel %vm4849_vm6, %v7089_v15, %v4932_v17 }
0x25ed   :  { %v2465_v32 = vrot.slane %v2463_v22, 6 }
0x25ef   :  { %v2467_v33 = vsel %vm805_vm1, %v2461_v38, %v2465_v32 }
0x25f0   :  { %v2468_v34 = vsel %vm807_vm2, %v2467_v33, -inf }
0x25f1   :  { %2469 = vmax.xlane.f32.xlu1 %v2468_v34 }
0x267e   :  { %v2470_v37 = vpop.xlane.xlu1 %2469 }
0x267f   :  { %v2471_v39 = vsub.f32 %v2467_v33, %v2470_v37 }
0x2681   :  { %v2472_v41 = vmul.f32 1.442695, %v2471_v39 }
0x2683   :  { %6370 = vpow2.f32 %v2472_v41 }
0x268d   :  { %v6371_v44 = vpop.eup %6370 }
0x268e   :  { %v2474_v48 = vsel %vm807_vm2, %v6371_v44, 0.0 }
0x268f   :  { %2475 = vadd.xlane.f32.xlu0 %v2474_v48 }
0x271c   :  { %v2476_v54 = vpop.xlane.xlu0 %2475 }
0x271d   :  { %6372 = vrcp.f32 %v2476_v54 }
0x2727   :  { %v6373_v40 = vpop.eup %6372 }
0x2728   :  { %v2478_v21 = vmul.f32 %v6373_v40, %v6371_v44 }
0x272a   :  { %v2480_v15 = vrot.slane %v2478_v21, 2  ;;  %v4912_v57 = vrot.slane %v2478_v21, 4 }
0x272c   :  { %5670 = vmatmul.mubr.msk.f32.vlgmr.msra.gmra.mrb[20].mxu1 %vm822_vm3, %v2480_v15  ;;  %v7213_v2 = vsel %vm4849_vm6, %v7103_v49, %v4912_v57  ;;  %v7217_v56 = vsel %vm4849_vm6, %v7106_v3, %v2480_v15 }
0x272d   :  { %6153 = vmatpush3.bf16.msra.mxu1 %v6820_v60  ;;  %5688 = vmatprep.mubr.msk.f32.mxu1 %vm6464_vm14, %v6462_v52 }
0x272e   :  { %6154 = vmatprep.subr.bf16.mxu1 %v7762_v10 }
0x2731   :  { %6156 = vmatpush3.bf16.msra.mxu1 %v6826_v62 }
0x2732   :  { %6157 = vmatprep.subr.bf16.mxu1 %v7762_v10 }
0x2735   :  { %6159 = vmatpush3.bf16.msra.mxu1 %v6836_v4 }
0x2736   :  { %6160 = vmatprep.subr.bf16.mxu1 %v7762_v10 }
0x2739   :  { %6162 = vmatpush3.bf16.msra.mxu1 %v6847_v11 }
0x273a   :  { %6176 = vmatprep.subr.bf16.mxu1 %v6684_v51 }
0x27ff   :  { %v2549_v49 = vpop.f32.mrb[20].mxu1 }
0x2800   :  { %v2554_v3 = vrot.slane %v2549_v49, 2  ;;  %v5671_v36 = vpop.f32.mrb[21].mxu1 }
0x2802   :  { %2555 = vrot.lane.b32.xlu0 %v2554_v3, %s6465_s10 }
0x2874   :  { %v2556_v8 = vpop.permute.xlu0 %2555 }
0x2875   :  { %v2558_v28 = vadd.f32 %v2556_v8, %v2381_v7 }
0x2877   :  { %vm2559_vm7 = vcmp.ge.f32.partialorder %v2558_v28, 0.0  ;;  %v2560_v14 = vmul.f32 0.2, %v2558_v28 }
0x2879   :  { %v2561_v50 = vsel %vm2559_vm7, %v2558_v28, %v2560_v14 }
0x287a   :  { %v2563_v12 = vrot.slane %v2561_v50, 6 }
0x287c   :  { %2564 = vrot.lane.b32.xlu1 %v2563_v12, %s6466_s15 }
0x28ee   :  { %v2565_v43 = vpop.permute.xlu1 %2564 }
0x28ef   :  { %5689 = vmatmul.mubr.msk.f32.vlgmr.msra.gmra.mrb[22].mxu1 %vm914_vm5, %v2565_v43 }
0x28f0   :  { %6178 = vmatpush1.bf16.msra.mxu1 %v6703_v63  ;;  %2919 = vmatprep.mubr.f32.mxu1 %v6462_v52 }
0x28f1   :  { %6180 = vmatprep.subr.bf16.mxu1 %v6705_v0 }
0x28f4   :  { %6182 = vmatpush1.bf16.msra.mxu1 %v6716_v5 }
0x28f5   :  { %5726 = vmatprep.subr.mxu1 %v6462_v52 }
0x29c2   :  { %v2634_v7 = vpop.f32.mrb[22].mxu1 }
0x29c3   :  { %v2635_v42 = vadd.f32 %v2634_v7, %v6870_v19  ;;  %v5690_v38 = vpop.f32.mrb[23].mxu1 }
0x29c5   :  { %vm2638_vm9 = vcmp.ge.f32.partialorder %v2635_v42, 0.0  ;;  %v2639_v18 = vmul.f32 0.2, %v2635_v42 }
0x29c7   :  { %v7238_v17 = vsel %vm2638_vm9, %v2635_v42, %v2639_v18 }
0x29c8   :  { %v2641_v22 = vmul.f32 0.5, %v7238_v17 }
0x29ca   :  { %v2642_v32 = vmul.f32 1.442695, %v2641_v22 }
0x29cc   :  { %6374 = vpow2.f32 %v2642_v32 }
0x29d6   :  { %v6375_v33 = vpop.eup %6374 }
0x29d7   :  { %v2644_v34 = vmul.f32 %v6375_v33, %v7200_v16 }
0x29d9   :  { %2646 = vrot.lane.b32.xlu1 %v2644_v34, %s6467_s20 }
0x2a4b   :  { %v2647_v37 = vpop.permute.xlu1 %2646 }
0x2a4c   :  { %v2649_v39 = vadd.f32 %v2647_v37, %v7238_v17 }
0x2a4e   :  { %v4837_v41 = vrot.slane %v2649_v39, 2  ;;  %5694 = vmatmul.mubr.msk.f32.vlgmr.msra.gmra.mrb[34].mxu0 %vm822_vm3, %v2649_v39 }
0x2a4f   :  { %6165 = vmatpush3.bf16.msra.mxu0 %v6895_v45  ;;  %5712 = vmatprep.mubr.msk.f32.mxu0 %vm6464_vm14, %v6462_v52 }
0x2a50   :  { %6166 = vmatprep.subr.bf16.mxu0 %v7762_v10  ;;  %v7251_v19 = vsel %vm4849_vm6, %v7142_v61, %v4837_v41 }
0x2a53   :  { %6168 = vmatpush3.bf16.msra.mxu0 %v6901_v47 }
0x2a54   :  { %6169 = vmatprep.subr.bf16.mxu0 %v7762_v10 }
0x2a57   :  { %6171 = vmatpush3.bf16.msra.mxu0 %v6911_v53 }
0x2a58   :  { %6172 = vmatprep.subr.bf16.mxu0 %v7762_v10 }
0x2a5b   :  { %6174 = vmatpush3.bf16.msra.mxu0 %v6922_v58 }
0x2a5c   :  { %6183 = vmatprep.subr.bf16.mxu0 %v7762_v10 }
0x2b21   :  { %v2719_v16 = vpop.f32.mrb[34].mxu0 }
0x2b22   :  { %v2724_v44 = vrot.slane %v2719_v16, 2  ;;  %v5695_v48 = vpop.f32.mrb[35].mxu0 }
0x2b24   :  { %2725 = vrot.lane.b32.xlu0 %v2724_v44, %s6466_s15 }
0x2b96   :  { %v2726_v54 = vpop.permute.xlu0 %2725 }
0x2b97   :  { %v2728_v61 = vadd.f32 %v2726_v54, %v6761_v27  ;;  %v2729_v40 = vadd.f32 %v2726_v54, %v6928_v59 }
0x2b99   :  { %vm2730_vm11 = vcmp.ge.f32.partialorder %v2728_v61, 0.0  ;;  %vm2731_vm13 = vcmp.ge.f32.partialorder %v2729_v40, 0.0  ;;  %v2732_v21 = vmul.f32 0.2, %v2728_v61  ;;  %v2733_v15 = vmul.f32 0.2, %v2729_v40 }
0x2b9b   :  { %v2735_v57 = vsel %vm2731_vm13, %v2729_v40, %v2733_v15  ;;  %v2734_v49 = vsel %vm2730_vm11, %v2728_v61, %v2732_v21  ;;  %v7309_v15 = vld [vmem:[%s7760_s3 + $0x170] sm:$0xff] }
0x2b9c   :  { %v2739_v3 = vrot.slane %v2735_v57, 6  ;;  %v2738_v36 = vrot.slane %v2734_v49, 6  ;;  %v7318_v49 = vld [vmem:[%s7760_s3 + $0x1c1] ss:$0 sm:$0xff] }
0x2b9e   :  { %2742 = vrot.lane.b32.xlu0 %v2739_v3, %s6465_s10  ;;  %2740 = vrot.lane.b32.xlu1 %v2738_v36, %s6465_s10 }
0x2ba2   :  { %2748 = vrot.lane.b32.xlu0 %v7188_v6, %s6465_s10  ;;  %2746 = vrot.lane.b32.xlu1 %v7185_v29, %s6465_s10 }
0x2c10   :  { %v2743_v27 = vpop.permute.xlu0 %2742  ;;  %v2741_v59 = vpop.permute.xlu1 %2740 }
0x2c11   :  { %v2744_v8 = vsel %vm441_vm10, %v2741_v59, %v2743_v27  ;;  %v2849_v59 = vld [vmem:[%s7758_s1 + $0x8] sm:$0x3] }
0x2c12   :  { %5713 = vmatmul.mubr.msk.f32.vlgmr.msra.gmra.mrb[36].mxu0 %vm914_vm5, %v2744_v8 }
0x2c13   :  { %6185 = vmatpush3.bf16.msra.mxu0 %v6729_v9  ;;  %5723 = vmatprep.mubr.msk.f32.mxu0 %vm6464_vm14, %v6462_v52 }
0x2c14   :  { %6186 = vmatprep.subr.bf16.mxu0 %v7762_v10  ;;  %v2749_v6 = vpop.permute.xlu0 %2748  ;;  %v2747_v28 = vpop.permute.xlu1 %2746 }
0x2c15   :  { %v2750_v29 = vsel %vm441_vm10, %v2747_v28, %v2749_v6 }
0x2c17   :  { %6188 = vmatpush3.bf16.msra.mxu0 %v6741_v13 }
0x2c18   :  { %5750 = vmatprep.subr.mxu0 %v6462_v52 }
0x2ce5   :  { %v2820_v14 = vpop.f32.mrb[36].mxu0 }
0x2ce6   :  { %v2821_v50 = vadd.f32 %v2820_v14, %v2750_v29  ;;  %v5714_v12 = vpop.f32.mrb[37].mxu0 }
0x2ce8   :  { %v2824_v43 = vadd.f32 %v2821_v50, %v6949_v30 }
0x2cea   :  { %6376 = vtanh.f32 %v2824_v43  ;;  %v5085_v42 = vmul.f32 -1.442695, %v2824_v43 }
0x2cec   :  { %6378 = vpow2.f32 %v5085_v42 }
0x2cf4   :  { %v6377_v7 = vpop.eup %6376 }
0x2cf5   :  { %2834 = vrot.lane.b32.xlu1 %v6377_v7, %s6468_s12 }
0x2cf6   :  { %v6379_v38 = vpop.eup %6378 }
0x2cf7   :  { %v2828_v18 = vadd.f32 1.0, %v6379_v38 }
0x2cf9   :  { %6380 = vrcp.f32 %v2828_v18 }
0x2d03   :  { %v6381_v22 = vpop.eup %6380 }
0x2d04   :  { %v2832_v34 = vmul.f32 %v6381_v22, %v7172_v1  ;;  %v7293_v1 = vld [vmem:[%s7760_s3 + $0x160] sm:$0xff] }
0x2d67   :  { %v2835_v32 = vpop.permute.xlu1 %2834 }
0x2d68   :  { %v2837_v33 = vmul.f32 %v6381_v22, %v2835_v32 }
0x2d6a   :  { %2839 = vrot.lane.b32.xlu0 %v2837_v33, %s6465_s10 }
0x2ddc   :  { %v2840_v37 = vpop.permute.xlu0 %2839 }
0x2ddd   :  { %v7281_v39 = vadd.f32 %v2840_v37, %v2832_v34 }
0x2ddf   :  { %6382 = vtanh.f32 %v7281_v39 }
0x2de9   :  { %v6383_v30 = vpop.eup %6382 }
0x2dea   :  { %2845 = vrot.lane.b32.xlu1 %v6383_v30, %s6468_s12 }
0x2e5c   :  { %v2846_v41 = vpop.permute.xlu1 %2845 }
0x2e5d   :  { %v2848_v16 = vmul.f32 %v6381_v22, %v2846_v41 }
0x2e5f   :  { %2851 = vrot.lane.b32.xlu0 %v2848_v16, %s6465_s10 }
0x2ed1   :  { %v7286_v44 = vpop.permute.xlu0 %2851 }
0x2ed2   :  { %5086 = vmatmul.mubr.msk.f32.vlgmr.msra.gmra.mrb[24].mxu1 %vm441_vm10, %v7286_v44 }
0x2ed3   :  { %5727 = vmatpush3.msra.mxu1 %v7293_v1  ;;  %5728 = vmatprep.mubr.msk.f32.mxu1 %vm6464_vm14, %v6462_v52 }
0x2ed4   :  { %6189 = vmatprep.subr.bf16.mxu1 %v7762_v10 }
0x2fa5   :  { %v7299_v48 = vpop.f32.mrb[24].mxu1 }
0x2fa6   :  { %v2926_v54 = vadd.f32 %v7299_v48, %v6756_v24  ;;  %v7303_v61 = vpop.f32.mrb[25].mxu1 }
0x2fa8   :  { %v2928_v40 = vmul.f32 0.2, %v2926_v54  ;;  %vm2927_vm15 = vcmp.ge.f32.partialorder %v2926_v54, 0.0 }
0x2faa   :  { %v2929_v21 = vsel %vm2927_vm15, %v2926_v54, %v2928_v40 }
0x2fab   :  { %5724 = vmatmul.mubr.msk.f32.vlgmr.msra.gmra.mrb[38].mxu0 %vm441_vm10, %v2929_v21 }
0x2fac   :  { %5751 = vmatpush3.msra.mxu0 %v7309_v15  ;;  %5752 = vmatprep.mubr.msk.f32.mxu0 %vm6464_vm14, %v6462_v52 }
0x2fad   :  { %6201 = vmatprep.subr.bf16.mxu0 %v7762_v10 }
0x307e   :  { %v2999_v57 = vpop.f32.mrb[38].mxu0 }
0x307f   :  { %v3000_v3 = vadd.f32 %v7318_v49, %v2999_v57  ;;  %v5725_v36 = vpop.f32.mrb[39].mxu0 }
0x3081   :  { %vm3003_vm0 = vcmp.ge.f32.partialorder %v3000_v3, 0.0  ;;  %v3004_v27 = vmul.f32 0.2, %v3000_v3 }
0x3083   :  { %v7324_v8 = vsel %vm3003_vm0, %v3000_v3, %v3004_v27 }
0x3084   :  { %v3006_v6 = vadd.f32 %v7324_v8, %v2849_v59 }
0x3086   :  { %v3007_v28 = vmul.f32 2.0, %v3006_v6 }
0x3088   :  { %v3009_v29 = vrot.slane %v3007_v28, 6 }
0x308a   :  { %v3011_v14 = vsel %vm805_vm1, %v7324_v8, %v3009_v29 }
0x308b   :  { %v3012_v50 = vsel %vm807_vm2, %v3011_v14, -inf }
0x308c   :  { %3013 = vmax.xlane.f32.xlu1 %v3012_v50 }
0x3119   :  { %v3014_v12 = vpop.xlane.xlu1 %3013 }
0x311a   :  { %v3015_v43 = vsub.f32 %v3011_v14, %v3014_v12 }
0x311c   :  { %v3016_v7 = vmul.f32 1.442695, %v3015_v43 }
0x311e   :  { %6384 = vpow2.f32 %v3016_v7 }
0x3128   :  { %v6385_v42 = vpop.eup %6384 }
0x3129   :  { %v3018_v38 = vsel %vm807_vm2, %v6385_v42, 0.0 }
0x312a   :  { %3019 = vadd.xlane.f32.xlu0 %v3018_v38 }
0x31b7   :  { %v3020_v18 = vpop.xlane.xlu0 %3019 }
0x31b8   :  { %6386 = vrcp.f32 %v3020_v18 }
0x31c2   :  { %v6387_v22 = vpop.eup %6386 }
0x31c3   :  { %v7331_v32 = vmul.f32 %v6387_v22, %v6385_v42 }
0x31c5   :  { %v3024_v33 = vrot.slane %v7331_v32, 2 }
0x31c7   :  { %5729 = vmatmul.mubr.msk.f32.vlgmr.msra.gmra.mrb[26].mxu1 %vm822_vm3, %v3024_v33 }
0x31c8   :  { %6191 = vmatpush3.bf16.msra.mxu1 %v6820_v60  ;;  %5747 = vmatprep.mubr.msk.f32.mxu1 %vm6464_vm14, %v6462_v52 }
0x31c9   :  { %6192 = vmatprep.subr.bf16.mxu1 %v7762_v10 }
0x31cc   :  { %6194 = vmatpush3.bf16.msra.mxu1 %v6826_v62 }
0x31cd   :  { %6195 = vmatprep.subr.bf16.mxu1 %v7762_v10 }
0x31d0   :  { %6197 = vmatpush3.bf16.msra.mxu1 %v6836_v4 }
0x31d1   :  { %6198 = vmatprep.subr.bf16.mxu1 %v7762_v10 }
0x31d4   :  { %6200 = vmatpush3.bf16.msra.mxu1 %v6847_v11 }
0x31d5   :  { %6214 = vmatprep.subr.bf16.mxu1 %v6684_v51 }
0x329a   :  { %v3093_v34 = vpop.f32.mrb[26].mxu1 }
0x329b   :  { %3098 = vrot.lane.b32.xlu0 %v3093_v34, %s6465_s10  ;;  %v5730_v37 = vpop.f32.mrb[27].mxu1 }
0x330d   :  { %v3099_v30 = vpop.permute.xlu0 %3098 }
0x330e   :  { %v3101_v41 = vadd.f32 %v3099_v30, %v2926_v54  ;;  %v7358_v54 = vld [vmem:[%s7760_s3 + $0x1c2] ss:$0 sm:$0xff] }
0x3310   :  { %v3103_v16 = vmul.f32 0.2, %v3101_v41  ;;  %vm3102_vm4 = vcmp.ge.f32.partialorder %v3101_v41, 0.0 }
0x3312   :  { %v3104_v40 = vsel %vm3102_vm4, %v3101_v41, %v3103_v16 }
0x3313   :  { %3106 = vrot.lane.b32.xlu1 %v3104_v40, %s6466_s15 }
0x3385   :  { %v3107_v21 = vpop.permute.xlu1 %3106 }
0x3386   :  { %5748 = vmatmul.mubr.msk.f32.vlgmr.msra.gmra.mrb[28].mxu1 %vm914_vm5, %v3107_v21 }
0x3387   :  { %6216 = vmatpush1.bf16.msra.mxu1 %v6703_v63  ;;  %3459 = vmatprep.mubr.f32.mxu1 %v6462_v52 }
0x3388   :  { %6218 = vmatprep.subr.bf16.mxu1 %v6705_v0 }
0x338b   :  { %6220 = vmatpush1.bf16.msra.mxu1 %v6716_v5 }
0x338c   :  { %5785 = vmatprep.subr.mxu1 %v6462_v52 }
0x3459   :  { %v3176_v57 = vpop.f32.mrb[28].mxu1 }
0x345a   :  { %v3177_v3 = vadd.f32 %v7358_v54, %v3176_v57  ;;  %v5749_v36 = vpop.f32.mrb[29].mxu1 }
0x345c   :  { %vm3180_vm7 = vcmp.ge.f32.partialorder %v3177_v3, 0.0  ;;  %v3181_v27 = vmul.f32 0.2, %v3177_v3 }
0x345e   :  { %v7361_v6 = vsel %vm3180_vm7, %v3177_v3, %v3181_v27  ;;  %v7401_v27 = vld [vmem:[%s7760_s3 + $0x1c3] ss:$0 sm:$0xff] }
0x345f   :  { %v3183_v28 = vmul.f32 0.5, %v7361_v6 }
0x3461   :  { %v3184_v29 = vmul.f32 1.442695, %v3183_v28 }
0x3463   :  { %6388 = vpow2.f32 %v3184_v29 }
0x346d   :  { %v6389_v14 = vpop.eup %6388 }
0x346e   :  { %v3186_v50 = vmul.f32 %v6389_v14, %v2849_v59 }
0x3470   :  { %3188 = vrot.lane.b32.xlu1 %v3186_v50, %s6467_s20 }
0x34e2   :  { %v3189_v12 = vpop.permute.xlu1 %3188 }
0x34e3   :  { %v7366_v43 = vadd.f32 %v3189_v12, %v7361_v6 }
0x34e5   :  { %5753 = vmatmul.mubr.msk.f32.vlgmr.msra.gmra.mrb[40].mxu0 %vm822_vm3, %v7366_v43 }
0x34e6   :  { %6203 = vmatpush3.bf16.msra.mxu0 %v6895_v45  ;;  %5771 = vmatprep.mubr.msk.f32.mxu0 %vm6464_vm14, %v6462_v52 }
0x34e7   :  { %6204 = vmatprep.subr.bf16.mxu0 %v7762_v10 }
0x34ea   :  { %6206 = vmatpush3.bf16.msra.mxu0 %v6901_v47 }
0x34eb   :  { %6207 = vmatprep.subr.bf16.mxu0 %v7762_v10 }
0x34ee   :  { %6209 = vmatpush3.bf16.msra.mxu0 %v6911_v53 }
0x34ef   :  { %6210 = vmatprep.subr.bf16.mxu0 %v7762_v10 }
0x34f2   :  { %6212 = vmatpush3.bf16.msra.mxu0 %v6922_v58 }
0x34f3   :  { %6221 = vmatprep.subr.bf16.mxu0 %v7762_v10 }
0x35b8   :  { %v3261_v59 = vpop.f32.mrb[40].mxu0 }
0x35b9   :  { %3266 = vrot.lane.b32.xlu0 %v3261_v59, %s6466_s15  ;;  %v5754_v7 = vpop.f32.mrb[41].mxu0 }
0x362b   :  { %v3267_v42 = vpop.permute.xlu0 %3266 }
0x362c   :  { %v3269_v38 = vadd.f32 %v3267_v42, %v6756_v24  ;;  %v3270_v18 = vadd.f32 %v3267_v42, %v6759_v26 }
0x362e   :  { %vm3272_vm9 = vcmp.ge.f32.partialorder %v3270_v18, 0.0  ;;  %v3274_v22 = vmul.f32 0.2, %v3270_v18  ;;  %vm3271_vm11 = vcmp.ge.f32.partialorder %v3269_v38, 0.0  ;;  %v3273_v34 = vmul.f32 0.2, %v3269_v38 }
0x3630   :  { %v3276_v37 = vsel %vm3272_vm9, %v3270_v18, %v3274_v22  ;;  %v3275_v30 = vsel %vm3271_vm11, %v3269_v38, %v3273_v34 }
0x3631   :  { %3281 = vrot.lane.b32.xlu0 %v3276_v37, %s6465_s10  ;;  %3279 = vrot.lane.b32.xlu1 %v3275_v30, %s6465_s10 }
0x3635   :  { %3288 = vrot.lane.b32.xlu0 %v7303_v61, %s6465_s10  ;;  %3286 = vrot.lane.b32.xlu1 %v7299_v48, %s6465_s10 }
0x36a3   :  { %v3282_v41 = vpop.permute.xlu0 %3281  ;;  %v3280_v16 = vpop.permute.xlu1 %3279 }
0x36a4   :  { %v3283_v40 = vsel %vm441_vm10, %v3280_v16, %v3282_v41 }
0x36a5   :  { %5772 = vmatmul.mubr.msk.f32.vlgmr.msra.gmra.mrb[42].mxu0 %vm914_vm5, %v3283_v40 }
0x36a6   :  { %6223 = vmatpush3.bf16.msra.mxu0 %v6729_v9  ;;  %5782 = vmatprep.mubr.msk.f32.mxu0 %vm6464_vm14, %v6462_v52 }
0x36a7   :  { %6224 = vmatprep.subr.bf16.mxu0 %v7762_v10  ;;  %v3289_v61 = vpop.permute.xlu0 %3288  ;;  %v3287_v21 = vpop.permute.xlu1 %3286 }
0x36a8   :  { %v3290_v48 = vsel %vm441_vm10, %v3287_v21, %v3289_v61 }
0x36aa   :  { %6226 = vmatpush3.bf16.msra.mxu0 %v6741_v13 }
0x36ab   :  { %5809 = vmatprep.subr.mxu0 %v6462_v52 }
0x3778   :  { %v3360_v57 = vpop.f32.mrb[42].mxu0 }
0x3779   :  { %v3361_v3 = vadd.f32 %v3360_v57, %v3290_v48  ;;  %v5773_v36 = vpop.f32.mrb[43].mxu0 }
0x377b   :  { %v3364_v28 = vadd.f32 %v7401_v27, %v3361_v3 }
0x377d   :  { %6390 = vtanh.f32 %v3364_v28  ;;  %v5092_v14 = vmul.f32 -1.442695, %v3364_v28 }
0x377f   :  { %6392 = vpow2.f32 %v5092_v14  ;;  %v3389_v14 = vld [vmem:[%s7758_s1 + $0xa] sm:$0x3] }
0x3787   :  { %v6391_v29 = vpop.eup %6390 }
0x3788   :  { %3374 = vrot.lane.b32.xlu1 %v6391_v29, %s6468_s12 }
0x3789   :  { %v6393_v50 = vpop.eup %6392 }
0x378a   :  { %v3368_v12 = vadd.f32 1.0, %v6393_v50 }
0x378c   :  { %6394 = vrcp.f32 %v3368_v12 }
0x3796   :  { %v6395_v59 = vpop.eup %6394 }
0x3797   :  { %v3372_v38 = vmul.f32 %v6395_v59, %v7281_v39 }
0x37fa   :  { %v3375_v7 = vpop.permute.xlu1 %3374 }
0x37fb   :  { %v3377_v42 = vmul.f32 %v6395_v59, %v3375_v7 }
0x37fd   :  { %3379 = vrot.lane.b32.xlu0 %v3377_v42, %s6465_s10 }
0x386f   :  { %v3380_v18 = vpop.permute.xlu0 %3379 }
0x3870   :  { %v7407_v22 = vadd.f32 %v3380_v18, %v3372_v38 }
0x3872   :  { %6396 = vtanh.f32 %v7407_v22 }
0x387c   :  { %v6397_v34 = vpop.eup %6396 }
0x387d   :  { %3385 = vrot.lane.b32.xlu1 %v6397_v34, %s6468_s12 }
0x38ef   :  { %v3386_v37 = vpop.permute.xlu1 %3385 }
0x38f0   :  { %v7411_v30 = vmul.f32 %v6395_v59, %v3386_v37 }
0x38f2   :  { %3391 = vrot.lane.b32.xlu0 %v7411_v30, %s6465_s10 }
0x3964   :  { %v3392_v41 = vpop.permute.xlu0 %3391 }
0x3965   :  { %5093 = vmatmul.mubr.msk.f32.vlgmr.msra.gmra.mrb[30].mxu1 %vm441_vm10, %v3392_v41 }
0x3966   :  { %5786 = vmatpush3.msra.mxu1 %v7293_v1  ;;  %5787 = vmatprep.mubr.msk.f32.mxu1 %vm6464_vm14, %v6462_v52 }
0x3967   :  { %6227 = vmatprep.subr.bf16.mxu1 %v7762_v10 }
0x3a38   :  { %v7420_v39 = vpop.f32.mrb[30].mxu1 }
0x3a39   :  { %v3467_v16 = vrot.slane %v7420_v39, 6  ;;  %v7423_v40 = vpop.f32.mrb[31].mxu1 }
0x3a3b   :  { %v3469_v61 = vadd.f32 %v3467_v16, %v6756_v24 }
0x3a3d   :  { %vm3470_vm13 = vcmp.ge.f32.partialorder %v3469_v61, 0.0  ;;  %v3471_v21 = vmul.f32 0.2, %v3469_v61 }
0x3a3f   :  { %v3472_v48 = vsel %vm3470_vm13, %v3469_v61, %v3471_v21 }
0x3a40   :  { %v3474_v57 = vrot.slane %v3472_v48, 2 }
0x3a42   :  { %5783 = vmatmul.mubr.msk.f32.vlgmr.msra.gmra.mrb[44].mxu0 %vm441_vm10, %v3474_v57 }
0x3a43   :  { %5810 = vmatpush3.msra.mxu0 %v7309_v15  ;;  %5811 = vmatprep.mubr.msk.f32.mxu0 %vm6464_vm14, %v6462_v52 }
0x3a44   :  { %6239 = vmatprep.subr.bf16.mxu0 %v7762_v10 }
0x3b15   :  { %v3543_v3 = vpop.f32.mrb[44].mxu0 }
0x3b16   :  { %v3544_v36 = vadd.f32 %v7318_v49, %v3543_v3  ;;  %v5784_v28 = vpop.f32.mrb[45].mxu0 }
0x3b18   :  { %vm3547_vm15 = vcmp.ge.f32.partialorder %v3544_v36, 0.0  ;;  %v3548_v29 = vmul.f32 0.2, %v3544_v36 }
0x3b1a   :  { %v7435_v50 = vsel %vm3547_vm15, %v3544_v36, %v3548_v29 }
0x3b1b   :  { %v3550_v12 = vadd.f32 %v7435_v50, %v3389_v14 }
0x3b1d   :  { %v3551_v59 = vmul.f32 2.0, %v3550_v12 }
0x3b1f   :  { %v3553_v7 = vrot.slane %v3551_v59, 6 }
0x3b21   :  { %v3555_v42 = vsel %vm805_vm1, %v7435_v50, %v3553_v7 }
0x3b22   :  { %v3556_v38 = vsel %vm807_vm2, %v3555_v42, -inf }
0x3b23   :  { %3557 = vmax.xlane.f32.xlu1 %v3556_v38 }
0x3bb0   :  { %v3558_v18 = vpop.xlane.xlu1 %3557 }
0x3bb1   :  { %v3559_v34 = vsub.f32 %v3555_v42, %v3558_v18 }
0x3bb3   :  { %v3560_v37 = vmul.f32 1.442695, %v3559_v34 }
0x3bb5   :  { %6398 = vpow2.f32 %v3560_v37 }
0x3bbf   :  { %v6399_v41 = vpop.eup %6398 }
0x3bc0   :  { %v3562_v16 = vsel %vm807_vm2, %v6399_v41, 0.0 }
0x3bc1   :  { %3563 = vadd.xlane.f32.xlu0 %v3562_v16 }
0x3c4e   :  { %v3564_v21 = vpop.xlane.xlu0 %3563 }
0x3c4f   :  { %6400 = vrcp.f32 %v3564_v21 }
0x3c59   :  { %v6401_v48 = vpop.eup %6400 }
0x3c5a   :  { %v7442_v57 = vmul.f32 %v6401_v48, %v6399_v41 }
0x3c5c   :  { %v3568_v3 = vrot.slane %v7442_v57, 2 }
0x3c5e   :  { %5788 = vmatmul.mubr.msk.f32.vlgmr.msra.gmra.mrb[32].mxu1 %vm822_vm3, %v3568_v3 }
0x3c5f   :  { %6229 = vmatpush3.bf16.msra.mxu1 %v6820_v60  ;;  %5806 = vmatprep.mubr.msk.f32.mxu1 %vm6464_vm14, %v6462_v52 }
0x3c60   :  { %6230 = vmatprep.subr.bf16.mxu1 %v7762_v10 }
0x3c63   :  { %6232 = vmatpush3.bf16.msra.mxu1 %v6826_v62 }
0x3c64   :  { %6233 = vmatprep.subr.bf16.mxu1 %v7762_v10 }
0x3c67   :  { %6235 = vmatpush3.bf16.msra.mxu1 %v6836_v4 }
0x3c68   :  { %6236 = vmatprep.subr.bf16.mxu1 %v7762_v10 }
0x3c6b   :  { %6238 = vmatpush3.bf16.msra.mxu1 %v6847_v11 }
0x3c6c   :  { %6252 = vmatprep.subr.bf16.mxu1 %v6684_v51 }
0x3d31   :  { %v3637_v36 = vpop.f32.mrb[32].mxu1 }
0x3d32   :  { %v3642_v28 = vrot.slane %v3637_v36, 6  ;;  %v5789_v29 = vpop.f32.mrb[33].mxu1 }
0x3d34   :  { %3643 = vrot.lane.b32.xlu0 %v3642_v28, %s6465_s10 }
0x3da6   :  { %v3644_v12 = vpop.permute.xlu0 %3643 }
0x3da7   :  { %v3646_v59 = vadd.f32 %v3644_v12, %v3469_v61 }
0x3da9   :  { %vm3647_vm0 = vcmp.ge.f32.partialorder %v3646_v59, 0.0  ;;  %v3648_v7 = vmul.f32 0.2, %v3646_v59 }
0x3dab   :  { %v3649_v42 = vsel %vm3647_vm0, %v3646_v59, %v3648_v7 }
0x3dac   :  { %v3651_v38 = vrot.slane %v3649_v42, 2 }
0x3dae   :  { %3652 = vrot.lane.b32.xlu1 %v3651_v38, %s6466_s15 }
0x3e20   :  { %v3653_v18 = vpop.permute.xlu1 %3652 }
0x3e21   :  { %5807 = vmatmul.mubr.msk.f32.vlgmr.msra.gmra.mrb[34].mxu1 %vm914_vm5, %v3653_v18 }
0x3e22   :  { %6254 = vmatpush1.bf16.msra.mxu1 %v6703_v63  ;;  %4007 = vmatprep.mubr.f32.mxu1 %v6462_v52 }
0x3e23   :  { %6256 = vmatprep.subr.bf16.mxu1 %v6705_v0 }
0x3e26   :  { %6258 = vmatpush1.bf16.msra.mxu1 %v6716_v5 }
0x3e27   :  { %5844 = vmatprep.subr.mxu1 %v6462_v52 }
0x3ef4   :  { %v3722_v61 = vpop.f32.mrb[34].mxu1 }
0x3ef5   :  { %v3723_v34 = vadd.f32 %v7358_v54, %v3722_v61  ;;  %v5808_v37 = vpop.f32.mrb[35].mxu1 }
0x3ef7   :  { %vm3726_vm4 = vcmp.ge.f32.partialorder %v3723_v34, 0.0  ;;  %v3727_v41 = vmul.f32 0.2, %v3723_v34 }
0x3ef9   :  { %v7465_v16 = vsel %vm3726_vm4, %v3723_v34, %v3727_v41 }
0x3efa   :  { %v3729_v21 = vmul.f32 0.5, %v7465_v16 }
0x3efc   :  { %v3730_v48 = vmul.f32 1.442695, %v3729_v21 }
0x3efe   :  { %6402 = vpow2.f32 %v3730_v48 }
0x3f08   :  { %v6403_v3 = vpop.eup %6402 }
0x3f09   :  { %v3732_v36 = vmul.f32 %v6403_v3, %v3389_v14 }
0x3f0b   :  { %3734 = vrot.lane.b32.xlu1 %v3732_v36, %s6467_s20 }
0x3f7d   :  { %v3735_v28 = vpop.permute.xlu1 %3734 }
0x3f7e   :  { %v7470_v29 = vadd.f32 %v3735_v28, %v7465_v16 }
0x3f80   :  { %5812 = vmatmul.mubr.msk.f32.vlgmr.msra.gmra.mrb[46].mxu0 %vm822_vm3, %v7470_v29 }
0x3f81   :  { %6241 = vmatpush3.bf16.msra.mxu0 %v6895_v45  ;;  %5830 = vmatprep.mubr.msk.f32.mxu0 %vm6464_vm14, %v6462_v52 }
0x3f82   :  { %6242 = vmatprep.subr.bf16.mxu0 %v7762_v10 }
0x3f85   :  { %6244 = vmatpush3.bf16.msra.mxu0 %v6901_v47 }
0x3f86   :  { %6245 = vmatprep.subr.bf16.mxu0 %v7762_v10 }
0x3f89   :  { %6247 = vmatpush3.bf16.msra.mxu0 %v6911_v53 }
0x3f8a   :  { %6248 = vmatprep.subr.bf16.mxu0 %v7762_v10 }
0x3f8d   :  { %6250 = vmatpush3.bf16.msra.mxu0 %v6922_v58 }
0x3f8e   :  { %6259 = vmatprep.subr.bf16.mxu0 %v7762_v10 }
0x4053   :  { %v3807_v14 = vpop.f32.mrb[46].mxu0 }
0x4054   :  { %v3812_v12 = vrot.slane %v3807_v14, 6  ;;  %v5813_v59 = vpop.f32.mrb[47].mxu0 }
0x4056   :  { %3813 = vrot.lane.b32.xlu0 %v3812_v12, %s6466_s15 }
0x40c8   :  { %v3814_v7 = vpop.permute.xlu0 %3813 }
0x40c9   :  { %v3816_v42 = vadd.f32 %v3814_v7, %v6756_v24  ;;  %v3817_v38 = vadd.f32 %v3814_v7, %v6759_v26 }
0x40cb   :  { %vm3818_vm7 = vcmp.ge.f32.partialorder %v3816_v42, 0.0  ;;  %vm3819_vm9 = vcmp.ge.f32.partialorder %v3817_v38, 0.0  ;;  %v3820_v18 = vmul.f32 0.2, %v3816_v42  ;;  %v3821_v61 = vmul.f32 0.2, %v3817_v38 }
0x40cd   :  { %v3823_v34 = vsel %vm3819_vm9, %v3817_v38, %v3821_v61  ;;  %v3822_v37 = vsel %vm3818_vm7, %v3816_v42, %v3820_v18 }
0x40ce   :  { %v3827_v41 = vrot.slane %v3823_v34, 2  ;;  %v3826_v21 = vrot.slane %v3822_v37, 2 }
0x40d0   :  { %3830 = vrot.lane.b32.xlu0 %v3827_v41, %s6465_s10  ;;  %3828 = vrot.lane.b32.xlu1 %v3826_v21, %s6465_s10 }
0x40d4   :  { %3836 = vrot.lane.b32.xlu0 %v7423_v40, %s6465_s10  ;;  %3834 = vrot.lane.b32.xlu1 %v7420_v39, %s6465_s10 }
0x4142   :  { %v3831_v48 = vpop.permute.xlu0 %3830  ;;  %v3829_v3 = vpop.permute.xlu1 %3828 }
0x4143   :  { %v3832_v36 = vsel %vm441_vm10, %v3829_v3, %v3831_v48 }
0x4144   :  { %5831 = vmatmul.mubr.msk.f32.vlgmr.msra.gmra.mrb[48].mxu0 %vm914_vm5, %v3832_v36 }
0x4145   :  { %6261 = vmatpush3.bf16.msra.mxu0 %v6729_v9  ;;  %5841 = vmatprep.mubr.msk.f32.mxu0 %vm6464_vm14, %v6462_v52 }
0x4146   :  { %6262 = vmatprep.subr.bf16.mxu0 %v7762_v10  ;;  %v3837_v40 = vpop.permute.xlu0 %3836  ;;  %v3835_v28 = vpop.permute.xlu1 %3834 }
0x4147   :  { %v3838_v39 = vsel %vm441_vm10, %v3835_v28, %v3837_v40 }
0x4149   :  { %6264 = vmatpush3.bf16.msra.mxu0 %v6741_v13 }
0x414a   :  { %5868 = vmatprep.subr.mxu0 %v6462_v52 }
0x4217   :  { %v3908_v14 = vpop.f32.mrb[48].mxu0 }
0x4218   :  { %v3909_v12 = vadd.f32 %v3908_v14, %v3838_v39  ;;  %v5832_v59 = vpop.f32.mrb[49].mxu0 }
0x421a   :  { %v3912_v7 = vadd.f32 %v7401_v27, %v3909_v12 }
0x421c   :  { %6404 = vtanh.f32 %v3912_v7  ;;  %v5099_v38 = vmul.f32 -1.442695, %v3912_v7 }
0x421e   :  { %6406 = vpow2.f32 %v5099_v38 }
0x4226   :  { %v6405_v42 = vpop.eup %6404 }
0x4227   :  { %3922 = vrot.lane.b32.xlu1 %v6405_v42, %s6468_s12 }
0x4228   :  { %v6407_v18 = vpop.eup %6406 }
0x4229   :  { %v3916_v61 = vadd.f32 1.0, %v6407_v18 }
0x422b   :  { %6408 = vrcp.f32 %v3916_v61 }
0x4235   :  { %v6409_v34 = vpop.eup %6408 }
0x4236   :  { %v3920_v21 = vmul.f32 %v6409_v34, %v7407_v22 }
0x4299   :  { %v3923_v37 = vpop.permute.xlu1 %3922 }
0x429a   :  { %v3925_v41 = vmul.f32 %v6409_v34, %v3923_v37  ;;  %v4935_v37 = vrot.slane %v7435_v50, 6 }
0x429c   :  { %3927 = vrot.lane.b32.xlu0 %v3925_v41, %s6465_s10 }
0x430e   :  { %v3928_v48 = vpop.permute.xlu0 %3927 }
0x430f   :  { %v7506_v3 = vadd.f32 %v3928_v48, %v3920_v21  ;;  %v7535_v21 = vld [vmem:[%s7758_s1 + $0xc] sm:$0x3] }
0x4311   :  { %6410 = vtanh.f32 %v7506_v3 }
0x431b   :  { %v6411_v36 = vpop.eup %6410 }
0x431c   :  { %3933 = vrot.lane.b32.xlu1 %v6411_v36, %s6468_s12 }
0x438e   :  { %v3934_v40 = vpop.permute.xlu1 %3933 }
0x438f   :  { %v7510_v28 = vmul.f32 %v6409_v34, %v3934_v40  ;;  %v4946_v40 = vsel %vm805_vm1, %v7324_v8, %v4935_v37  ;;  %v4954_v37 = vrot.slane %v7442_v57, 6 }
0x4391   :  { %3939 = vrot.lane.b32.xlu0 %v7510_v28, %s6465_s10 }
0x4403   :  { %v3940_v39 = vpop.permute.xlu0 %3939 }
0x4404   :  { %5100 = vmatmul.mubr.msk.f32.vlgmr.msra.gmra.mrb[36].mxu1 %vm441_vm10, %v3940_v39 }
0x4405   :  { %5845 = vmatpush3.msra.mxu1 %v7293_v1  ;;  %5846 = vmatprep.mubr.msk.f32.mxu1 %vm6464_vm14, %v6462_v52 }
0x4406   :  { %6265 = vmatprep.subr.bf16.mxu1 %v7762_v10 }
0x44d7   :  { %v7519_v22 = vpop.f32.mrb[36].mxu1 }
0x44d8   :  { %v4015_v14 = vrot.slane %v7519_v22, 4  ;;  %v7522_v12 = vpop.f32.mrb[37].mxu1 }
0x44da   :  { %v4017_v59 = vadd.f32 %v4015_v14, %v6756_v24 }
0x44dc   :  { %vm4018_vm11 = vcmp.ge.f32.partialorder %v4017_v59, 0.0  ;;  %v4019_v7 = vmul.f32 0.2, %v4017_v59 }
0x44de   :  { %v4020_v42 = vsel %vm4018_vm11, %v4017_v59, %v4019_v7 }
0x44df   :  { %v4022_v38 = vrot.slane %v4020_v42, 4 }
0x44e1   :  { %5842 = vmatmul.mubr.msk.f32.vlgmr.msra.gmra.mrb[50].mxu0 %vm441_vm10, %v4022_v38 }
0x44e2   :  { %5869 = vmatpush3.msra.mxu0 %v7309_v15  ;;  %5870 = vmatprep.mubr.msk.f32.mxu0 %vm6464_vm14, %v6462_v52 }
0x44e3   :  { %6277 = vmatprep.subr.bf16.mxu0 %v7762_v10 }
0x45b4   :  { %v4091_v18 = vpop.f32.mrb[50].mxu0 }
0x45b5   :  { %v4092_v61 = vadd.f32 %v7318_v49, %v4091_v18  ;;  %v5843_v34 = vpop.f32.mrb[51].mxu0 }
0x45b7   :  { %vm4095_vm13 = vcmp.ge.f32.partialorder %v4092_v61, 0.0  ;;  %v4096_v41 = vmul.f32 0.2, %v4092_v61 }
0x45b9   :  { %v4097_v48 = vsel %vm4095_vm13, %v4092_v61, %v4096_v41  ;;  %vm5017_vm13 = vcmask 588800  }
0x45ba   :  { %v4098_v15 = vadd.f32 %v4097_v48, %v7535_v21  ;;  %v4938_v36 = vrot.slane %v4097_v48, 4 }
0x45bc   :  { %v4099_v39 = vmul.f32 2.0, %v4098_v15  ;;  %v7541_v14 = vsel %vm4847_vm8, %v4946_v40, %v4938_v36 }
0x45be   :  { %v4101_v7 = vrot.slane %v4099_v39, 6  ;;  %v4922_v39 = vsel %vm805_vm1, %v3024_v33, %v7442_v57 }
0x45c0   :  { %v4103_v50 = vsel %vm805_vm1, %v4097_v48, %v4101_v7  ;;  %v4962_v7 = vsel %vm805_vm1, %v7331_v32, %v4954_v37 }
0x45c1   :  { %v4104_v42 = vsel %vm807_vm2, %v4103_v50, -inf }
0x45c2   :  { %4105 = vmax.xlane.f32.xlu1 %v4104_v42  ;;  %v7764_v42 = vmov 0.0|0.0  }
0x464f   :  { %v4106_v38 = vpop.xlane.xlu1 %4105 }
0x4650   :  { %v4107_v18 = vsub.f32 %v4103_v50, %v4106_v38 }
0x4652   :  { %v4108_v34 = vmul.f32 1.442695, %v4107_v18 }
0x4654   :  { %6412 = vpow2.f32 %v4108_v34 }
0x465e   :  { %v6413_v61 = vpop.eup %6412 }
0x465f   :  { %v4110_v41 = vsel %vm807_vm2, %v6413_v61, 0.0 }
0x4660   :  { %4111 = vadd.xlane.f32.xlu0 %v4110_v41 }
0x46ed   :  { %v4112_v10 = vpop.xlane.xlu0 %4111 }
0x46ee   :  { %6414 = vrcp.f32 %v4112_v10 }
0x46f8   :  { %v6415_v8 = vpop.eup %6414 }
0x46f9   :  { %v4114_v15 = vmul.f32 %v6415_v8, %v6413_v61 }
0x46fb   :  { %v4116_v36 = vrot.slane %v4114_v15, 2  ;;  %v4915_v40 = vrot.slane %v4114_v15, 6  ;;  %v4956_v48 = vrot.slane %v4114_v15, 4 }
0x46fd   :  { %5847 = vmatmul.mubr.msk.f32.vlgmr.msra.gmra.mrb[38].mxu1 %vm822_vm3, %v4116_v36  ;;  %v7555_v50 = vsel %vm4847_vm8, %v4922_v39, %v4915_v40  ;;  %v7558_v10 = vsel %vm4847_vm8, %v4962_v7, %v4956_v48 }
0x46fe   :  { %6267 = vmatpush3.bf16.msra.mxu1 %v6820_v60  ;;  %5865 = vmatprep.mubr.msk.f32.mxu1 %vm6464_vm14, %v6462_v52 }
0x46ff   :  { %6268 = vmatprep.subr.bf16.mxu1 %v7764_v42 }
0x4702   :  { %6270 = vmatpush3.bf16.msra.mxu1 %v6826_v62 }
0x4703   :  { %6271 = vmatprep.subr.bf16.mxu1 %v7764_v42 }
0x4706   :  { %6273 = vmatpush3.bf16.msra.mxu1 %v6836_v4 }
0x4707   :  { %6274 = vmatprep.subr.bf16.mxu1 %v7764_v42 }
0x470a   :  { %6276 = vmatpush3.bf16.msra.mxu1 %v6847_v11 }
0x470b   :  { %6290 = vmatprep.subr.bf16.mxu1 %v6684_v51 }
0x47d0   :  { %v4185_v32 = vpop.f32.mrb[38].mxu1 }
0x47d1   :  { %v4190_v33 = vrot.slane %v4185_v32, 4  ;;  %v5848_v57 = vpop.f32.mrb[39].mxu1 }
0x47d3   :  { %4191 = vrot.lane.b32.xlu0 %v4190_v33, %s6465_s10 }
0x4845   :  { %v4192_v38 = vpop.permute.xlu0 %4191 }
0x4846   :  { %v4194_v18 = vadd.f32 %v4192_v38, %v4017_v59 }
0x4848   :  { %vm4195_vm15 = vcmp.ge.f32.partialorder %v4194_v18, 0.0  ;;  %v4196_v34 = vmul.f32 0.2, %v4194_v18 }
0x484a   :  { %v4197_v61 = vsel %vm4195_vm15, %v4194_v18, %v4196_v34  ;;  %vm5020_vm15 = vcmask 654336  }
0x484b   :  { %v4199_v41 = vrot.slane %v4197_v61, 4 }
0x484d   :  { %4200 = vrot.lane.b32.xlu1 %v4199_v41, %s6466_s15 }
0x48bf   :  { %v4201_v8 = vpop.permute.xlu1 %4200 }
0x48c0   :  { %5866 = vmatmul.mubr.msk.f32.vlgmr.msra.gmra.mrb[40].mxu1 %vm914_vm5, %v4201_v8 }
0x48c1   :  { %6292 = vmatpush1.bf16.msra.mxu1 %v6703_v63  ;;  %4555 = vmatprep.mubr.f32.mxu1 %v6462_v52 }
0x48c2   :  { %6294 = vmatprep.subr.bf16.mxu1 %v6705_v0  ;;  %v4839_v0 = vrot.slane %v7470_v29, 6 }
0x48c4   :  { %v4851_v32 = vsel %vm805_vm1, %v7366_v43, %v4839_v0 }
0x48c5   :  { %6296 = vmatpush1.bf16.msra.mxu1 %v6716_v5 }
0x48c6   :  { %5903 = vmatprep.subr.mxu1 %v6462_v52 }
0x4993   :  { %v4270_v51 = vpop.f32.mrb[40].mxu1 }
0x4994   :  { %v4271_v59 = vadd.f32 %v7358_v54, %v4270_v51  ;;  %v5867_v37 = vpop.f32.mrb[41].mxu1 }
0x4996   :  { %vm4274_vm0 = vcmp.ge.f32.partialorder %v4271_v59, 0.0  ;;  %v4275_v15 = vmul.f32 0.2, %v4271_v59 }
0x4998   :  { %v7579_v36 = vsel %vm4274_vm0, %v4271_v59, %v4275_v15 }
0x4999   :  { %v4277_v40 = vmul.f32 0.5, %v7579_v36 }
0x499b   :  { %v4278_v48 = vmul.f32 1.442695, %v4277_v40 }
0x499d   :  { %6416 = vpow2.f32 %v4278_v48 }
0x49a7   :  { %v6417_v63 = vpop.eup %6416 }
0x49a8   :  { %v4280_v39 = vmul.f32 %v6417_v63, %v7535_v21 }
0x49aa   :  { %4282 = vrot.lane.b32.xlu1 %v4280_v39, %s6467_s20 }
0x4a1c   :  { %v4283_v5 = vpop.permute.xlu1 %4282 }
0x4a1d   :  { %v4285_v7 = vadd.f32 %v4283_v5, %v7579_v36 }
0x4a1f   :  { %v4841_v54 = vrot.slane %v4285_v7, 4  ;;  %5871 = vmatmul.mubr.msk.f32.vlgmr.msra.gmra.mrb[52].mxu0 %vm822_vm3, %v4285_v7 }
0x4a20   :  { %6279 = vmatpush3.bf16.msra.mxu0 %v6895_v45  ;;  %5889 = vmatprep.mubr.msk.f32.mxu0 %vm6464_vm14, %v6462_v52 }
0x4a21   :  { %v7593_v21 = vsel %vm4847_vm8, %v4851_v32, %v4841_v54  ;;  %6280 = vmatprep.subr.bf16.mxu0 %v7764_v42 }
0x4a24   :  { %6282 = vmatpush3.bf16.msra.mxu0 %v6901_v47 }
0x4a25   :  { %6283 = vmatprep.subr.bf16.mxu0 %v7764_v42 }
0x4a28   :  { %6285 = vmatpush3.bf16.msra.mxu0 %v6911_v53 }
0x4a29   :  { %6286 = vmatprep.subr.bf16.mxu0 %v7764_v42 }
0x4a2c   :  { %6288 = vmatpush3.bf16.msra.mxu0 %v6922_v58 }
0x4a2d   :  { %6297 = vmatprep.subr.bf16.mxu0 %v7764_v42 }
0x4af2   :  { %v4355_v45 = vpop.f32.mrb[52].mxu0 }
0x4af3   :  { %v4360_v43 = vrot.slane %v4355_v45, 4  ;;  %v5872_v29 = vpop.f32.mrb[53].mxu0 }
0x4af5   :  { %4361 = vrot.lane.b32.xlu0 %v4360_v43, %s6466_s15 }
0x4b67   :  { %v4362_v33 = vpop.permute.xlu0 %4361 }
0x4b68   :  { %v4364_v57 = vadd.f32 %v4362_v33, %v6756_v24  ;;  %v4365_v47 = vadd.f32 %v4362_v33, %v6759_v26 }
0x4b6a   :  { %vm4366_vm4 = vcmp.ge.f32.partialorder %v4364_v57, 0.0  ;;  %vm4367_vm7 = vcmp.ge.f32.partialorder %v4365_v47, 0.0  ;;  %v4368_v38 = vmul.f32 0.2, %v4364_v57  ;;  %v4369_v53 = vmul.f32 0.2, %v4365_v47 }
0x4b6c   :  { %v4371_v18 = vsel %vm4367_vm7, %v4365_v47, %v4369_v53  ;;  %v4370_v34 = vsel %vm4366_vm4, %v4364_v57, %v4368_v38 }
0x4b6d   :  { %v4375_v61 = vrot.slane %v4371_v18, 4  ;;  %v4374_v58 = vrot.slane %v4370_v34, 4 }
0x4b6f   :  { %4378 = vrot.lane.b32.xlu0 %v4375_v61, %s6465_s10  ;;  %4376 = vrot.lane.b32.xlu1 %v4374_v58, %s6465_s10 }
0x4b73   :  { %4384 = vrot.lane.b32.xlu0 %v7522_v12, %s6465_s10  ;;  %4382 = vrot.lane.b32.xlu1 %v7519_v22, %s6465_s10 }
0x4be1   :  { %v4379_v41 = vpop.permute.xlu0 %4378  ;;  %v4377_v26 = vpop.permute.xlu1 %4376 }
0x4be2   :  { %v4380_v8 = vsel %vm441_vm10, %v4377_v26, %v4379_v41 }
0x4be3   :  { %5890 = vmatmul.mubr.msk.f32.vlgmr.msra.gmra.mrb[54].mxu0 %vm914_vm5, %v4380_v8 }
0x4be4   :  { %6299 = vmatpush3.bf16.msra.mxu0 %v6729_v9  ;;  %5900 = vmatprep.mubr.msk.f32.mxu0 %vm6464_vm14, %v6462_v52 }
0x4be5   :  { %6300 = vmatprep.subr.bf16.mxu0 %v7764_v42  ;;  %v4385_v51 = vpop.permute.xlu0 %4384  ;;  %v4383_v12 = vpop.permute.xlu1 %4382 }
0x4be6   :  { %v4386_v59 = vsel %vm441_vm10, %v4383_v12, %v4385_v51 }
0x4be8   :  { %6302 = vmatpush3.bf16.msra.mxu0 %v6741_v13 }
0x4cb6   :  { %v4456_v22 = vpop.f32.mrb[54].mxu0 }
0x4cb7   :  { %v4457_v37 = vadd.f32 %v4456_v22, %v4386_v59  ;;  %v5891_v15 = vpop.f32.mrb[55].mxu0 }
0x4cb9   :  { %v4460_v40 = vadd.f32 %v7401_v27, %v4457_v37 }
0x4cbb   :  { %6418 = vtanh.f32 %v4460_v40  ;;  %v5106_v9 = vmul.f32 -1.442695, %v4460_v40 }
0x4cbd   :  { %6420 = vpow2.f32 %v5106_v9 }
0x4cc5   :  { %v6419_v48 = vpop.eup %6418 }
0x4cc6   :  { %4470 = vrot.lane.b32.xlu1 %v6419_v48, %s6468_s12 }
0x4cc7   :  { %v6421_v63 = vpop.eup %6420 }
0x4cc8   :  { %v4464_v39 = vadd.f32 1.0, %v6421_v63 }
0x4cca   :  { %6422 = vrcp.f32 %v4464_v39 }
0x4cd4   :  { %v6423_v0 = vpop.eup %6422 }
0x4cd5   :  { %v4468_v7 = vmul.f32 %v6423_v0, %v7506_v3 }
0x4d38   :  { %v4471_v13 = vpop.permute.xlu1 %4470 }
0x4d39   :  { %v4473_v5 = vmul.f32 %v6423_v0, %v4471_v13 }
0x4d3b   :  { %4475 = vrot.lane.b32.xlu0 %v4473_v5, %s6465_s10 }
0x4dad   :  { %v4476_v54 = vpop.permute.xlu0 %4475 }
0x4dae   :  { %v4478_v32 = vadd.f32 %v4476_v54, %v4468_v7 }
0x4db0   :  { %6424 = vtanh.f32 %v4478_v32 }
0x4dba   :  { %v6425_v27 = vpop.eup %6424 }
0x4dbb   :  { %4481 = vrot.lane.b32.xlu1 %v6425_v27, %s6468_s12 }
0x4e2d   :  { %v4482_v45 = vpop.permute.xlu1 %4481 }
0x4e2e   :  { %v7624_v43 = vmul.f32 %v6423_v0, %v4482_v45 }
0x4e30   :  { %4487 = vrot.lane.b32.xlu0 %v7624_v43, %s6465_s10 }
0x4ea2   :  { %v4488_v29 = vpop.permute.xlu0 %4487 }
0x4ea3   :  { %5107 = vmatmul.mubr.msk.f32.vlgmr.msra.gmra.mrb[42].mxu1 %vm441_vm10, %v4488_v29  ;;  %v4878_v29 = vrot.slane %v6959_v46, 6 }
0x4ea4   :  { %5904 = vmatpush3.msra.mxu1 %v7293_v1  ;;  %5905 = vmatprep.mubr.msk.f32.mxu1 %vm6464_vm14, %v6462_v52 }
0x4ea5   :  { %6303 = vmatprep.subr.bf16.mxu1 %v7764_v42 }
0x4f76   :  { %v4557_v3 = vpop.f32.mrb[42].mxu1 }
0x4f77   :  { %v4562_v33 = vrot.slane %v4557_v3, 2  ;;  %v4559_v57 = vpop.f32.mrb[43].mxu1 }
0x4f79   :  { %v7634_v47 = vadd.f32 %v4562_v33, %v6756_v24  ;;  %v7644_v24 = vld [vmem:[%s7758_s1 + $0xe] sm:$0x3]  ;;  %s6469_s1 = smov 8   ;;  %v4886_v33 = vrot.slane %v7176_v55, 2 }
0x4f7b   :  { %vm4565_vm9 = vcmp.ge.f32.partialorder %v7634_v47, 0.0  ;;  %v4566_v38 = vmul.f32 0.2, %v7634_v47 }
0x4f7d   :  { %v4567_v53 = vsel %vm4565_vm9, %v7634_v47, %v4566_v38 }
0x4f7e   :  { %v4569_v18 = vrot.slane %v4567_v53, 6 }
0x4f80   :  { %5901 = vmatmul.mubr.msk.f32.vlgmr.msra.gmra.mrb[56].mxu0 %vm441_vm10, %v4569_v18 }
0x5053   :  { %v4638_v1 = vpop.f32.mrb[56].mxu0 }
0x5054   :  { %v4639_v34 = vadd.f32 %v7318_v49, %v4638_v1  ;;  %v5902_v61 = vpop.f32.mrb[57].mxu0 }
0x5056   :  { %vm4642_vm11 = vcmp.ge.f32.partialorder %v4639_v34, 0.0  ;;  %v4643_v58 = vmul.f32 0.2, %v4639_v34 }
0x5058   :  { %v4644_v41 = vsel %vm4642_vm11, %v4639_v34, %v4643_v58 }
0x5059   :  { %v4645_v26 = vadd.f32 %v4644_v41, %v7644_v24  ;;  %v4941_v8 = vrot.slane %v4644_v41, 2 }
0x505b   :  { %v4646_v51 = vmul.f32 2.0, %v4645_v26  ;;  %v7649_v12 = vsel %vm4849_vm6, %v7541_v14, %v4941_v8 }
0x505d   :  { %v4648_v59 = vrot.slane %v4646_v51, 6 }
0x505f   :  { %v4650_v49 = vsel %vm805_vm1, %v4644_v41, %v4648_v59 }
0x5060   :  { %v4651_v22 = vsel %vm807_vm2, %v4650_v49, -inf }
0x5061   :  { %4652 = vmax.xlane.f32.xlu1 %v4651_v22 }
0x50ee   :  { %v4653_v37 = vpop.xlane.xlu1 %4652 }
0x50ef   :  { %v4654_v15 = vsub.f32 %v4650_v49, %v4653_v37  ;;  %v6437_v37 = vld [vmem:[%s7760_s3 + $0x1c2] ss:$0 sm:$0xff]  ;;  %s6473_s3 = smov [#allocation2]  }
0x50f1   :  { %v4655_v40 = vmul.f32 1.442695, %v4654_v15 }
0x50f3   :  { %6426 = vpow2.f32 %v4655_v40 }
0x50fd   :  { %v6427_v48 = vpop.eup %6426 }
0x50fe   :  { %v4657_v9 = vsel %vm807_vm2, %v6427_v48, 0.0  ;;  %vm5012_vm2 = vcmask 457728  }
0x50ff   :  { %4658 = vadd.xlane.f32.xlu0 %v4657_v9  ;;  %v4867_v9 = vrot.slane %v7579_v36, 4 }
0x518c   :  { %v4659_v63 = vpop.xlane.xlu0 %4658 }
0x518d   :  { %6428 = vrcp.f32 %v4659_v63 }
0x5197   :  { %v6429_v39 = vpop.eup %6428 }
0x5198   :  { %v4661_v0 = vmul.f32 %v6429_v39, %v6427_v48  ;;  %v4864_v48 = vrot.slane %v7465_v16, 6 }
0x519a   :  { %v4663_v14 = vrot.slane %v4661_v0, 2  ;;  %v4917_v13 = vrot.slane %v4661_v0, 4 }
0x519c   :  { %5906 = vmatmul.mubr.msk.f32.vlgmr.msra.gmra.mrb[44].mxu1 %vm822_vm3, %v4663_v14  ;;  %v7657_v5 = vsel %vm4849_vm6, %v7555_v50, %v4917_v13  ;;  %v7661_v7 = vsel %vm4849_vm6, %v7558_v10, %v4663_v14  ;;  %v4875_v13 = vsel %vm805_vm1, %v7361_v6, %v4864_v48 }
0x519d   :  { %6305 = vmatpush3.bf16.msra.mxu1 %v6820_v60  ;;  %5924 = vmatprep.mubr.msk.f32.mxu1 %vm6464_vm14, %v6462_v52  ;;  %v4891_v60 = vrot.slane %v7411_v30, 6  ;;  %v4895_v52 = vrot.slane %v7510_v28, 4  ;;  %vm5009_vm14 = vcmask 195584  }
0x519e   :  { %6306 = vmatprep.subr.bf16.mxu1 %v7764_v42 }
0x51a1   :  { %6308 = vmatpush3.bf16.msra.mxu1 %v6826_v62  ;;  %v4855_v62 = vrot.slane %v7013_v20, 6 }
0x51a2   :  { %6309 = vmatprep.subr.bf16.mxu1 %v7764_v42 }
0x51a3   :  { %v4872_v32 = vsel %vm805_vm1, %v6873_v31, %v4855_v62  ;;  %v4882_v31 = vrot.slane %v7058_v35, 4 }
0x51a5   :  { %6311 = vmatpush3.bf16.msra.mxu1 %v6836_v4  ;;  %v4858_v4 = vrot.slane %v7127_v23, 4 }
0x51a6   :  { %6312 = vmatprep.subr.bf16.mxu1 %v7764_v42  ;;  %v4899_v42 = vrot.slane %v7624_v43, 2 }
0x51a7   :  { %v4873_v30 = vsel %vm4847_vm8, %v4872_v32, %v4858_v4 }
0x51a9   :  { %6314 = vmatpush3.bf16.msra.mxu1 %v6847_v11  ;;  %v4861_v11 = vrot.slane %v7238_v17, 2 }
0x51ab   :  { %v4874_v27 = vsel %vm4849_vm6, %v4873_v30, %v4861_v11 }
0x526f   :  { %v4732_v50 = vpop.f32.mrb[44].mxu1 }
0x5270   :  { %v4737_v10 = vrot.slane %v4732_v50, 2  ;;  %v5907_v54 = vpop.f32.mrb[45].mxu1  ;;  %v4876_v50 = vsel %vm4847_vm8, %v4875_v13, %v4867_v9 }
0x5272   :  { %4738 = vrot.lane.b32.xlu0 %v4737_v10, %s6465_s10 }
0x5276   :  { %4892 = vrot.lane.b32.xlu0 %v4891_v60, %s6465_s10 }
0x527a   :  { %4896 = vrot.lane.b32.xlu0 %v4895_v52, %s6465_s10 }
0x527e   :  { %4900 = vrot.lane.b32.xlu0 %v4899_v42, %s6465_s10 }
0x5282   :  { %4967 = vrot.lane.b32.xlu0 %v4874_v27, %s6469_s1 }
0x52e4   :  { %v4739_v28 = vpop.permute.xlu0 %4738 }
0x52e5   :  { %v4741_v20 = vadd.f32 %v4739_v28, %v7634_v47 }
0x52e7   :  { %vm4742_vm10 = vcmp.ge.f32.partialorder %v4741_v20, 0.0  ;;  %v4743_v23 = vmul.f32 0.2, %v4741_v20 }
0x52e8   :  { %v4893_v17 = vpop.permute.xlu0 %4892 }
0x52e9   :  { %v4744_v45 = vsel %vm4742_vm10, %v4741_v20, %v4743_v23  ;;  %v4906_v47 = vsel %vm805_vm1, %v7286_v44, %v4893_v17 }
0x52ea   :  { %v4746_v43 = vrot.slane %v4744_v45, 6 }
0x52ec   :  { %4747 = vrot.lane.b32.xlu1 %v4746_v43, %s6466_s15  ;;  %v4897_v3 = vpop.permute.xlu0 %4896  ;;  %s6470_s15 = smov 24  }
0x52ed   :  { %v4907_v38 = vsel %vm4847_vm8, %v4906_v47, %v4897_v3 }
0x52f0   :  { %4879 = vrot.lane.b32.xlu1 %v4878_v29, %s6465_s10  ;;  %v4901_v57 = vpop.permute.xlu0 %4900 }
0x52f1   :  { %v4908_v53 = vsel %vm4849_vm6, %v4907_v38, %v4901_v57 }
0x52f4   :  { %4883 = vrot.lane.b32.xlu1 %v4882_v31, %s6465_s10  ;;  %v4968_v44 = vpop.permute.xlu0 %4967 }
0x52f5   :  { %v5005_v26 = vsel %vm822_vm3, %v7251_v19, %v4968_v44 }
0x52f6   :  { %v5007_v51 = vsel %vm546_vm12, %v5005_v26, %v4968_v44 }
0x52f8   :  { %4887 = vrot.lane.b32.xlu1 %v4886_v33, %s6465_s10  ;;  %s6471_s10 = smov 56  }
0x52fc   :  { %4977 = vrot.lane.b32.xlu1 %v4908_v53, %s6470_s15 }
0x535e   :  { %v4748_v46 = vpop.permute.xlu1 %4747 }
0x535f   :  { %5925 = vmatmul.mubr.msk.f32.vlgmr.msra.gmra.mrb[46].mxu1 %vm914_vm5, %v4748_v46 }
0x5362   :  { %v4880_v35 = vpop.permute.xlu1 %4879 }
0x5363   :  { %v4903_v1 = vsel %vm805_vm1, 0.0, %v4880_v35 }
0x5366   :  { %v4884_v18 = vpop.permute.xlu1 %4883 }
0x5367   :  { %v4904_v55 = vsel %vm4847_vm8, %v4903_v1, %v4884_v18 }
0x536a   :  { %v4888_v34 = vpop.permute.xlu1 %4887 }
0x536b   :  { %v4905_v61 = vsel %vm4849_vm6, %v4904_v55, %v4888_v34 }
0x536c   :  { %4975 = vrot.lane.b32.xlu0 %v4905_v61, %s6470_s15 }
0x536e   :  { %v4978_v6 = vpop.permute.xlu1 %4977 }
0x5370   :  { %4983 = vrot.lane.b32.xlu0 %v7213_v2, %s6471_s10 }
0x5374   :  { %4991 = vrot.lane.b32.xlu0 %v7205_v25, %s6468_s12 }
0x5378   :  { %4999 = vrot.lane.b32.xlu0 %v7217_v56, %s6472_s13 }
0x53de   :  { %v4976_v58 = vpop.permute.xlu0 %4975 }
0x53df   :  { %v5010_v2 = vsel %vm5009_vm14, %v5007_v51, %v4976_v58 }
0x53e2   :  { %v4984_v41 = vpop.permute.xlu0 %4983 }
0x53e3   :  { %v5013_v25 = vsel %vm5012_vm2, %v5010_v2, %v4984_v41 }
0x53e6   :  { %v4992_v8 = vpop.permute.xlu0 %4991 }
0x53e7   :  { %v5015_v59 = vsel %vm914_vm5, %v5013_v25, %v4992_v8 }
0x53ea   :  { %v5000_v56 = vpop.permute.xlu0 %4999 }
0x53eb   :  { %v5018_v49 = vsel %vm5017_vm13, %v5015_v59, %v5000_v56 }
0x53ec   :  { %v5021_v22 = vsel %vm5020_vm15, %v5018_v49, 0.0 }
0x53ed   :  { %5023 = vst [vmem:[#allocation2] sm:$0xff] %v5021_v22 }
0x5432   :  { %v4817_v19 = vpop.f32.mrb[46].mxu1 }
0x5433   :  { %v4818_v15 = vadd.f32 %v6437_v37, %v4817_v19  ;;  %v5926_v40 = vpop.f32.mrb[47].mxu1 }
0x5435   :  { %vm4821_vm0 = vcmp.ge.f32.partialorder %v4818_v15, 0.0  ;;  %v4822_v63 = vmul.f32 0.2, %v4818_v15 }
0x5437   :  { %v4823_v39 = vsel %vm4821_vm0, %v4818_v15, %v4822_v63 }
0x5438   :  { %v4824_v0 = vmul.f32 0.5, %v4823_v39  ;;  %v4870_v14 = vrot.slane %v4823_v39, 2 }
0x543a   :  { %v4825_v10 = vmul.f32 1.442695, %v4824_v0  ;;  %v4877_v54 = vsel %vm4849_vm6, %v4876_v50, %v4870_v14 }
0x543b   :  { %4969 = vrot.lane.b32.xlu1 %v4877_v54, %s6469_s1 }
0x543c   :  { %6430 = vpow2.f32 %v4825_v10 }
0x5446   :  { %v6431_v60 = vpop.eup %6430 }
0x5447   :  { %v4827_v16 = vmul.f32 %v6431_v60, %v7644_v24 }
0x5449   :  { %4829 = vrot.lane.b32.xlu1 %v4827_v16, %s6467_s20  ;;  %s5030_s20 = sshll.u32 %s6473_s3, 4  ;;  %s5031_s20 = int_to_ptr.vmem [resolvable:$true] %s5030_s20 }
0x544a   :  { %p6443_p1 = scmp.lt.s32.totalorder %s5031_s20, %s5031_s20 }
0x544d   :  { %4985 = vrot.lane.b32.xlu1 %v7657_v5, %s6471_s10 }
0x5451   :  { %4993 = vrot.lane.b32.xlu1 %v7649_v12, %s6468_s12  ;;  %s6438_s12 = scalar_lea.vmem %s5031_s20, 256 }
0x5452   :  { %p6439_p0 = scmp.ne.s32.totalorder %s5031_s20, %s6438_s12  ;;  %p6444_p2 = scmp.lt.s32.totalorder %s6438_s12, %s6438_s12 }
0x5454   :  { %p6445_p3 = por %p6444_p2, %p6443_p1 }
0x5455   :  { %5001 = vrot.lane.b32.xlu1 %v7661_v7, %s6472_s13 }
0x5456   :  { %p6446_p4 = pnand %p6445_p3, %p6439_p0 }
0x54ad   :  { %v4970_v36 = vpop.permute.xlu1 %4969 }
0x54bb   :  { %v4830_v52 = vpop.permute.xlu1 %4829 }
0x54bc   :  { %v4832_v62 = vadd.f32 %v4830_v52, %v4823_v39 }
0x54be   :  { %v4844_v4 = vrot.slane %v4832_v62, 2 }
0x54bf   :  { %v4986_v42 = vpop.permute.xlu1 %4985 }
0x54c0   :  { %v4853_v24 = vsel %vm4849_vm6, %v7593_v21, %v4844_v4 }
0x54c1   :  { %v5006_v11 = vsel %vm822_vm3, %v4853_v24, %v4970_v36 }
0x54c2   :  { %v5008_v32 = vsel %vm546_vm12, %v5006_v11, %v4970_v36 }
0x54c3   :  { %v5011_v5 = vsel %vm5009_vm14, %v5008_v32, %v4978_v6  ;;  %v4994_v30 = vpop.permute.xlu1 %4993 }
0x54c4   :  { %v5014_v12 = vsel %vm5012_vm2, %v5011_v5, %v4986_v42 }
0x54c5   :  { %v5016_v7 = vsel %vm914_vm5, %v5014_v12, %v4994_v30 }
0x54c7   :  { %v5002_v27 = vpop.permute.xlu1 %5001 }
0x54c8   :  { %v5019_v28 = vsel %vm5017_vm13, %v5016_v7, %v5002_v27 }
0x54c9   :  { %v5022_v20 = vsel %vm5020_vm15, %v5019_v28, 0.0 }
0x54ca   :  { %5024 = vst [vmem:[#allocation2 + $0x8] sm:$0xff] %v5022_v20 }
0x54cb   :  { %6449 = shalt.err (!%p6446_p4)
}
0x54cc   :  { %s6450_s19 = scalar_lea.hbm %s7761_s4, 256 }
0x54cd   :  { %p6451_p5 = scmp.ne.s32.totalorder %s7761_s4, %s6450_s19  ;;  %p6454_p6 = scmp.lt.u32.totalorder %s6450_s19, %s7761_s4 }
0x54cf   :  { %p6456_p7 = pnand %p6454_p6, %p6451_p5 }
0x54d1   :  { %6459 = shalt.err (!%p6456_p7)
}
0x54d2   :  { %s6474_s25 = smov 128  }
0x54d3   :  { %5036 = dma.vmem_to_hbm [thread:$0]  %s5031_s20, 256, %s7761_s4, [#allocation3], %s6474_s25, %s6474_s25, %s6469_s1  }
0x54d4   :  { %6460 = dma.done.wait [#allocation3], 256  }
0x54d5   :  { %6461 = vsyncadd [#allocation3], 4294967040 }
0x54d6   :  { %5040 = vsyncpa [#allocation3], 1 }

</bundles_post_ra>
